<compile_context>
chip_gen: v5e
topology: v5e:2x2
jax: 0.10.0
libtpu: 0.0.40
codegen_flags: <defaults>
</compile_context>

<pallas_src>
import functools

import jax
import jax.numpy as jnp
from jax.experimental import pallas as pl
from jax.experimental.pallas import tpu as pltpu


C1, C2, C3 = 64, 128, 256      # channel widths of the three conv layers
K1P = 16                       # conv1 im2col contraction depth (9 taps -> 16)
NEG = -1e30                    # additive mask value for row-wrap garbage


def _round_up(x, m):
    return (x + m - 1) // m * m


def _geometry(h0, w0):
    """Static row-wrap geometry (all Python ints, derived from input shape)."""
    H1, W1 = h0 - 2, w0 - 2                 # conv1 VALID output
    PH1, PW1 = H1 // 2, W1 // 2             # pool1
    H2, W2 = PH1 - 2, PW1 - 2               # conv2
    PH2, PW2 = H2 // 2, W2 // 2             # pool2
    H3, W3 = PH2 - 2, PW2 - 2               # conv3
    assert H3 >= 1 and W3 >= 1, "input spatial size too small"

    W1P = _round_up(W1, 32)                 # conv1 grid width (padded)
    PW1P = W1P // 2                         # pool1 grid width (mult of 16)
    PW2P = PW1P // 2                        # pool2 grid width (mult of 8)

    g = dict(H1=H1, W1=W1, PH1=PH1, PW1=PW1, H2=H2, W2=W2, PH2=PH2, PW2=PW2,
             H3=H3, W3=W3, W1P=W1P, PW1P=PW1P, PW2P=PW2P)
    g["M1P"] = H1 * W1P                                  # conv1 rows / sample
    g["P1V"] = PH1 * PW1P                                # pool1 rows written
    g["M2P"] = H2 * PW1P                                 # conv2 rows / sample
    g["P1R"] = _round_up(g["M2P"] + 2 * PW1P + 2, 8)     # p1 rows incl. pad
    g["P2V"] = PH2 * PW2P                                # pool2 rows written
    g["M3P"] = H3 * PW2P                                 # conv3 rows / sample
    g["P2R"] = _round_up(g["M3P"] + 2 * PW2P + 2, 8)     # p2 rows incl. pad
    return g


def _fused_cnn_kernel(x_ref, w1_ref, b1_ref, w2_ref, b2_ref, w3_ref, b3_ref,
                      wc_ref, bc_ref, m3_ref, out_ref,
                      a1, p1, a2, p2, c3, *, g, bt):
    """Whole SimpleCNN forward for one batch tile (grid axis = batch tiles)."""
    f32 = jnp.float32
    W1P, PW1P, PW2P = g["W1P"], g["PW1P"], g["PW2P"]
    M1P, M2P, M3P = g["M1P"], g["M2P"], g["M3P"]
    P1R, P1V, P2R, P2V = g["P1R"], g["P1V"], g["P2R"], g["P2V"]

    for b in range(bt):                     # static unroll over the batch tile
        # ---- conv1: ONE MXU matmul on the lane-dense im2col, single store ----
        a1_base = b * M1P
        a1[pl.ds(a1_base, M1P), :] = jnp.dot(
            x_ref[b], w1_ref[...], preferred_element_type=f32)

        # ---- pool1 (2x2/2): 2 strided reads / pooled row, aligned 16-row write
        #      (bias + ReLU folded into the pooled max; commutes with both)
        p1_base = b * P1R
        for i in range(g["PH1"]):
            r0 = a1_base + 2 * i * W1P
            m = jnp.maximum(a1[pl.ds(r0, W1P, 2), :],       # even cols, rows 2i & 2i+1
                            a1[pl.ds(r0 + 1, W1P, 2), :])   # odd  cols, rows 2i & 2i+1
            row = jnp.maximum(m[:PW1P], m[PW1P:])           # vertical max
            p1[pl.ds(p1_base + i * PW1P, PW1P), :] = jnp.maximum(
                row + b1_ref[...], 0.0)
        p1[pl.ds(p1_base + P1V, P1R - P1V), :] = jnp.zeros((P1R - P1V, C1), f32)

        # ---- conv2: 9 taps accumulated in registers, single VMEM store --------
        acc2 = jnp.dot(p1[pl.ds(p1_base, M2P), :], w2_ref[0],
                       preferred_element_type=f32)
        for t in range(1, 9):
            di, dj = divmod(t, 3)
            acc2 = acc2 + jnp.dot(p1[pl.ds(p1_base + di * PW1P + dj, M2P), :],
                                  w2_ref[t], preferred_element_type=f32)
        a2_base = b * M2P
        a2[pl.ds(a2_base, M2P), :] = acc2

        # ---- pool2 (2x2/2), bias + ReLU of conv2 folded in ---------------------
        p2_base = b * P2R
        for i in range(g["PH2"]):
            r0 = a2_base + 2 * i * PW1P
            m = jnp.maximum(a2[pl.ds(r0, PW1P, 2), :],
                            a2[pl.ds(r0 + 1, PW1P, 2), :])
            row = jnp.maximum(m[:PW2P], m[PW2P:])
            p2[pl.ds(p2_base + i * PW2P, PW2P), :] = jnp.maximum(
                row + b2_ref[...], 0.0)
        p2[pl.ds(p2_base + P2V, P2R - P2V), :] = jnp.zeros((P2R - P2V, C2), f32)

        # ---- conv3 im2col: 9 lane-tile-aligned (M3P, 128) copies ---------------
        c3_base = b * M3P
        for t in range(9):
            di, dj = divmod(t, 3)
            c3[pl.ds(c3_base, M3P), pl.ds(t * C2, C2)] = \
                p2[pl.ds(p2_base + di * PW2P + dj, M3P), :]

    # ---- conv3: ONE deep-K matmul (K = 9*128), batch tile stacked along M -----
    a3 = jnp.dot(c3[...], w3_ref[...], preferred_element_type=f32)  # (bt*M3P, C3)

    # ---- global max (additive mask drops row-wrap garbage), bias+ReLU ---------
    gm = jnp.concatenate(
        [jnp.max(a3[b * M3P:(b + 1) * M3P] + m3_ref[...], axis=0, keepdims=True)
         for b in range(bt)], axis=0)                               # (bt, C3)
    gm = jnp.maximum(gm + b3_ref[...], 0.0)

    # ---- classifier: stacked (bt, 256) @ (256, 128) lane-dense output ---------
    logits = jnp.dot(gm, wc_ref[...], preferred_element_type=f32) + bc_ref[...]
    for b in range(bt):
        out_ref[b] = logits[b:b + 1, :]


def _pick_btile(n, cap=4):
    bt = max(1, min(cap, n))
    # keep >= 2 grid steps so a v7x megacore ("parallel" batch axis) uses both TCs
    if n > 1 and -(-n // bt) < 2:
        bt = -(-n // 2)
    return bt


@jax.jit
def simple_cnn_forward(x_nchw, params):
    """SimpleCNN forward. x_nchw: (N, 1, H, W). Returns (N, nclasses)."""
    n, cin, h0, w0 = x_nchw.shape
    assert cin == 1
    g = _geometry(h0, w0)
    f32 = jnp.float32
    ncls = params["wc"].shape[1]
    p_out = _round_up(ncls, 128)

    bt = _pick_btile(n)
    steps = -(-n // bt)
    n_pad = steps * bt

    H1, W1, W1P = g["H1"], g["W1"], g["W1P"]
    M1P, M3P, PW2P, W3 = g["M1P"], g["M3P"], g["PW2P"], g["W3"]

    # -------- one-time wrapper-side prep on tiny tensors ------------------------
    # conv1 im2col: lane-dense (n_pad, M1P, 16); grid width padded W1 -> W1P so
    # every pooled-row write inside the kernel is sublane aligned.
    x2d = x_nchw.astype(f32).reshape(n, h0, w0)
    taps = [x2d[:, di:di + H1, dj:dj + W1] for di in range(3) for dj in range(3)]
    xcol = jnp.stack(taps, axis=-1)                                  # (n,H1,W1,9)
    xcol = jnp.pad(xcol, ((0, n_pad - n), (0, 0), (0, W1P - W1), (0, K1P - 9)))
    xcol = xcol.reshape(n_pad, M1P, K1P)

    w1m = jnp.pad(jnp.transpose(params["w1"], (2, 3, 1, 0)).reshape(9, C1),
                  ((0, K1P - 9), (0, 0))).astype(f32)                # (16, 64)
    w2m = jnp.transpose(params["w2"], (2, 3, 1, 0)).reshape(9, C1, C2).astype(f32)
    w3m = jnp.transpose(params["w3"], (2, 3, 1, 0)).reshape(9 * C2, C3).astype(f32)
    b1 = params["b1"].reshape(1, C1).astype(f32)
    b2 = params["b2"].reshape(1, C2).astype(f32)
    b3 = params["b3"].reshape(1, C3).astype(f32)
    wcp = jnp.zeros((C3, p_out), f32).at[:, :ncls].set(params["wc"].astype(f32))
    bcp = jnp.zeros((1, p_out), f32).at[:, :ncls].set(
        params["bc"].reshape(1, ncls).astype(f32))
    # additive mask: 0 on valid row-wrap columns (w < W3), -1e30 on garbage ones
    m3mask = jnp.where(jnp.arange(M3P) % PW2P < W3, 0.0, NEG).astype(f32)
    m3mask = m3mask.reshape(M3P, 1)

    flops = 2 * n_pad * (M1P * K1P * C1 + 9 * g["M2P"] * C1 * C2
                         + M3P * 9 * C2 * C3 + C3 * p_out)
    bytes_accessed = 4 * (int(xcol.size) + n_pad * p_out
                          + steps * (int(w1m.size) + int(w2m.size)
                                     + int(w3m.size) + int(wcp.size)))

    kernel = functools.partial(_fused_cnn_kernel, g=g, bt=bt)
    out = pl.pallas_call(
        kernel,
        out_shape=jax.ShapeDtypeStruct((n_pad, 1, p_out), f32),
        grid=(steps,),
        in_specs=[
            pl.BlockSpec((bt, M1P, K1P), lambda i: (i, 0, 0)),     # conv1 im2col
            pl.BlockSpec((K1P, C1), lambda i: (0, 0)),             # w1
            pl.BlockSpec((1, C1), lambda i: (0, 0)),               # b1
            pl.BlockSpec((9, C1, C2), lambda i: (0, 0, 0)),        # w2 (per tap)
            pl.BlockSpec((1, C2), lambda i: (0, 0)),               # b2
            pl.BlockSpec((9 * C2, C3), lambda i: (0, 0)),          # w3 (deep-K)
            pl.BlockSpec((1, C3), lambda i: (0, 0)),               # b3
            pl.BlockSpec((C3, p_out), lambda i: (0, 0)),           # classifier W
            pl.BlockSpec((1, p_out), lambda i: (0, 0)),            # classifier b
            pl.BlockSpec((M3P, 1), lambda i: (0, 0)),              # global-max mask
        ],
        out_specs=pl.BlockSpec((bt, 1, p_out), lambda i: (i, 0, 0)),
        scratch_shapes=[
            pltpu.VMEM((bt * M1P, C1), f32),        # conv1 output (written once)
            pltpu.VMEM((bt * g["P1R"], C1), f32),   # pool1 output (+ zero pad rows)
            pltpu.VMEM((bt * g["M2P"], C2), f32),   # conv2 output (written once)
            pltpu.VMEM((bt * g["P2R"], C2), f32),   # pool2 output (+ zero pad rows)
            pltpu.VMEM((bt * M3P, 9 * C2), f32),    # conv3 deep-K im2col operand
        ],
        compiler_params=pltpu.CompilerParams(
            dimension_semantics=("parallel",)),
        cost_estimate=pl.CostEstimate(flops=flops, transcendentals=0,
                                      bytes_accessed=bytes_accessed),
    )(xcol, w1m, b1, w2m, b2, w3m, b3, wcp, bcp, m3mask)

    return out.reshape(n_pad, p_out)[:n, :ncls]


# ---------------------------------------------------------------------------
# Pure-JAX reference (PyTorch semantics) and parameter init
# ---------------------------------------------------------------------------

def reference_forward(x_nchw, params):
    def conv(x, w, b):
        y = jax.lax.conv_general_dilated(
            x, w, window_strides=(1, 1), padding="VALID",
            dimension_numbers=("NCHW", "OIHW", "NCHW"))
        return jax.nn.relu(y + b[None, :, None, None])

    def pool(x):
        return jax.lax.reduce_window(x, -jnp.inf, jax.lax.max,
                                     (1, 1, 2, 2), (1, 1, 2, 2), "VALID")

    o = pool(conv(x_nchw, params["w1"], params["b1"]))
    o = pool(conv(o, params["w2"], params["b2"]))
    o = conv(o, params["w3"], params["b3"])
    o = jnp.max(o, axis=(2, 3))                       # GlobalMaxPooling
    return o @ params["wc"] + params["bc"]


def init_params(key, nclasses):
    ks = jax.random.split(key, 8)
    s = 0.05
    return {
        "w1": jax.random.normal(ks[0], (64, 1, 3, 3), jnp.float32) * s,
        "b1": jax.random.normal(ks[1], (64,), jnp.float32) * s,
        "w2": jax.random.normal(ks[2], (128, 64, 3, 3), jnp.float32) * s,
        "b2": jax.random.normal(ks[3], (128,), jnp.float32) * s,
        "w3": jax.random.normal(ks[4], (256, 128, 3, 3), jnp.float32) * s,
        "b3": jax.random.normal(ks[5], (256,), jnp.float32) * s,
        # Linear stored already transposed as (in_features, nclasses)
        "wc": jax.random.normal(ks[6], (256, nclasses), jnp.float32) * s,
        "bc": jax.random.normal(ks[7], (nclasses,), jnp.float32) * s,
    }


if __name__ == "__main__":
    nclasses = 10
    key = jax.random.PRNGKey(0)
    kx, kp = jax.random.split(key)
    params = init_params(kp, nclasses)

    # batch=2 exercises the 2-step grid (B_TILE=1); batch=5 exercises B_TILE=4
    # with batch padding and the stacked-M conv3/classifier path.
    for batch in (2, 5):
        x = jax.random.normal(jax.random.fold_in(kx, batch),
                              (batch, 1, 28, 28), jnp.float32)
        out = jax.block_until_ready(simple_cnn_forward(x, params))
        assert out.shape == (batch, nclasses), out.shape
        ref = jax.block_until_ready(reference_forward(x, params))
        assert jnp.allclose(out, ref, rtol=1e-3, atol=1e-3), \
            f"batch={batch}: max abs err {float(jnp.max(jnp.abs(out - ref)))}"

    print("KERNEL_OK")
</pallas_src>

<mosaic_0001>
module attributes {stable_mosaic.version = 11 : i64} {
  func.func @_fused_cnn_kernel(%arg0: i32, %arg1: memref<1x832x16xf32, #tpu.memory_space<vmem>>, %arg2: memref<16x64xf32, #tpu.memory_space<vmem>>, %arg3: memref<1x64xf32, #tpu.memory_space<vmem>>, %arg4: memref<9x64x128xf32, #tpu.memory_space<vmem>>, %arg5: memref<1x128xf32, #tpu.memory_space<vmem>>, %arg6: memref<1152x256xf32, #tpu.memory_space<vmem>>, %arg7: memref<1x256xf32, #tpu.memory_space<vmem>>, %arg8: memref<256x128xf32, #tpu.memory_space<vmem>>, %arg9: memref<1x128xf32, #tpu.memory_space<vmem>>, %arg10: memref<24x1xf32, #tpu.memory_space<vmem>>, %arg11: memref<1x1x128xf32, #tpu.memory_space<vmem>>, %arg12: memref<832x64xf32, #tpu.memory_space<vmem>>, %arg13: memref<216x64xf32, #tpu.memory_space<vmem>>, %arg14: memref<176x128xf32, #tpu.memory_space<vmem>>, %arg15: memref<48x128xf32, #tpu.memory_space<vmem>>, %arg16: memref<24x1152xf32, #tpu.memory_space<vmem>>) attributes {dimension_semantics = [#tpu.dimension_semantics<parallel>], iteration_bounds = array<i64: 2>, scalar_prefetch = 0 : i64, scratch_operands = 5 : i64, tpu.core_type = #tpu.core_type<tc>, window_params = [{transform_indices = @transform_0, window_bounds = array<i64: 1, 832, 16>}, {pipeline_mode = #tpu.pipeline_mode<synchronous>, transform_indices = @transform_1, window_bounds = array<i64: 16, 64>}, {pipeline_mode = #tpu.pipeline_mode<synchronous>, transform_indices = @transform_2, window_bounds = array<i64: 1, 64>}, {pipeline_mode = #tpu.pipeline_mode<synchronous>, transform_indices = @transform_3, window_bounds = array<i64: 9, 64, 128>}, {pipeline_mode = #tpu.pipeline_mode<synchronous>, transform_indices = @transform_4, window_bounds = array<i64: 1, 128>}, {pipeline_mode = #tpu.pipeline_mode<synchronous>, transform_indices = @transform_5, window_bounds = array<i64: 1152, 256>}, {pipeline_mode = #tpu.pipeline_mode<synchronous>, transform_indices = @transform_6, window_bounds = array<i64: 1, 256>}, {pipeline_mode = #tpu.pipeline_mode<synchronous>, transform_indices = @transform_7, window_bounds = array<i64: 256, 128>}, {pipeline_mode = #tpu.pipeline_mode<synchronous>, transform_indices = @transform_8, window_bounds = array<i64: 1, 128>}, {pipeline_mode = #tpu.pipeline_mode<synchronous>, transform_indices = @transform_9, window_bounds = array<i64: 24, 1>}, {transform_indices = @transform_10, window_bounds = array<i64: 1, 1, 128>}]} {
    %c0 = arith.constant 0 : index
    %c0_0 = arith.constant 0 : index
    %c0_1 = arith.constant 0 : index
    %0 = vector.load %arg1[%c0, %c0_0, %c0_1] : memref<1x832x16xf32, #tpu.memory_space<vmem>>, vector<1x832x16xf32>
    %1 = vector.shape_cast %0 : vector<1x832x16xf32> to vector<832x16xf32>
    %c0_2 = arith.constant 0 : index
    %c0_3 = arith.constant 0 : index
    %2 = vector.load %arg2[%c0_2, %c0_3] : memref<16x64xf32, #tpu.memory_space<vmem>>, vector<16x64xf32>
    %cst = arith.constant dense<0.000000e+00> : vector<832x64xf32>
    %3 = tpu.matmul %1, %2, %cst {dimension_numbers = #tpu.dot_dimension_numbers<[1], [0], [0], [1], [0, 0, 1, 1], [], []>} : vector<832x16xf32>, vector<16x64xf32>, vector<832x64xf32> -> vector<832x64xf32>
    %c0_4 = arith.constant 0 : index
    %c0_5 = arith.constant 0 : index
    %4 = vector.load %arg12[%c0_4, %c0_5] : memref<832x64xf32, #tpu.memory_space<vmem>>, vector<832x64xf32>
    tpu.vector_store %arg12[%c0_4, %c0_5], %3 {strides = array<i32>} : memref<832x64xf32, #tpu.memory_space<vmem>>, vector<832x64xf32>,
    %c0_6 = arith.constant 0 : index
    %c0_7 = arith.constant 0 : index
    %5 = tpu.strided_load %arg12[%c0_6, %c0_7] {strides = array<i32: 2, 1>} : memref<832x64xf32, #tpu.memory_space<vmem>>, vector<32x64xf32>
    %c1 = arith.constant 1 : index
    %c0_8 = arith.constant 0 : index
    %6 = tpu.strided_load %arg12[%c1, %c0_8] {strides = array<i32: 2, 1>} : memref<832x64xf32, #tpu.memory_space<vmem>>, vector<32x64xf32>
    %7 = arith.maximumf %5, %6 : vector<32x64xf32>
    %8 = vector.extract_strided_slice %7 {offsets = [0, 0], sizes = [16, 64], strides = [1, 1]} : vector<32x64xf32> to vector<16x64xf32>
    %9 = vector.extract_strided_slice %7 {offsets = [16, 0], sizes = [16, 64], strides = [1, 1]} : vector<32x64xf32> to vector<16x64xf32>
    %10 = arith.maximumf %8, %9 : vector<16x64xf32>
    %c0_9 = arith.constant 0 : index
    %c0_10 = arith.constant 0 : index
    %11 = vector.load %arg3[%c0_9, %c0_10] : memref<1x64xf32, #tpu.memory_space<vmem>>, vector<1x64xf32>
    %12 = vector.broadcast %11 : vector<1x64xf32> to vector<16x64xf32>
    %13 = arith.addf %10, %12 : vector<16x64xf32>
    %cst_11 = arith.constant 0.000000e+00 : f32
    %14 = vector.broadcast %cst_11 : f32 to vector<16x64xf32>
    %15 = arith.maximumf %13, %14 : vector<16x64xf32>
    %c0_12 = arith.constant 0 : index
    %c0_13 = arith.constant 0 : index
    %16 = vector.load %arg13[%c0_12, %c0_13] : memref<216x64xf32, #tpu.memory_space<vmem>>, vector<16x64xf32>
    tpu.vector_store %arg13[%c0_12, %c0_13], %15 {strides = array<i32>} : memref<216x64xf32, #tpu.memory_space<vmem>>, vector<16x64xf32>,
    %c64 = arith.constant 64 : index
    %c0_14 = arith.constant 0 : index
    %17 = tpu.strided_load %arg12[%c64, %c0_14] {strides = array<i32: 2, 1>} : memref<832x64xf32, #tpu.memory_space<vmem>>, vector<32x64xf32>
    %c65 = arith.constant 65 : index
    %c0_15 = arith.constant 0 : index
    %18 = tpu.strided_load %arg12[%c65, %c0_15] {strides = array<i32: 2, 1>} : memref<832x64xf32, #tpu.memory_space<vmem>>, vector<32x64xf32>
    %19 = arith.maximumf %17, %18 : vector<32x64xf32>
    %20 = vector.extract_strided_slice %19 {offsets = [0, 0], sizes = [16, 64], strides = [1, 1]} : vector<32x64xf32> to vector<16x64xf32>
    %21 = vector.extract_strided_slice %19 {offsets = [16, 0], sizes = [16, 64], strides = [1, 1]} : vector<32x64xf32> to vector<16x64xf32>
    %22 = arith.maximumf %20, %21 : vector<16x64xf32>
    %c0_16 = arith.constant 0 : index
    %c0_17 = arith.constant 0 : index
    %23 = vector.load %arg3[%c0_16, %c0_17] : memref<1x64xf32, #tpu.memory_space<vmem>>, vector<1x64xf32>
    %24 = vector.broadcast %23 : vector<1x64xf32> to vector<16x64xf32>
    %25 = arith.addf %22, %24 : vector<16x64xf32>
    %cst_18 = arith.constant 0.000000e+00 : f32
    %26 = vector.broadcast %cst_18 : f32 to vector<16x64xf32>
    %27 = arith.maximumf %25, %26 : vector<16x64xf32>
    %c16 = arith.constant 16 : index
    %c0_19 = arith.constant 0 : index
    %28 = vector.load %arg13[%c16, %c0_19] : memref<216x64xf32, #tpu.memory_space<vmem>>, vector<16x64xf32>
    tpu.vector_store %arg13[%c16, %c0_19], %27 {strides = array<i32>} : memref<216x64xf32, #tpu.memory_space<vmem>>, vector<16x64xf32>,
    %c128 = arith.constant 128 : index
    %c0_20 = arith.constant 0 : index
    %29 = tpu.strided_load %arg12[%c128, %c0_20] {strides = array<i32: 2, 1>} : memref<832x64xf32, #tpu.memory_space<vmem>>, vector<32x64xf32>
    %c129 = arith.constant 129 : index
    %c0_21 = arith.constant 0 : index
    %30 = tpu.strided_load %arg12[%c129, %c0_21] {strides = array<i32: 2, 1>} : memref<832x64xf32, #tpu.memory_space<vmem>>, vector<32x64xf32>
    %31 = arith.maximumf %29, %30 : vector<32x64xf32>
    %32 = vector.extract_strided_slice %31 {offsets = [0, 0], sizes = [16, 64], strides = [1, 1]} : vector<32x64xf32> to vector<16x64xf32>
    %33 = vector.extract_strided_slice %31 {offsets = [16, 0], sizes = [16, 64], strides = [1, 1]} : vector<32x64xf32> to vector<16x64xf32>
    %34 = arith.maximumf %32, %33 : vector<16x64xf32>
    %c0_22 = arith.constant 0 : index
    %c0_23 = arith.constant 0 : index
    %35 = vector.load %arg3[%c0_22, %c0_23] : memref<1x64xf32, #tpu.memory_space<vmem>>, vector<1x64xf32>
    %36 = vector.broadcast %35 : vector<1x64xf32> to vector<16x64xf32>
    %37 = arith.addf %34, %36 : vector<16x64xf32>
    %cst_24 = arith.constant 0.000000e+00 : f32
    %38 = vector.broadcast %cst_24 : f32 to vector<16x64xf32>
    %39 = arith.maximumf %37, %38 : vector<16x64xf32>
    %c32 = arith.constant 32 : index
    %c0_25 = arith.constant 0 : index
    %40 = vector.load %arg13[%c32, %c0_25] : memref<216x64xf32, #tpu.memory_space<vmem>>, vector<16x64xf32>
    tpu.vector_store %arg13[%c32, %c0_25], %39 {strides = array<i32>} : memref<216x64xf32, #tpu.memory_space<vmem>>, vector<16x64xf32>,
    %c192 = arith.constant 192 : index
    %c0_26 = arith.constant 0 : index
    %41 = tpu.strided_load %arg12[%c192, %c0_26] {strides = array<i32: 2, 1>} : memref<832x64xf32, #tpu.memory_space<vmem>>, vector<32x64xf32>
    %c193 = arith.constant 193 : index
    %c0_27 = arith.constant 0 : index
    %42 = tpu.strided_load %arg12[%c193, %c0_27] {strides = array<i32: 2, 1>} : memref<832x64xf32, #tpu.memory_space<vmem>>, vector<32x64xf32>
    %43 = arith.maximumf %41, %42 : vector<32x64xf32>
    %44 = vector.extract_strided_slice %43 {offsets = [0, 0], sizes = [16, 64], strides = [1, 1]} : vector<32x64xf32> to vector<16x64xf32>
    %45 = vector.extract_strided_slice %43 {offsets = [16, 0], sizes = [16, 64], strides = [1, 1]} : vector<32x64xf32> to vector<16x64xf32>
    %46 = arith.maximumf %44, %45 : vector<16x64xf32>
    %c0_28 = arith.constant 0 : index
    %c0_29 = arith.constant 0 : index
    %47 = vector.load %arg3[%c0_28, %c0_29] : memref<1x64xf32, #tpu.memory_space<vmem>>, vector<1x64xf32>
    %48 = vector.broadcast %47 : vector<1x64xf32> to vector<16x64xf32>
    %49 = arith.addf %46, %48 : vector<16x64xf32>
    %cst_30 = arith.constant 0.000000e+00 : f32
    %50 = vector.broadcast %cst_30 : f32 to vector<16x64xf32>
    %51 = arith.maximumf %49, %50 : vector<16x64xf32>
    %c48 = arith.constant 48 : index
    %c0_31 = arith.constant 0 : index
    %52 = vector.load %arg13[%c48, %c0_31] : memref<216x64xf32, #tpu.memory_space<vmem>>, vector<16x64xf32>
    tpu.vector_store %arg13[%c48, %c0_31], %51 {strides = array<i32>} : memref<216x64xf32, #tpu.memory_space<vmem>>, vector<16x64xf32>,
    %c256 = arith.constant 256 : index
    %c0_32 = arith.constant 0 : index
    %53 = tpu.strided_load %arg12[%c256, %c0_32] {strides = array<i32: 2, 1>} : memref<832x64xf32, #tpu.memory_space<vmem>>, vector<32x64xf32>
    %c257 = arith.constant 257 : index
    %c0_33 = arith.constant 0 : index
    %54 = tpu.strided_load %arg12[%c257, %c0_33] {strides = array<i32: 2, 1>} : memref<832x64xf32, #tpu.memory_space<vmem>>, vector<32x64xf32>
    %55 = arith.maximumf %53, %54 : vector<32x64xf32>
    %56 = vector.extract_strided_slice %55 {offsets = [0, 0], sizes = [16, 64], strides = [1, 1]} : vector<32x64xf32> to vector<16x64xf32>
    %57 = vector.extract_strided_slice %55 {offsets = [16, 0], sizes = [16, 64], strides = [1, 1]} : vector<32x64xf32> to vector<16x64xf32>
    %58 = arith.maximumf %56, %57 : vector<16x64xf32>
    %c0_34 = arith.constant 0 : index
    %c0_35 = arith.constant 0 : index
    %59 = vector.load %arg3[%c0_34, %c0_35] : memref<1x64xf32, #tpu.memory_space<vmem>>, vector<1x64xf32>
    %60 = vector.broadcast %59 : vector<1x64xf32> to vector<16x64xf32>
    %61 = arith.addf %58, %60 : vector<16x64xf32>
    %cst_36 = arith.constant 0.000000e+00 : f32
    %62 = vector.broadcast %cst_36 : f32 to vector<16x64xf32>
    %63 = arith.maximumf %61, %62 : vector<16x64xf32>
    %c64_37 = arith.constant 64 : index
    %c0_38 = arith.constant 0 : index
    %64 = vector.load %arg13[%c64_37, %c0_38] : memref<216x64xf32, #tpu.memory_space<vmem>>, vector<16x64xf32>
    tpu.vector_store %arg13[%c64_37, %c0_38], %63 {strides = array<i32>} : memref<216x64xf32, #tpu.memory_space<vmem>>, vector<16x64xf32>,
    %c320 = arith.constant 320 : index
    %c0_39 = arith.constant 0 : index
    %65 = tpu.strided_load %arg12[%c320, %c0_39] {strides = array<i32: 2, 1>} : memref<832x64xf32, #tpu.memory_space<vmem>>, vector<32x64xf32>
    %c321 = arith.constant 321 : index
    %c0_40 = arith.constant 0 : index
    %66 = tpu.strided_load %arg12[%c321, %c0_40] {strides = array<i32: 2, 1>} : memref<832x64xf32, #tpu.memory_space<vmem>>, vector<32x64xf32>
    %67 = arith.maximumf %65, %66 : vector<32x64xf32>
    %68 = vector.extract_strided_slice %67 {offsets = [0, 0], sizes = [16, 64], strides = [1, 1]} : vector<32x64xf32> to vector<16x64xf32>
    %69 = vector.extract_strided_slice %67 {offsets = [16, 0], sizes = [16, 64], strides = [1, 1]} : vector<32x64xf32> to vector<16x64xf32>
    %70 = arith.maximumf %68, %69 : vector<16x64xf32>
    %c0_41 = arith.constant 0 : index
    %c0_42 = arith.constant 0 : index
    %71 = vector.load %arg3[%c0_41, %c0_42] : memref<1x64xf32, #tpu.memory_space<vmem>>, vector<1x64xf32>
    %72 = vector.broadcast %71 : vector<1x64xf32> to vector<16x64xf32>
    %73 = arith.addf %70, %72 : vector<16x64xf32>
    %cst_43 = arith.constant 0.000000e+00 : f32
    %74 = vector.broadcast %cst_43 : f32 to vector<16x64xf32>
    %75 = arith.maximumf %73, %74 : vector<16x64xf32>
    %c80 = arith.constant 80 : index
    %c0_44 = arith.constant 0 : index
    %76 = vector.load %arg13[%c80, %c0_44] : memref<216x64xf32, #tpu.memory_space<vmem>>, vector<16x64xf32>
    tpu.vector_store %arg13[%c80, %c0_44], %75 {strides = array<i32>} : memref<216x64xf32, #tpu.memory_space<vmem>>, vector<16x64xf32>,
    %c384 = arith.constant 384 : index
    %c0_45 = arith.constant 0 : index
    %77 = tpu.strided_load %arg12[%c384, %c0_45] {strides = array<i32: 2, 1>} : memref<832x64xf32, #tpu.memory_space<vmem>>, vector<32x64xf32>
    %c385 = arith.constant 385 : index
    %c0_46 = arith.constant 0 : index
    %78 = tpu.strided_load %arg12[%c385, %c0_46] {strides = array<i32: 2, 1>} : memref<832x64xf32, #tpu.memory_space<vmem>>, vector<32x64xf32>
    %79 = arith.maximumf %77, %78 : vector<32x64xf32>
    %80 = vector.extract_strided_slice %79 {offsets = [0, 0], sizes = [16, 64], strides = [1, 1]} : vector<32x64xf32> to vector<16x64xf32>
    %81 = vector.extract_strided_slice %79 {offsets = [16, 0], sizes = [16, 64], strides = [1, 1]} : vector<32x64xf32> to vector<16x64xf32>
    %82 = arith.maximumf %80, %81 : vector<16x64xf32>
    %c0_47 = arith.constant 0 : index
    %c0_48 = arith.constant 0 : index
    %83 = vector.load %arg3[%c0_47, %c0_48] : memref<1x64xf32, #tpu.memory_space<vmem>>, vector<1x64xf32>
    %84 = vector.broadcast %83 : vector<1x64xf32> to vector<16x64xf32>
    %85 = arith.addf %82, %84 : vector<16x64xf32>
    %cst_49 = arith.constant 0.000000e+00 : f32
    %86 = vector.broadcast %cst_49 : f32 to vector<16x64xf32>
    %87 = arith.maximumf %85, %86 : vector<16x64xf32>
    %c96 = arith.constant 96 : index
    %c0_50 = arith.constant 0 : index
    %88 = vector.load %arg13[%c96, %c0_50] : memref<216x64xf32, #tpu.memory_space<vmem>>, vector<16x64xf32>
    tpu.vector_store %arg13[%c96, %c0_50], %87 {strides = array<i32>} : memref<216x64xf32, #tpu.memory_space<vmem>>, vector<16x64xf32>,
    %c448 = arith.constant 448 : index
    %c0_51 = arith.constant 0 : index
    %89 = tpu.strided_load %arg12[%c448, %c0_51] {strides = array<i32: 2, 1>} : memref<832x64xf32, #tpu.memory_space<vmem>>, vector<32x64xf32>
    %c449 = arith.constant 449 : index
    %c0_52 = arith.constant 0 : index
    %90 = tpu.strided_load %arg12[%c449, %c0_52] {strides = array<i32: 2, 1>} : memref<832x64xf32, #tpu.memory_space<vmem>>, vector<32x64xf32>
    %91 = arith.maximumf %89, %90 : vector<32x64xf32>
    %92 = vector.extract_strided_slice %91 {offsets = [0, 0], sizes = [16, 64], strides = [1, 1]} : vector<32x64xf32> to vector<16x64xf32>
    %93 = vector.extract_strided_slice %91 {offsets = [16, 0], sizes = [16, 64], strides = [1, 1]} : vector<32x64xf32> to vector<16x64xf32>
    %94 = arith.maximumf %92, %93 : vector<16x64xf32>
    %c0_53 = arith.constant 0 : index
    %c0_54 = arith.constant 0 : index
    %95 = vector.load %arg3[%c0_53, %c0_54] : memref<1x64xf32, #tpu.memory_space<vmem>>, vector<1x64xf32>
    %96 = vector.broadcast %95 : vector<1x64xf32> to vector<16x64xf32>
    %97 = arith.addf %94, %96 : vector<16x64xf32>
    %cst_55 = arith.constant 0.000000e+00 : f32
    %98 = vector.broadcast %cst_55 : f32 to vector<16x64xf32>
    %99 = arith.maximumf %97, %98 : vector<16x64xf32>
    %c112 = arith.constant 112 : index
    %c0_56 = arith.constant 0 : index
    %100 = vector.load %arg13[%c112, %c0_56] : memref<216x64xf32, #tpu.memory_space<vmem>>, vector<16x64xf32>
    tpu.vector_store %arg13[%c112, %c0_56], %99 {strides = array<i32>} : memref<216x64xf32, #tpu.memory_space<vmem>>, vector<16x64xf32>,
    %c512 = arith.constant 512 : index
    %c0_57 = arith.constant 0 : index
    %101 = tpu.strided_load %arg12[%c512, %c0_57] {strides = array<i32: 2, 1>} : memref<832x64xf32, #tpu.memory_space<vmem>>, vector<32x64xf32>
    %c513 = arith.constant 513 : index
    %c0_58 = arith.constant 0 : index
    %102 = tpu.strided_load %arg12[%c513, %c0_58] {strides = array<i32: 2, 1>} : memref<832x64xf32, #tpu.memory_space<vmem>>, vector<32x64xf32>
    %103 = arith.maximumf %101, %102 : vector<32x64xf32>
    %104 = vector.extract_strided_slice %103 {offsets = [0, 0], sizes = [16, 64], strides = [1, 1]} : vector<32x64xf32> to vector<16x64xf32>
    %105 = vector.extract_strided_slice %103 {offsets = [16, 0], sizes = [16, 64], strides = [1, 1]} : vector<32x64xf32> to vector<16x64xf32>
    %106 = arith.maximumf %104, %105 : vector<16x64xf32>
    %c0_59 = arith.constant 0 : index
    %c0_60 = arith.constant 0 : index
    %107 = vector.load %arg3[%c0_59, %c0_60] : memref<1x64xf32, #tpu.memory_space<vmem>>, vector<1x64xf32>
    %108 = vector.broadcast %107 : vector<1x64xf32> to vector<16x64xf32>
    %109 = arith.addf %106, %108 : vector<16x64xf32>
    %cst_61 = arith.constant 0.000000e+00 : f32
    %110 = vector.broadcast %cst_61 : f32 to vector<16x64xf32>
    %111 = arith.maximumf %109, %110 : vector<16x64xf32>
    %c128_62 = arith.constant 128 : index
    %c0_63 = arith.constant 0 : index
    %112 = vector.load %arg13[%c128_62, %c0_63] : memref<216x64xf32, #tpu.memory_space<vmem>>, vector<16x64xf32>
    tpu.vector_store %arg13[%c128_62, %c0_63], %111 {strides = array<i32>} : memref<216x64xf32, #tpu.memory_space<vmem>>, vector<16x64xf32>,
    %c576 = arith.constant 576 : index
    %c0_64 = arith.constant 0 : index
    %113 = tpu.strided_load %arg12[%c576, %c0_64] {strides = array<i32: 2, 1>} : memref<832x64xf32, #tpu.memory_space<vmem>>, vector<32x64xf32>
    %c577 = arith.constant 577 : index
    %c0_65 = arith.constant 0 : index
    %114 = tpu.strided_load %arg12[%c577, %c0_65] {strides = array<i32: 2, 1>} : memref<832x64xf32, #tpu.memory_space<vmem>>, vector<32x64xf32>
    %115 = arith.maximumf %113, %114 : vector<32x64xf32>
    %116 = vector.extract_strided_slice %115 {offsets = [0, 0], sizes = [16, 64], strides = [1, 1]} : vector<32x64xf32> to vector<16x64xf32>
    %117 = vector.extract_strided_slice %115 {offsets = [16, 0], sizes = [16, 64], strides = [1, 1]} : vector<32x64xf32> to vector<16x64xf32>
    %118 = arith.maximumf %116, %117 : vector<16x64xf32>
    %c0_66 = arith.constant 0 : index
    %c0_67 = arith.constant 0 : index
    %119 = vector.load %arg3[%c0_66, %c0_67] : memref<1x64xf32, #tpu.memory_space<vmem>>, vector<1x64xf32>
    %120 = vector.broadcast %119 : vector<1x64xf32> to vector<16x64xf32>
    %121 = arith.addf %118, %120 : vector<16x64xf32>
    %cst_68 = arith.constant 0.000000e+00 : f32
    %122 = vector.broadcast %cst_68 : f32 to vector<16x64xf32>
    %123 = arith.maximumf %121, %122 : vector<16x64xf32>
    %c144 = arith.constant 144 : index
    %c0_69 = arith.constant 0 : index
    %124 = vector.load %arg13[%c144, %c0_69] : memref<216x64xf32, #tpu.memory_space<vmem>>, vector<16x64xf32>
    tpu.vector_store %arg13[%c144, %c0_69], %123 {strides = array<i32>} : memref<216x64xf32, #tpu.memory_space<vmem>>, vector<16x64xf32>,
    %c640 = arith.constant 640 : index
    %c0_70 = arith.constant 0 : index
    %125 = tpu.strided_load %arg12[%c640, %c0_70] {strides = array<i32: 2, 1>} : memref<832x64xf32, #tpu.memory_space<vmem>>, vector<32x64xf32>
    %c641 = arith.constant 641 : index
    %c0_71 = arith.constant 0 : index
    %126 = tpu.strided_load %arg12[%c641, %c0_71] {strides = array<i32: 2, 1>} : memref<832x64xf32, #tpu.memory_space<vmem>>, vector<32x64xf32>
    %127 = arith.maximumf %125, %126 : vector<32x64xf32>
    %128 = vector.extract_strided_slice %127 {offsets = [0, 0], sizes = [16, 64], strides = [1, 1]} : vector<32x64xf32> to vector<16x64xf32>
    %129 = vector.extract_strided_slice %127 {offsets = [16, 0], sizes = [16, 64], strides = [1, 1]} : vector<32x64xf32> to vector<16x64xf32>
    %130 = arith.maximumf %128, %129 : vector<16x64xf32>
    %c0_72 = arith.constant 0 : index
    %c0_73 = arith.constant 0 : index
    %131 = vector.load %arg3[%c0_72, %c0_73] : memref<1x64xf32, #tpu.memory_space<vmem>>, vector<1x64xf32>
    %132 = vector.broadcast %131 : vector<1x64xf32> to vector<16x64xf32>
    %133 = arith.addf %130, %132 : vector<16x64xf32>
    %cst_74 = arith.constant 0.000000e+00 : f32
    %134 = vector.broadcast %cst_74 : f32 to vector<16x64xf32>
    %135 = arith.maximumf %133, %134 : vector<16x64xf32>
    %c160 = arith.constant 160 : index
    %c0_75 = arith.constant 0 : index
    %136 = vector.load %arg13[%c160, %c0_75] : memref<216x64xf32, #tpu.memory_space<vmem>>, vector<16x64xf32>
    tpu.vector_store %arg13[%c160, %c0_75], %135 {strides = array<i32>} : memref<216x64xf32, #tpu.memory_space<vmem>>, vector<16x64xf32>,
    %c704 = arith.constant 704 : index
    %c0_76 = arith.constant 0 : index
    %137 = tpu.strided_load %arg12[%c704, %c0_76] {strides = array<i32: 2, 1>} : memref<832x64xf32, #tpu.memory_space<vmem>>, vector<32x64xf32>
    %c705 = arith.constant 705 : index
    %c0_77 = arith.constant 0 : index
    %138 = tpu.strided_load %arg12[%c705, %c0_77] {strides = array<i32: 2, 1>} : memref<832x64xf32, #tpu.memory_space<vmem>>, vector<32x64xf32>
    %139 = arith.maximumf %137, %138 : vector<32x64xf32>
    %140 = vector.extract_strided_slice %139 {offsets = [0, 0], sizes = [16, 64], strides = [1, 1]} : vector<32x64xf32> to vector<16x64xf32>
    %141 = vector.extract_strided_slice %139 {offsets = [16, 0], sizes = [16, 64], strides = [1, 1]} : vector<32x64xf32> to vector<16x64xf32>
    %142 = arith.maximumf %140, %141 : vector<16x64xf32>
    %c0_78 = arith.constant 0 : index
    %c0_79 = arith.constant 0 : index
    %143 = vector.load %arg3[%c0_78, %c0_79] : memref<1x64xf32, #tpu.memory_space<vmem>>, vector<1x64xf32>
    %144 = vector.broadcast %143 : vector<1x64xf32> to vector<16x64xf32>
    %145 = arith.addf %142, %144 : vector<16x64xf32>
    %cst_80 = arith.constant 0.000000e+00 : f32
    %146 = vector.broadcast %cst_80 : f32 to vector<16x64xf32>
    %147 = arith.maximumf %145, %146 : vector<16x64xf32>
    %c176 = arith.constant 176 : index
    %c0_81 = arith.constant 0 : index
    %148 = vector.load %arg13[%c176, %c0_81] : memref<216x64xf32, #tpu.memory_space<vmem>>, vector<16x64xf32>
    tpu.vector_store %arg13[%c176, %c0_81], %147 {strides = array<i32>} : memref<216x64xf32, #tpu.memory_space<vmem>>, vector<16x64xf32>,
    %c768 = arith.constant 768 : index
    %c0_82 = arith.constant 0 : index
    %149 = tpu.strided_load %arg12[%c768, %c0_82] {strides = array<i32: 2, 1>} : memref<832x64xf32, #tpu.memory_space<vmem>>, vector<32x64xf32>
    %c769 = arith.constant 769 : index
    %c0_83 = arith.constant 0 : index
    %150 = tpu.strided_load %arg12[%c769, %c0_83] {strides = array<i32: 2, 1>} : memref<832x64xf32, #tpu.memory_space<vmem>>, vector<32x64xf32>
    %151 = arith.maximumf %149, %150 : vector<32x64xf32>
    %152 = vector.extract_strided_slice %151 {offsets = [0, 0], sizes = [16, 64], strides = [1, 1]} : vector<32x64xf32> to vector<16x64xf32>
    %153 = vector.extract_strided_slice %151 {offsets = [16, 0], sizes = [16, 64], strides = [1, 1]} : vector<32x64xf32> to vector<16x64xf32>
    %154 = arith.maximumf %152, %153 : vector<16x64xf32>
    %c0_84 = arith.constant 0 : index
    %c0_85 = arith.constant 0 : index
    %155 = vector.load %arg3[%c0_84, %c0_85] : memref<1x64xf32, #tpu.memory_space<vmem>>, vector<1x64xf32>
    %156 = vector.broadcast %155 : vector<1x64xf32> to vector<16x64xf32>
    %157 = arith.addf %154, %156 : vector<16x64xf32>
    %cst_86 = arith.constant 0.000000e+00 : f32
    %158 = vector.broadcast %cst_86 : f32 to vector<16x64xf32>
    %159 = arith.maximumf %157, %158 : vector<16x64xf32>
    %c192_87 = arith.constant 192 : index
    %c0_88 = arith.constant 0 : index
    %160 = vector.load %arg13[%c192_87, %c0_88] : memref<216x64xf32, #tpu.memory_space<vmem>>, vector<16x64xf32>
    tpu.vector_store %arg13[%c192_87, %c0_88], %159 {strides = array<i32>} : memref<216x64xf32, #tpu.memory_space<vmem>>, vector<16x64xf32>,
    %cst_89 = arith.constant 0.000000e+00 : f32
    %161 = vector.broadcast %cst_89 : f32 to vector<8x64xf32>
    %c208 = arith.constant 208 : index
    %c0_90 = arith.constant 0 : index
    %162 = vector.load %arg13[%c208, %c0_90] : memref<216x64xf32, #tpu.memory_space<vmem>>, vector<8x64xf32>
    tpu.vector_store %arg13[%c208, %c0_90], %161 {strides = array<i32>} : memref<216x64xf32, #tpu.memory_space<vmem>>, vector<8x64xf32>,
    %c0_91 = arith.constant 0 : index
    %c0_92 = arith.constant 0 : index
    %163 = vector.load %arg13[%c0_91, %c0_92] : memref<216x64xf32, #tpu.memory_space<vmem>>, vector<176x64xf32>
    %c0_93 = arith.constant 0 : index
    %c0_94 = arith.constant 0 : index
    %c0_95 = arith.constant 0 : index
    %164 = vector.load %arg4[%c0_93, %c0_94, %c0_95] : memref<9x64x128xf32, #tpu.memory_space<vmem>>, vector<1x64x128xf32>
    %165 = vector.shape_cast %164 : vector<1x64x128xf32> to vector<64x128xf32>
    %cst_96 = arith.constant dense<0.000000e+00> : vector<176x128xf32>
    %166 = tpu.matmul %163, %165, %cst_96 {dimension_numbers = #tpu.dot_dimension_numbers<[1], [0], [0], [1], [0, 0, 1, 1], [], []>} : vector<176x64xf32>, vector<64x128xf32>, vector<176x128xf32> -> vector<176x128xf32>
    %c1_97 = arith.constant 1 : index
    %c0_98 = arith.constant 0 : index
    %167 = vector.load %arg13[%c1_97, %c0_98] : memref<216x64xf32, #tpu.memory_space<vmem>>, vector<176x64xf32>
    %c1_99 = arith.constant 1 : index
    %c0_100 = arith.constant 0 : index
    %c0_101 = arith.constant 0 : index
    %168 = vector.load %arg4[%c1_99, %c0_100, %c0_101] : memref<9x64x128xf32, #tpu.memory_space<vmem>>, vector<1x64x128xf32>
    %169 = vector.shape_cast %168 : vector<1x64x128xf32> to vector<64x128xf32>
    %cst_102 = arith.constant dense<0.000000e+00> : vector<176x128xf32>
    %170 = tpu.matmul %167, %169, %cst_102 {dimension_numbers = #tpu.dot_dimension_numbers<[1], [0], [0], [1], [0, 0, 1, 1], [], []>} : vector<176x64xf32>, vector<64x128xf32>, vector<176x128xf32> -> vector<176x128xf32>
    %171 = arith.addf %166, %170 : vector<176x128xf32>
    %c2 = arith.constant 2 : index
    %c0_103 = arith.constant 0 : index
    %172 = vector.load %arg13[%c2, %c0_103] : memref<216x64xf32, #tpu.memory_space<vmem>>, vector<176x64xf32>
    %c2_104 = arith.constant 2 : index
    %c0_105 = arith.constant 0 : index
    %c0_106 = arith.constant 0 : index
    %173 = vector.load %arg4[%c2_104, %c0_105, %c0_106] : memref<9x64x128xf32, #tpu.memory_space<vmem>>, vector<1x64x128xf32>
    %174 = vector.shape_cast %173 : vector<1x64x128xf32> to vector<64x128xf32>
    %cst_107 = arith.constant dense<0.000000e+00> : vector<176x128xf32>
    %175 = tpu.matmul %172, %174, %cst_107 {dimension_numbers = #tpu.dot_dimension_numbers<[1], [0], [0], [1], [0, 0, 1, 1], [], []>} : vector<176x64xf32>, vector<64x128xf32>, vector<176x128xf32> -> vector<176x128xf32>
    %176 = arith.addf %171, %175 : vector<176x128xf32>
    %c16_108 = arith.constant 16 : index
    %c0_109 = arith.constant 0 : index
    %177 = vector.load %arg13[%c16_108, %c0_109] : memref<216x64xf32, #tpu.memory_space<vmem>>, vector<176x64xf32>
    %c3 = arith.constant 3 : index
    %c0_110 = arith.constant 0 : index
    %c0_111 = arith.constant 0 : index
    %178 = vector.load %arg4[%c3, %c0_110, %c0_111] : memref<9x64x128xf32, #tpu.memory_space<vmem>>, vector<1x64x128xf32>
    %179 = vector.shape_cast %178 : vector<1x64x128xf32> to vector<64x128xf32>
    %cst_112 = arith.constant dense<0.000000e+00> : vector<176x128xf32>
    %180 = tpu.matmul %177, %179, %cst_112 {dimension_numbers = #tpu.dot_dimension_numbers<[1], [0], [0], [1], [0, 0, 1, 1], [], []>} : vector<176x64xf32>, vector<64x128xf32>, vector<176x128xf32> -> vector<176x128xf32>
    %181 = arith.addf %176, %180 : vector<176x128xf32>
    %c17 = arith.constant 17 : index
    %c0_113 = arith.constant 0 : index
    %182 = vector.load %arg13[%c17, %c0_113] : memref<216x64xf32, #tpu.memory_space<vmem>>, vector<176x64xf32>
    %c4 = arith.constant 4 : index
    %c0_114 = arith.constant 0 : index
    %c0_115 = arith.constant 0 : index
    %183 = vector.load %arg4[%c4, %c0_114, %c0_115] : memref<9x64x128xf32, #tpu.memory_space<vmem>>, vector<1x64x128xf32>
    %184 = vector.shape_cast %183 : vector<1x64x128xf32> to vector<64x128xf32>
    %cst_116 = arith.constant dense<0.000000e+00> : vector<176x128xf32>
    %185 = tpu.matmul %182, %184, %cst_116 {dimension_numbers = #tpu.dot_dimension_numbers<[1], [0], [0], [1], [0, 0, 1, 1], [], []>} : vector<176x64xf32>, vector<64x128xf32>, vector<176x128xf32> -> vector<176x128xf32>
    %186 = arith.addf %181, %185 : vector<176x128xf32>
    %c18 = arith.constant 18 : index
    %c0_117 = arith.constant 0 : index
    %187 = vector.load %arg13[%c18, %c0_117] : memref<216x64xf32, #tpu.memory_space<vmem>>, vector<176x64xf32>
    %c5 = arith.constant 5 : index
    %c0_118 = arith.constant 0 : index
    %c0_119 = arith.constant 0 : index
    %188 = vector.load %arg4[%c5, %c0_118, %c0_119] : memref<9x64x128xf32, #tpu.memory_space<vmem>>, vector<1x64x128xf32>
    %189 = vector.shape_cast %188 : vector<1x64x128xf32> to vector<64x128xf32>
    %cst_120 = arith.constant dense<0.000000e+00> : vector<176x128xf32>
    %190 = tpu.matmul %187, %189, %cst_120 {dimension_numbers = #tpu.dot_dimension_numbers<[1], [0], [0], [1], [0, 0, 1, 1], [], []>} : vector<176x64xf32>, vector<64x128xf32>, vector<176x128xf32> -> vector<176x128xf32>
    %191 = arith.addf %186, %190 : vector<176x128xf32>
    %c32_121 = arith.constant 32 : index
    %c0_122 = arith.constant 0 : index
    %192 = vector.load %arg13[%c32_121, %c0_122] : memref<216x64xf32, #tpu.memory_space<vmem>>, vector<176x64xf32>
    %c6 = arith.constant 6 : index
    %c0_123 = arith.constant 0 : index
    %c0_124 = arith.constant 0 : index
    %193 = vector.load %arg4[%c6, %c0_123, %c0_124] : memref<9x64x128xf32, #tpu.memory_space<vmem>>, vector<1x64x128xf32>
    %194 = vector.shape_cast %193 : vector<1x64x128xf32> to vector<64x128xf32>
    %cst_125 = arith.constant dense<0.000000e+00> : vector<176x128xf32>
    %195 = tpu.matmul %192, %194, %cst_125 {dimension_numbers = #tpu.dot_dimension_numbers<[1], [0], [0], [1], [0, 0, 1, 1], [], []>} : vector<176x64xf32>, vector<64x128xf32>, vector<176x128xf32> -> vector<176x128xf32>
    %196 = arith.addf %191, %195 : vector<176x128xf32>
    %c33 = arith.constant 33 : index
    %c0_126 = arith.constant 0 : index
    %197 = vector.load %arg13[%c33, %c0_126] : memref<216x64xf32, #tpu.memory_space<vmem>>, vector<176x64xf32>
    %c7 = arith.constant 7 : index
    %c0_127 = arith.constant 0 : index
    %c0_128 = arith.constant 0 : index
    %198 = vector.load %arg4[%c7, %c0_127, %c0_128] : memref<9x64x128xf32, #tpu.memory_space<vmem>>, vector<1x64x128xf32>
    %199 = vector.shape_cast %198 : vector<1x64x128xf32> to vector<64x128xf32>
    %cst_129 = arith.constant dense<0.000000e+00> : vector<176x128xf32>
    %200 = tpu.matmul %197, %199, %cst_129 {dimension_numbers = #tpu.dot_dimension_numbers<[1], [0], [0], [1], [0, 0, 1, 1], [], []>} : vector<176x64xf32>, vector<64x128xf32>, vector<176x128xf32> -> vector<176x128xf32>
    %201 = arith.addf %196, %200 : vector<176x128xf32>
    %c34 = arith.constant 34 : index
    %c0_130 = arith.constant 0 : index
    %202 = vector.load %arg13[%c34, %c0_130] : memref<216x64xf32, #tpu.memory_space<vmem>>, vector<176x64xf32>
    %c8 = arith.constant 8 : index
    %c0_131 = arith.constant 0 : index
    %c0_132 = arith.constant 0 : index
    %203 = vector.load %arg4[%c8, %c0_131, %c0_132] : memref<9x64x128xf32, #tpu.memory_space<vmem>>, vector<1x64x128xf32>
    %204 = vector.shape_cast %203 : vector<1x64x128xf32> to vector<64x128xf32>
    %cst_133 = arith.constant dense<0.000000e+00> : vector<176x128xf32>
    %205 = tpu.matmul %202, %204, %cst_133 {dimension_numbers = #tpu.dot_dimension_numbers<[1], [0], [0], [1], [0, 0, 1, 1], [], []>} : vector<176x64xf32>, vector<64x128xf32>, vector<176x128xf32> -> vector<176x128xf32>
    %206 = arith.addf %201, %205 : vector<176x128xf32>
    %c0_134 = arith.constant 0 : index
    %c0_135 = arith.constant 0 : index
    %207 = vector.load %arg14[%c0_134, %c0_135] : memref<176x128xf32, #tpu.memory_space<vmem>>, vector<176x128xf32>
    tpu.vector_store %arg14[%c0_134, %c0_135], %206 {strides = array<i32>} : memref<176x128xf32, #tpu.memory_space<vmem>>, vector<176x128xf32>,
    %c0_136 = arith.constant 0 : index
    %c0_137 = arith.constant 0 : index
    %208 = tpu.strided_load %arg14[%c0_136, %c0_137] {strides = array<i32: 2, 1>} : memref<176x128xf32, #tpu.memory_space<vmem>>, vector<16x128xf32>
    %c1_138 = arith.constant 1 : index
    %c0_139 = arith.constant 0 : index
    %209 = tpu.strided_load %arg14[%c1_138, %c0_139] {strides = array<i32: 2, 1>} : memref<176x128xf32, #tpu.memory_space<vmem>>, vector<16x128xf32>
    %210 = arith.maximumf %208, %209 : vector<16x128xf32>
    %211 = vector.extract_strided_slice %210 {offsets = [0, 0], sizes = [8, 128], strides = [1, 1]} : vector<16x128xf32> to vector<8x128xf32>
    %212 = vector.extract_strided_slice %210 {offsets = [8, 0], sizes = [8, 128], strides = [1, 1]} : vector<16x128xf32> to vector<8x128xf32>
    %213 = arith.maximumf %211, %212 : vector<8x128xf32>
    %c0_140 = arith.constant 0 : index
    %c0_141 = arith.constant 0 : index
    %214 = vector.load %arg5[%c0_140, %c0_141] : memref<1x128xf32, #tpu.memory_space<vmem>>, vector<1x128xf32>
    %215 = vector.broadcast %214 : vector<1x128xf32> to vector<8x128xf32>
    %216 = arith.addf %213, %215 : vector<8x128xf32>
    %cst_142 = arith.constant 0.000000e+00 : f32
    %217 = vector.broadcast %cst_142 : f32 to vector<8x128xf32>
    %218 = arith.maximumf %216, %217 : vector<8x128xf32>
    %c0_143 = arith.constant 0 : index
    %c0_144 = arith.constant 0 : index
    %219 = vector.load %arg15[%c0_143, %c0_144] : memref<48x128xf32, #tpu.memory_space<vmem>>, vector<8x128xf32>
    tpu.vector_store %arg15[%c0_143, %c0_144], %218 {strides = array<i32>} : memref<48x128xf32, #tpu.memory_space<vmem>>, vector<8x128xf32>,
    %c32_145 = arith.constant 32 : index
    %c0_146 = arith.constant 0 : index
    %220 = tpu.strided_load %arg14[%c32_145, %c0_146] {strides = array<i32: 2, 1>} : memref<176x128xf32, #tpu.memory_space<vmem>>, vector<16x128xf32>
    %c33_147 = arith.constant 33 : index
    %c0_148 = arith.constant 0 : index
    %221 = tpu.strided_load %arg14[%c33_147, %c0_148] {strides = array<i32: 2, 1>} : memref<176x128xf32, #tpu.memory_space<vmem>>, vector<16x128xf32>
    %222 = arith.maximumf %220, %221 : vector<16x128xf32>
    %223 = vector.extract_strided_slice %222 {offsets = [0, 0], sizes = [8, 128], strides = [1, 1]} : vector<16x128xf32> to vector<8x128xf32>
    %224 = vector.extract_strided_slice %222 {offsets = [8, 0], sizes = [8, 128], strides = [1, 1]} : vector<16x128xf32> to vector<8x128xf32>
    %225 = arith.maximumf %223, %224 : vector<8x128xf32>
    %c0_149 = arith.constant 0 : index
    %c0_150 = arith.constant 0 : index
    %226 = vector.load %arg5[%c0_149, %c0_150] : memref<1x128xf32, #tpu.memory_space<vmem>>, vector<1x128xf32>
    %227 = vector.broadcast %226 : vector<1x128xf32> to vector<8x128xf32>
    %228 = arith.addf %225, %227 : vector<8x128xf32>
    %cst_151 = arith.constant 0.000000e+00 : f32
    %229 = vector.broadcast %cst_151 : f32 to vector<8x128xf32>
    %230 = arith.maximumf %228, %229 : vector<8x128xf32>
    %c8_152 = arith.constant 8 : index
    %c0_153 = arith.constant 0 : index
    %231 = vector.load %arg15[%c8_152, %c0_153] : memref<48x128xf32, #tpu.memory_space<vmem>>, vector<8x128xf32>
    tpu.vector_store %arg15[%c8_152, %c0_153], %230 {strides = array<i32>} : memref<48x128xf32, #tpu.memory_space<vmem>>, vector<8x128xf32>,
    %c64_154 = arith.constant 64 : index
    %c0_155 = arith.constant 0 : index
    %232 = tpu.strided_load %arg14[%c64_154, %c0_155] {strides = array<i32: 2, 1>} : memref<176x128xf32, #tpu.memory_space<vmem>>, vector<16x128xf32>
    %c65_156 = arith.constant 65 : index
    %c0_157 = arith.constant 0 : index
    %233 = tpu.strided_load %arg14[%c65_156, %c0_157] {strides = array<i32: 2, 1>} : memref<176x128xf32, #tpu.memory_space<vmem>>, vector<16x128xf32>
    %234 = arith.maximumf %232, %233 : vector<16x128xf32>
    %235 = vector.extract_strided_slice %234 {offsets = [0, 0], sizes = [8, 128], strides = [1, 1]} : vector<16x128xf32> to vector<8x128xf32>
    %236 = vector.extract_strided_slice %234 {offsets = [8, 0], sizes = [8, 128], strides = [1, 1]} : vector<16x128xf32> to vector<8x128xf32>
    %237 = arith.maximumf %235, %236 : vector<8x128xf32>
    %c0_158 = arith.constant 0 : index
    %c0_159 = arith.constant 0 : index
    %238 = vector.load %arg5[%c0_158, %c0_159] : memref<1x128xf32, #tpu.memory_space<vmem>>, vector<1x128xf32>
    %239 = vector.broadcast %238 : vector<1x128xf32> to vector<8x128xf32>
    %240 = arith.addf %237, %239 : vector<8x128xf32>
    %cst_160 = arith.constant 0.000000e+00 : f32
    %241 = vector.broadcast %cst_160 : f32 to vector<8x128xf32>
    %242 = arith.maximumf %240, %241 : vector<8x128xf32>
    %c16_161 = arith.constant 16 : index
    %c0_162 = arith.constant 0 : index
    %243 = vector.load %arg15[%c16_161, %c0_162] : memref<48x128xf32, #tpu.memory_space<vmem>>, vector<8x128xf32>
    tpu.vector_store %arg15[%c16_161, %c0_162], %242 {strides = array<i32>} : memref<48x128xf32, #tpu.memory_space<vmem>>, vector<8x128xf32>,
    %c96_163 = arith.constant 96 : index
    %c0_164 = arith.constant 0 : index
    %244 = tpu.strided_load %arg14[%c96_163, %c0_164] {strides = array<i32: 2, 1>} : memref<176x128xf32, #tpu.memory_space<vmem>>, vector<16x128xf32>
    %c97 = arith.constant 97 : index
    %c0_165 = arith.constant 0 : index
    %245 = tpu.strided_load %arg14[%c97, %c0_165] {strides = array<i32: 2, 1>} : memref<176x128xf32, #tpu.memory_space<vmem>>, vector<16x128xf32>
    %246 = arith.maximumf %244, %245 : vector<16x128xf32>
    %247 = vector.extract_strided_slice %246 {offsets = [0, 0], sizes = [8, 128], strides = [1, 1]} : vector<16x128xf32> to vector<8x128xf32>
    %248 = vector.extract_strided_slice %246 {offsets = [8, 0], sizes = [8, 128], strides = [1, 1]} : vector<16x128xf32> to vector<8x128xf32>
    %249 = arith.maximumf %247, %248 : vector<8x128xf32>
    %c0_166 = arith.constant 0 : index
    %c0_167 = arith.constant 0 : index
    %250 = vector.load %arg5[%c0_166, %c0_167] : memref<1x128xf32, #tpu.memory_space<vmem>>, vector<1x128xf32>
    %251 = vector.broadcast %250 : vector<1x128xf32> to vector<8x128xf32>
    %252 = arith.addf %249, %251 : vector<8x128xf32>
    %cst_168 = arith.constant 0.000000e+00 : f32
    %253 = vector.broadcast %cst_168 : f32 to vector<8x128xf32>
    %254 = arith.maximumf %252, %253 : vector<8x128xf32>
    %c24 = arith.constant 24 : index
    %c0_169 = arith.constant 0 : index
    %255 = vector.load %arg15[%c24, %c0_169] : memref<48x128xf32, #tpu.memory_space<vmem>>, vector<8x128xf32>
    tpu.vector_store %arg15[%c24, %c0_169], %254 {strides = array<i32>} : memref<48x128xf32, #tpu.memory_space<vmem>>, vector<8x128xf32>,
    %c128_170 = arith.constant 128 : index
    %c0_171 = arith.constant 0 : index
    %256 = tpu.strided_load %arg14[%c128_170, %c0_171] {strides = array<i32: 2, 1>} : memref<176x128xf32, #tpu.memory_space<vmem>>, vector<16x128xf32>
    %c129_172 = arith.constant 129 : index
    %c0_173 = arith.constant 0 : index
    %257 = tpu.strided_load %arg14[%c129_172, %c0_173] {strides = array<i32: 2, 1>} : memref<176x128xf32, #tpu.memory_space<vmem>>, vector<16x128xf32>
    %258 = arith.maximumf %256, %257 : vector<16x128xf32>
    %259 = vector.extract_strided_slice %258 {offsets = [0, 0], sizes = [8, 128], strides = [1, 1]} : vector<16x128xf32> to vector<8x128xf32>
    %260 = vector.extract_strided_slice %258 {offsets = [8, 0], sizes = [8, 128], strides = [1, 1]} : vector<16x128xf32> to vector<8x128xf32>
    %261 = arith.maximumf %259, %260 : vector<8x128xf32>
    %c0_174 = arith.constant 0 : index
    %c0_175 = arith.constant 0 : index
    %262 = vector.load %arg5[%c0_174, %c0_175] : memref<1x128xf32, #tpu.memory_space<vmem>>, vector<1x128xf32>
    %263 = vector.broadcast %262 : vector<1x128xf32> to vector<8x128xf32>
    %264 = arith.addf %261, %263 : vector<8x128xf32>
    %cst_176 = arith.constant 0.000000e+00 : f32
    %265 = vector.broadcast %cst_176 : f32 to vector<8x128xf32>
    %266 = arith.maximumf %264, %265 : vector<8x128xf32>
    %c32_177 = arith.constant 32 : index
    %c0_178 = arith.constant 0 : index
    %267 = vector.load %arg15[%c32_177, %c0_178] : memref<48x128xf32, #tpu.memory_space<vmem>>, vector<8x128xf32>
    tpu.vector_store %arg15[%c32_177, %c0_178], %266 {strides = array<i32>} : memref<48x128xf32, #tpu.memory_space<vmem>>, vector<8x128xf32>,
    %cst_179 = arith.constant 0.000000e+00 : f32
    %268 = vector.broadcast %cst_179 : f32 to vector<8x128xf32>
    %c40 = arith.constant 40 : index
    %c0_180 = arith.constant 0 : index
    %269 = vector.load %arg15[%c40, %c0_180] : memref<48x128xf32, #tpu.memory_space<vmem>>, vector<8x128xf32>
    tpu.vector_store %arg15[%c40, %c0_180], %268 {strides = array<i32>} : memref<48x128xf32, #tpu.memory_space<vmem>>, vector<8x128xf32>,
    %c0_181 = arith.constant 0 : index
    %c0_182 = arith.constant 0 : index
    %270 = vector.load %arg15[%c0_181, %c0_182] : memref<48x128xf32, #tpu.memory_space<vmem>>, vector<24x128xf32>
    %c0_183 = arith.constant 0 : index
    %c0_184 = arith.constant 0 : index
    %271 = vector.load %arg16[%c0_183, %c0_184] : memref<24x1152xf32, #tpu.memory_space<vmem>>, vector<24x128xf32>
    tpu.vector_store %arg16[%c0_183, %c0_184], %270 {strides = array<i32>} : memref<24x1152xf32, #tpu.memory_space<vmem>>, vector<24x128xf32>,
    %c1_185 = arith.constant 1 : index
    %c0_186 = arith.constant 0 : index
    %272 = vector.load %arg15[%c1_185, %c0_186] : memref<48x128xf32, #tpu.memory_space<vmem>>, vector<24x128xf32>
    %c0_187 = arith.constant 0 : index
    %c128_188 = arith.constant 128 : index
    %273 = vector.load %arg16[%c0_187, %c128_188] : memref<24x1152xf32, #tpu.memory_space<vmem>>, vector<24x128xf32>
    tpu.vector_store %arg16[%c0_187, %c128_188], %272 {strides = array<i32>} : memref<24x1152xf32, #tpu.memory_space<vmem>>, vector<24x128xf32>,
    %c2_189 = arith.constant 2 : index
    %c0_190 = arith.constant 0 : index
    %274 = vector.load %arg15[%c2_189, %c0_190] : memref<48x128xf32, #tpu.memory_space<vmem>>, vector<24x128xf32>
    %c0_191 = arith.constant 0 : index
    %c256_192 = arith.constant 256 : index
    %275 = vector.load %arg16[%c0_191, %c256_192] : memref<24x1152xf32, #tpu.memory_space<vmem>>, vector<24x128xf32>
    tpu.vector_store %arg16[%c0_191, %c256_192], %274 {strides = array<i32>} : memref<24x1152xf32, #tpu.memory_space<vmem>>, vector<24x128xf32>,
    %c8_193 = arith.constant 8 : index
    %c0_194 = arith.constant 0 : index
    %276 = vector.load %arg15[%c8_193, %c0_194] : memref<48x128xf32, #tpu.memory_space<vmem>>, vector<24x128xf32>
    %c0_195 = arith.constant 0 : index
    %c384_196 = arith.constant 384 : index
    %277 = vector.load %arg16[%c0_195, %c384_196] : memref<24x1152xf32, #tpu.memory_space<vmem>>, vector<24x128xf32>
    tpu.vector_store %arg16[%c0_195, %c384_196], %276 {strides = array<i32>} : memref<24x1152xf32, #tpu.memory_space<vmem>>, vector<24x128xf32>,
    %c9 = arith.constant 9 : index
    %c0_197 = arith.constant 0 : index
    %278 = vector.load %arg15[%c9, %c0_197] : memref<48x128xf32, #tpu.memory_space<vmem>>, vector<24x128xf32>
    %c0_198 = arith.constant 0 : index
    %c512_199 = arith.constant 512 : index
    %279 = vector.load %arg16[%c0_198, %c512_199] : memref<24x1152xf32, #tpu.memory_space<vmem>>, vector<24x128xf32>
    tpu.vector_store %arg16[%c0_198, %c512_199], %278 {strides = array<i32>} : memref<24x1152xf32, #tpu.memory_space<vmem>>, vector<24x128xf32>,
    %c10 = arith.constant 10 : index
    %c0_200 = arith.constant 0 : index
    %280 = vector.load %arg15[%c10, %c0_200] : memref<48x128xf32, #tpu.memory_space<vmem>>, vector<24x128xf32>
    %c0_201 = arith.constant 0 : index
    %c640_202 = arith.constant 640 : index
    %281 = vector.load %arg16[%c0_201, %c640_202] : memref<24x1152xf32, #tpu.memory_space<vmem>>, vector<24x128xf32>
    tpu.vector_store %arg16[%c0_201, %c640_202], %280 {strides = array<i32>} : memref<24x1152xf32, #tpu.memory_space<vmem>>, vector<24x128xf32>,
    %c16_203 = arith.constant 16 : index
    %c0_204 = arith.constant 0 : index
    %282 = vector.load %arg15[%c16_203, %c0_204] : memref<48x128xf32, #tpu.memory_space<vmem>>, vector<24x128xf32>
    %c0_205 = arith.constant 0 : index
    %c768_206 = arith.constant 768 : index
    %283 = vector.load %arg16[%c0_205, %c768_206] : memref<24x1152xf32, #tpu.memory_space<vmem>>, vector<24x128xf32>
    tpu.vector_store %arg16[%c0_205, %c768_206], %282 {strides = array<i32>} : memref<24x1152xf32, #tpu.memory_space<vmem>>, vector<24x128xf32>,
    %c17_207 = arith.constant 17 : index
    %c0_208 = arith.constant 0 : index
    %284 = vector.load %arg15[%c17_207, %c0_208] : memref<48x128xf32, #tpu.memory_space<vmem>>, vector<24x128xf32>
    %c0_209 = arith.constant 0 : index
    %c896 = arith.constant 896 : index
    %285 = vector.load %arg16[%c0_209, %c896] : memref<24x1152xf32, #tpu.memory_space<vmem>>, vector<24x128xf32>
    tpu.vector_store %arg16[%c0_209, %c896], %284 {strides = array<i32>} : memref<24x1152xf32, #tpu.memory_space<vmem>>, vector<24x128xf32>,
    %c18_210 = arith.constant 18 : index
    %c0_211 = arith.constant 0 : index
    %286 = vector.load %arg15[%c18_210, %c0_211] : memref<48x128xf32, #tpu.memory_space<vmem>>, vector<24x128xf32>
    %c0_212 = arith.constant 0 : index
    %c1024 = arith.constant 1024 : index
    %287 = vector.load %arg16[%c0_212, %c1024] : memref<24x1152xf32, #tpu.memory_space<vmem>>, vector<24x128xf32>
    tpu.vector_store %arg16[%c0_212, %c1024], %286 {strides = array<i32>} : memref<24x1152xf32, #tpu.memory_space<vmem>>, vector<24x128xf32>,
    %c0_213 = arith.constant 0 : index
    %c0_214 = arith.constant 0 : index
    %288 = vector.load %arg16[%c0_213, %c0_214] : memref<24x1152xf32, #tpu.memory_space<vmem>>, vector<24x1152xf32>
    %c0_215 = arith.constant 0 : index
    %c0_216 = arith.constant 0 : index
    %289 = vector.load %arg6[%c0_215, %c0_216] : memref<1152x256xf32, #tpu.memory_space<vmem>>, vector<1152x256xf32>
    %cst_217 = arith.constant dense<0.000000e+00> : vector<24x256xf32>
    %290 = tpu.matmul %288, %289, %cst_217 {dimension_numbers = #tpu.dot_dimension_numbers<[1], [0], [0], [1], [0, 0, 1, 1], [], []>} : vector<24x1152xf32>, vector<1152x256xf32>, vector<24x256xf32> -> vector<24x256xf32>
    %c0_218 = arith.constant 0 : index
    %c0_219 = arith.constant 0 : index
    %291 = vector.load %arg10[%c0_218, %c0_219] : memref<24x1xf32, #tpu.memory_space<vmem>>, vector<24x1xf32>
    %292 = vector.broadcast %291 : vector<24x1xf32> to vector<24x256xf32>
    %293 = arith.addf %290, %292 : vector<24x256xf32>
    %cst_220 = arith.constant dense<0xFF800000> : vector<256xf32>
    %294 = vector.multi_reduction <maximumf>, %293, %cst_220 [0] : vector<24x256xf32> to vector<256xf32>
    %295 = vector.shape_cast %294 : vector<256xf32> to vector<1x256xf32>
    %c0_221 = arith.constant 0 : index
    %c0_222 = arith.constant 0 : index
    %296 = vector.load %arg7[%c0_221, %c0_222] : memref<1x256xf32, #tpu.memory_space<vmem>>, vector<1x256xf32>
    %297 = arith.addf %295, %296 : vector<1x256xf32>
    %cst_223 = arith.constant 0.000000e+00 : f32
    %298 = vector.broadcast %cst_223 : f32 to vector<1x256xf32>
    %299 = arith.maximumf %297, %298 : vector<1x256xf32>
    %c0_224 = arith.constant 0 : index
    %c0_225 = arith.constant 0 : index
    %300 = vector.load %arg8[%c0_224, %c0_225] : memref<256x128xf32, #tpu.memory_space<vmem>>, vector<256x128xf32>
    %cst_226 = arith.constant dense<0.000000e+00> : vector<1x128xf32>
    %301 = tpu.matmul %299, %300, %cst_226 {dimension_numbers = #tpu.dot_dimension_numbers<[1], [0], [0], [1], [0, 0, 1, 1], [], []>} : vector<1x256xf32>, vector<256x128xf32>, vector<1x128xf32> -> vector<1x128xf32>
    %c0_227 = arith.constant 0 : index
    %c0_228 = arith.constant 0 : index
    %302 = vector.load %arg9[%c0_227, %c0_228] : memref<1x128xf32, #tpu.memory_space<vmem>>, vector<1x128xf32>
    %303 = arith.addf %301, %302 : vector<1x128xf32>
    %c0_229 = arith.constant 0 : index
    %c0_230 = arith.constant 0 : index
    %c0_231 = arith.constant 0 : index
    %304 = vector.load %arg11[%c0_229, %c0_230, %c0_231] : memref<1x1x128xf32, #tpu.memory_space<vmem>>, vector<1x1x128xf32>
    %305 = vector.shape_cast %304 : vector<1x1x128xf32> to vector<1x128xf32>
    %306 = vector.shape_cast %303 : vector<1x128xf32> to vector<1x1x128xf32>
    tpu.vector_store %arg11[%c0_229, %c0_230, %c0_231], %306 {strides = array<i32>} : memref<1x1x128xf32, #tpu.memory_space<vmem>>, vector<1x1x128xf32>,
    return
  }
  func.func @transform_0(%arg0: i32) -> (i32, i32, i32) {
    %c0_i32 = arith.constant 0 : i32
    %c0_i32_0 = arith.constant 0 : i32
    %c0_i32_1 = arith.constant 0 : i32
    return %arg0, %c0_i32, %c0_i32_0 : i32, i32, i32
  }
  func.func @transform_1(%arg0: i32) -> (i32, i32) {
    %c0_i32 = arith.constant 0 : i32
    %c0_i32_0 = arith.constant 0 : i32
    %c0_i32_1 = arith.constant 0 : i32
    return %c0_i32, %c0_i32_0 : i32, i32
  }
  func.func @transform_2(%arg0: i32) -> (i32, i32) {
    %c0_i32 = arith.constant 0 : i32
    %c0_i32_0 = arith.constant 0 : i32
    %c0_i32_1 = arith.constant 0 : i32
    return %c0_i32, %c0_i32_0 : i32, i32
  }
  func.func @transform_3(%arg0: i32) -> (i32, i32, i32) {
    %c0_i32 = arith.constant 0 : i32
    %c0_i32_0 = arith.constant 0 : i32
    %c0_i32_1 = arith.constant 0 : i32
    %c0_i32_2 = arith.constant 0 : i32
    return %c0_i32, %c0_i32_0, %c0_i32_1 : i32, i32, i32
  }
  func.func @transform_4(%arg0: i32) -> (i32, i32) {
    %c0_i32 = arith.constant 0 : i32
    %c0_i32_0 = arith.constant 0 : i32
    %c0_i32_1 = arith.constant 0 : i32
    return %c0_i32, %c0_i32_0 : i32, i32
  }
  func.func @transform_5(%arg0: i32) -> (i32, i32) {
    %c0_i32 = arith.constant 0 : i32
    %c0_i32_0 = arith.constant 0 : i32
    %c0_i32_1 = arith.constant 0 : i32
    return %c0_i32, %c0_i32_0 : i32, i32
  }
  func.func @transform_6(%arg0: i32) -> (i32, i32) {
    %c0_i32 = arith.constant 0 : i32
    %c0_i32_0 = arith.constant 0 : i32
    %c0_i32_1 = arith.constant 0 : i32
    return %c0_i32, %c0_i32_0 : i32, i32
  }
  func.func @transform_7(%arg0: i32) -> (i32, i32) {
    %c0_i32 = arith.constant 0 : i32
    %c0_i32_0 = arith.constant 0 : i32
    %c0_i32_1 = arith.constant 0 : i32
    return %c0_i32, %c0_i32_0 : i32, i32
  }
  func.func @transform_8(%arg0: i32) -> (i32, i32) {
    %c0_i32 = arith.constant 0 : i32
    %c0_i32_0 = arith.constant 0 : i32
    %c0_i32_1 = arith.constant 0 : i32
    return %c0_i32, %c0_i32_0 : i32, i32
  }
  func.func @transform_9(%arg0: i32) -> (i32, i32) {
    %c0_i32 = arith.constant 0 : i32
    %c0_i32_0 = arith.constant 0 : i32
    %c0_i32_1 = arith.constant 0 : i32
    return %c0_i32, %c0_i32_0 : i32, i32
  }
  func.func @transform_10(%arg0: i32) -> (i32, i32, i32) {
    %c0_i32 = arith.constant 0 : i32
    %c0_i32_0 = arith.constant 0 : i32
    %c0_i32_1 = arith.constant 0 : i32
    return %arg0, %c0_i32, %c0_i32_0 : i32, i32, i32
  }
}

</mosaic_0001>

<bundles_post_ra>
// kernel: simple_cnn_forward.1
= control target key start
LH: loop header
LB: loop body
LE: loop exit
PB: predicated region body
PF: predicated region fallthrough
CT: control target
= control target key end

     0   :  { %15 = vsyncpa [#allocation8], 0  ;;  %s7659_s0 = inlined_call_operand.vmem [shape: f32[2,832,16], index: 0, kind: input, shape index: {}]   ;;  %s7660_s1 = inlined_call_operand.vmem [shape: f32[16,64], index: 1, kind: input, shape index: {}]   ;;  %s7661_s2 = inlined_call_operand.vmem [shape: f32[1,64], index: 2, kind: input, shape index: {}]   ;;  %s7662_s3 = inlined_call_operand.vmem [shape: f32[9,64,128], index: 3, kind: input, shape index: {}]   ;;  %s7663_s4 = inlined_call_operand.vmem [shape: f32[1,128], index: 4, kind: input, shape index: {}]   ;;  %s7664_s5 = inlined_call_operand.vmem [shape: f32[1152,256], index: 5, kind: input, shape index: {}]   ;;  %s7665_s6 = inlined_call_operand.vmem [shape: f32[1,256], index: 6, kind: input, shape index: {}]   ;;  %s7666_s7 = inlined_call_operand.vmem [shape: f32[256,128], index: 7, kind: input, shape index: {}]   ;;  %s7667_s8 = inlined_call_operand.vmem [shape: f32[1,128], index: 8, kind: input, shape index: {}]   ;;  %s7668_s9 = inlined_call_operand.vmem [shape: f32[24,1], index: 9, kind: input, shape index: {}]   ;;  %s7669_s10 = inlined_call_operand.hbm [shape: f32[2,1,128], index: 10, kind: output, shape index: {}]  }
   0x1   :  { %17 = vsyncpa [#allocation8 + $0x1], 0  ;;  %s5096_s13 = smov 0   ;;  %s5098_s14 = smov 0  }
   0x2   :  { %s5100_s15 = smov 0   ;;  %s5102_s16 = smov 0  }
   0x3 LB: > { %s5117_s17 = sadd.s32 4294967295, %s5037_s16   ;;  %s4534_s18 = sadd.s32 4294967294, %s5037_s16   ;;  %s5037_s16 = sphi %s5102_s16, %s7768_s16   ;;  %s5033_s15 = sphi %s5100_s15, %s7767_s15   ;;  %s5029_s14 = sphi %s5098_s14, %s7766_s14   ;;  %s5025_s13 = sphi %s5096_s13, %s7765_s13  }
   0x4   : > { %s5121_s19 = sadd.s32 1, %s5037_s16   ;;  %s245_s20 = sadd.s32 1, %s5033_s15 }
   0x5   : > { %s242_s21 = ssub.s32 %s5037_s16, %s5121_s19  ;;  %p255_p0 = scmp.ne.s32.totalorder %s5033_s15, %s5029_s14 }
   0x6   : > { %p243_p1 = scmp.eq.s32.totalorder %s242_s21, 0  ;;  %p256_p2 = scmp.eq.s32.totalorder %s5117_s17, 1 }
   0x7   : > { %p261_p3 = scmp.ne.s32.totalorder %s5029_s14, %s5025_s13  ;;  %p262_p4 = scmp.eq.s32.totalorder %s4534_s18, 1 }
   0x8   : > { %s5132_s22 = scalar_select %p243_p1, %s5033_s15, %s245_s20  }
   0x9   : > { %p5134_p5 = por %p256_p2, %p255_p0  ;;  %p5138_p6 = por %p262_p4, %p261_p3 }
   0xa   : > { %p4537_p7 = scmp.ge.s32.totalorder %s5037_s16, 1  ;;  %p315_p8 = scmp.lt.s32.totalorder %s5037_s16, 3 }
   0xc   : > { %p316_p9 = pnand %p4537_p7, %p315_p8 }
   0xe   : > { %319 = sbr.rel (%p316_p9) target bundleno = 1807 (0x70f), region = 60 }
  0x13   : > { %v462_v0 = vld [vmem:[%s7660_s1 + $0x8] sm:$0xff]  ;;  %v461_v1 = vld [vmem:[%s7660_s1] sm:$0xff]  ;;  %p352_p10 = scmp.lt.s32.totalorder %s5117_s17, 1  ;;  %vm463_vm0 = vcmask 130048   ;;  %vm1105_vm1 = vcmask 523264   ;;  %v1655_v27 = vld [vmem:[%s7662_s3 + $0x38] sm:$0xff]  ;;  %s4475_s26 = scalar_lea.hbm %s7669_s10, %s5117_s17 }
  0x14   : > { %790 = vmatpush.msra.mxu0 %v462_v0  ;;  %4908 = vmatpush.msra.mxu3 %v462_v0  ;;  %v1654_v28 = vld [vmem:[%s7662_s3 + $0x30] sm:$0xff]  ;;  %v1653_v29 = vld [vmem:[%s7662_s3 + $0x28] sm:$0xff]  ;;  %v1652_v30 = vld [vmem:[%s7662_s3 + $0x20] sm:$0xff]  ;;  %s350_s20 = sand.u32 1, %s5029_s14   ;;  %s4995_s27 = scalar_lea.hbm %s7669_s10, 2 }
  0x15   : > { %s353_s29 = scalar_select %p352_p10, %s5117_s17, 1  ;;  %4907 = vmatpush.msra.mxu1 %v462_v0  ;;  %1910 = vmatpush.msra.mxu2 %v1655_v27  ;;  %v1651_v35 = vld [vmem:[%s7662_s3 + $0x18] sm:$0xff]  ;;  %v1650_v36 = vld [vmem:[%s7662_s3 + $0x10] sm:$0xff]  ;;  %v1649_v37 = vld [vmem:[%s7662_s3 + $0x8] sm:$0xff] }
  0x16   : > { %791 = vmatpush.msra.mxu0 %v461_v1  ;;  %4910 = vmatpush.msra.mxu3 %v461_v1  ;;  %v1648_v38 = vld [vmem:[%s7662_s3] sm:$0xff]  ;;  %v4650_v43 = vld [vmem:[%s7662_s3 + $0x78] sm:$0xff]  ;;  %v4649_v45 = vld [vmem:[%s7662_s3 + $0x70] sm:$0xff]  ;;  %s4467_s11 = scalar_lea.sflag [#allocation8], %s350_s20 }
  0x17   : > { %s4911_s30 = smul.u32 832, %s353_s29  ;;  %4909 = vmatpush.msra.mxu1 %v461_v1  ;;  %1911 = vmatpush.msra.mxu2 %v1654_v28  ;;  %v4702_v44 = vld [vmem:[%s7662_s3 + $0xb8] sm:$0xff]  ;;  %v4701_v46 = vld [vmem:[%s7662_s3 + $0xb0] sm:$0xff]  ;;  %v4648_v47 = vld [vmem:[%s7662_s3 + $0x68] sm:$0xff] }
  0x18   : > { %2090 = vmatpush.msrb.mxu3 %v4702_v44  ;;  %v4700_v48 = vld [vmem:[%s7662_s3 + $0xa8] sm:$0xff]  ;;  %v4647_v51 = vld [vmem:[%s7662_s3 + $0x60] sm:$0xff]  ;;  %v4646_v55 = vld [vmem:[%s7662_s3 + $0x58] sm:$0xff] }
  0x19   : > { %s5155_s18 = scalar_lea.vmem %s7659_s0, %s4911_s30  ;;  %1912 = vmatpush.msra.mxu2 %v1653_v29  ;;  %1761 = vmatpush.msrb.mxu1 %v4650_v43  ;;  %v4699_v52 = vld [vmem:[%s7662_s3 + $0xa0] sm:$0xff]  ;;  %v4698_v56 = vld [vmem:[%s7662_s3 + $0x98] sm:$0xff]  ;;  %v4645_v57 = vld [vmem:[%s7662_s3 + $0x50] sm:$0xff]  ;;  %s4479_s30 = sshll.u32 %s4475_s26, 4  ;;  %s4480_s30 = int_to_ptr.hbm [resolvable:$true] %s4479_s30 }
  0x1a   : > { %v357_v2 = vld [vmem:[%s5155_s18] sm:$0xff]  ;;  %v358_v3 = vld [vmem:[%s5155_s18 + $0x8] sm:$0xff]  ;;  %v359_v4 = vld [vmem:[%s5155_s18 + $0x10] sm:$0xff]  ;;  %2091 = vmatpush.msrb.mxu3 %v4701_v46  ;;  %s4989_s12 = sshra.s32 %s4480_s30, 4  ;;  %s4990_s12 = int_to_ptr.hbm [resolvable:$true] %s4989_s12 }
  0x1b   : > { %4539 = vmatmul.msk.f32.vlgmr.msra.gmra.mxu0 %vm463_vm0, %v357_v2  ;;  %v360_v5 = vld [vmem:[%s5155_s18 + $0x18] sm:$0xff]  ;;  %v361_v6 = vld [vmem:[%s5155_s18 + $0x20] sm:$0xff]  ;;  %v362_v7 = vld [vmem:[%s5155_s18 + $0x28] sm:$0xff]  ;;  %1913 = vmatpush.msra.mxu2 %v1652_v30  ;;  %s4991_s21 = scalar_lea.hbm %s4990_s12, 1  ;;  %p4996_p0 = scmp.lt.s32.totalorder %s4990_s12, %s7669_s10 }
  0x1c   : > { %v363_v8 = vld [vmem:[%s5155_s18 + $0x30] sm:$0xff]  ;;  %v364_v9 = vld [vmem:[%s5155_s18 + $0x38] sm:$0xff]  ;;  %v365_v10 = vld [vmem:[%s5155_s18 + $0x40] sm:$0xff]  ;;  %1762 = vmatpush.msrb.mxu1 %v4649_v45  ;;  %2092 = vmatpush.msrb.mxu3 %v4700_v48  ;;  %p4992_p11 = scmp.ne.s32.totalorder %s4990_s12, %s4991_s21  ;;  %p4997_p1 = scmp.lt.s32.totalorder %s4995_s27, %s4991_s21 }
  0x1d   : > { %v366_v11 = vld [vmem:[%s5155_s18 + $0x48] sm:$0xff]  ;;  %v367_v12 = vld [vmem:[%s5155_s18 + $0x50] sm:$0xff]  ;;  %v368_v13 = vld [vmem:[%s5155_s18 + $0x58] sm:$0xff]  ;;  %1914 = vmatpush.msra.mxu2 %v1651_v35 }
  0x1e   : > { %v369_v14 = vld [vmem:[%s5155_s18 + $0x60] sm:$0xff]  ;;  %v370_v15 = vld [vmem:[%s5155_s18 + $0x68] sm:$0xff]  ;;  %v371_v16 = vld [vmem:[%s5155_s18 + $0x70] sm:$0xff]  ;;  %1763 = vmatpush.msrb.mxu1 %v4648_v47  ;;  %2093 = vmatpush.msrb.mxu3 %v4699_v52  ;;  %p4993_p12 = pnand %p4992_p11, %p5134_p5  ;;  %p4998_p2 = por %p4997_p1, %p4996_p0 }
  0x1f   : > { %v372_v17 = vld [vmem:[%s5155_s18 + $0x78] sm:$0xff]  ;;  %v373_v19 = vld [vmem:[%s5155_s18 + $0x80] sm:$0xff]  ;;  %v455_v20 = vld [vmem:[%s5155_s18 + $0x310] sm:$0xff]  ;;  %1915 = vmatpush.msra.mxu2 %v1650_v36 }
  0x20   : > { %4637 = vmatmul.msk.f32.vlgmr.msra.gmra.mxu3 %vm463_vm0, %v455_v20  ;;  %v374_v22 = vld [vmem:[%s5155_s18 + $0x88] sm:$0xff]  ;;  %v456_v23 = vld [vmem:[%s5155_s18 + $0x318] sm:$0xff]  ;;  %v375_v25 = vld [vmem:[%s5155_s18 + $0x90] sm:$0xff]  ;;  %1764 = vmatpush.msrb.mxu1 %v4647_v51  ;;  %p4994_p13 = pneg %p4993_p12 }
  0x21   : > { %v457_v26 = vld [vmem:[%s5155_s18 + $0x320] sm:$0xff]  ;;  %v376_v32 = vld [vmem:[%s5155_s18 + $0x98] sm:$0xff]  ;;  %v458_v34 = vld [vmem:[%s5155_s18 + $0x328] sm:$0xff]  ;;  %1916 = vmatpush.msra.mxu2 %v1649_v37  ;;  %2094 = vmatpush.msrb.mxu3 %v4698_v56 }
  0x22   : > { %v452_v33 = vld [vmem:[%s5155_s18 + $0x2f8] sm:$0xff]  ;;  %v377_v40 = vld [vmem:[%s5155_s18 + $0xa0] sm:$0xff]  ;;  %v459_v42 = vld [vmem:[%s5155_s18 + $0x330] sm:$0xff]  ;;  %1765 = vmatpush.msrb.mxu1 %v4646_v55  ;;  %p4999_p3 = pnand %p4998_p2, %p4994_p13 }
  0x23   : > { %4540 = vmatmul.msk.f32.gmra.mxu0 %vm463_vm0, %v358_v3  ;;  %4634 = vmatmul.msk.f32.vlgmr.msra.gmra.mxu1 %vm463_vm0, %v452_v33  ;;  %v453_v41 = vld [vmem:[%s5155_s18 + $0x300] sm:$0xff]  ;;  %v378_v50 = vld [vmem:[%s5155_s18 + $0xa8] sm:$0xff]  ;;  %v460_v54 = vld [vmem:[%s5155_s18 + $0x338] sm:$0xff] }
  0x24   : > { %1917 = vmatpush.msra.mxu2 %v1648_v38  ;;  %v454_v53 = vld [vmem:[%s5155_s18 + $0x308] sm:$0xff]  ;;  %v4697_v58 = vld [vmem:[%s7662_s3 + $0x90] sm:$0xff]  ;;  %1766 = vmatpush.msrb.mxu1 %v4645_v57  ;;  %v4643_v3 = vld [vmem:[%s7662_s3 + $0x40] sm:$0xff] }
  0x25   : > { %2095 = vmatpush.msrb.mxu3 %v4697_v58  ;;  %v4644_v61 = vld [vmem:[%s7662_s3 + $0x48] sm:$0xff]  ;;  %v379_v63 = vld [vmem:[%s5155_s18 + $0xb0] sm:$0xff]  ;;  %v384_v33 = vld [vmem:[%s5155_s18 + $0xd8] sm:$0xff] }
  0x26   : > { %v4696_v62 = vld [vmem:[%s7662_s3 + $0x88] sm:$0xff]  ;;  %1767 = vmatpush.msrb.mxu1 %v4644_v61  ;;  %v383_v28 = vld [vmem:[%s5155_s18 + $0xd0] sm:$0xff]  ;;  %v385_v35 = vld [vmem:[%s5155_s18 + $0xe0] sm:$0xff] }
  0x27   : > { %2096 = vmatpush.msrb.mxu3 %v4696_v62  ;;  %v386_v37 = vld [vmem:[%s5155_s18 + $0xe8] sm:$0xff]  ;;  %v387_v43 = vld [vmem:[%s5155_s18 + $0xf0] sm:$0xff]  ;;  %v4956_v46 = vld [vmem:[%s7661_s2] ss:$0 sm:$0xff] }
  0x28   : > { %4638 = vmatmul.msk.f32.gmra.mxu3 %vm463_vm0, %v456_v23  ;;  %1768 = vmatpush.msrb.mxu1 %v4643_v3  ;;  %v388_v51 = vld [vmem:[%s5155_s18 + $0xf8] sm:$0xff]  ;;  %v389_v57 = vld [vmem:[%s5155_s18 + $0x100] sm:$0xff] }
  0x2b   : > { %4541 = vmatmul.msk.f32.gmra.mxu0 %vm463_vm0, %v359_v4  ;;  %4635 = vmatmul.msk.f32.gmra.mxu1 %vm463_vm0, %v453_v41 }
  0x30   : > { %4639 = vmatmul.msk.f32.gmra.mxu3 %vm463_vm0, %v457_v26  ;;  %v382_v26 = vld [vmem:[%s5155_s18 + $0xc8] sm:$0xff] }
  0x33   : > { %4542 = vmatmul.msk.f32.gmra.mxu0 %vm463_vm0, %v360_v5  ;;  %4636 = vmatmul.msk.f32.gmra.mxu1 %vm463_vm0, %v454_v53 }
  0x38   : > { %4640 = vmatmul.msk.f32.gmra.mxu3 %vm463_vm0, %v458_v34 }
  0x3b   : > { %4543 = vmatmul.msk.f32.gmra.mxu0 %vm463_vm0, %v361_v6  ;;  %v4955_v6 = vld [vmem:[%s7661_s2] ss:$0 sm:$0xff] }
  0x40   : > { %4641 = vmatmul.msk.f32.gmra.mxu3 %vm463_vm0, %v459_v42 }
  0x43   : > { %4544 = vmatmul.msk.f32.gmra.mxu0 %vm463_vm0, %v362_v7  ;;  %v4695_v7 = vld [vmem:[%s7662_s3 + $0x80] sm:$0xff] }
  0x44   : > { %2097 = vmatpush.msrb.mxu3 %v4695_v7  ;;  %v391_v7 = vld [vmem:[%s5155_s18 + $0x110] sm:$0xff] }
  0x48   : > { %4642 = vmatmul.msk.f32.gmra.mxu3 %vm463_vm0, %v460_v54 }
  0x4b   : > { %4545 = vmatmul.msk.f32.gmra.mxu0 %vm463_vm0, %v363_v8 }
  0x53   : > { %4546 = vmatmul.msk.f32.gmra.mxu0 %vm463_vm0, %v364_v9 }
  0x5b   : > { %4547 = vmatmul.msk.f32.gmra.mxu0 %vm463_vm0, %v365_v10 }
  0x63   : > { %4548 = vmatmul.msk.f32.gmra.mxu0 %vm463_vm0, %v366_v11 }
  0x6b   : > { %4549 = vmatmul.msk.f32.gmra.mxu0 %vm463_vm0, %v367_v12  ;;  %v380_v12 = vld [vmem:[%s5155_s18 + $0xb8] sm:$0xff] }
  0x73   : > { %4550 = vmatmul.msk.f32.gmra.mxu0 %vm463_vm0, %v368_v13 }
  0x7b   : > { %4551 = vmatmul.msk.f32.gmra.mxu0 %vm463_vm0, %v369_v14 }
  0x83   : > { %4552 = vmatmul.msk.f32.gmra.mxu0 %vm463_vm0, %v370_v15 }
  0x8b   : > { %4553 = vmatmul.msk.f32.gmra.mxu0 %vm463_vm0, %v371_v16 }
  0x93   : > { %4554 = vmatmul.msk.f32.gmra.mxu0 %vm463_vm0, %v372_v17 }
  0x98   : > { %v793_v18 = vpop.f32.mrf.mxu0 }
  0x99   : > { %1106 = vst.msk [vmem:[#allocation2] sm:$0xff] %vm1105_vm1, %v793_v18  ;;  %v381_v18 = vld [vmem:[%s5155_s18 + $0xc0] sm:$0xff] }
  0x9b   : > { %4555 = vmatmul.msk.f32.gmra.mxu0 %vm463_vm0, %v373_v19 }
  0xa0   : > { %v796_v21 = vpop.f32.mrf.mxu0 }
  0xa1   : > { %1107 = vst.msk [vmem:[#allocation2 + $0x8] sm:$0xff] %vm1105_vm1, %v796_v21 }
  0xa3   : > { %4556 = vmatmul.msk.f32.gmra.mxu0 %vm463_vm0, %v374_v22 }
  0xa8   : > { %v799_v24 = vpop.f32.mrf.mxu0  ;;  %v1210_v59 = vld [vmem:[#allocation2] ss:$2 sm:$0xff]  ;;  %v1218_v60 = vld [vmem:[#allocation2 + $0x1] ss:$2 sm:$0xff] }
  0xa9   : > { %1108 = vst.msk [vmem:[#allocation2 + $0x10] sm:$0xff] %vm1105_vm1, %v799_v24  ;;  %v1225_v4 = vmax.f32 %v1210_v59, %v1218_v60 }
  0xab   : > { %4557 = vmatmul.msk.f32.gmra.mxu0 %vm463_vm0, %v375_v25 }
  0xb0   : > { %v802_v31 = vpop.f32.mrf.mxu0 }
  0xb1   : > { %1109 = vst.msk [vmem:[#allocation2 + $0x18] sm:$0xff] %vm1105_vm1, %v802_v31 }
  0xb3   : > { %4558 = vmatmul.msk.f32.gmra.mxu0 %vm463_vm0, %v376_v32 }
  0xb8   : > { %v805_v39 = vpop.f32.mrf.mxu0  ;;  %v1212_v13 = vld [vmem:[#allocation2 + $0x10] ss:$2 sm:$0xff]  ;;  %v1220_v14 = vld [vmem:[#allocation2 + $0x11] ss:$2 sm:$0xff] }
  0xb9   : > { %1110 = vst.msk [vmem:[#allocation2 + $0x20] sm:$0xff] %vm1105_vm1, %v805_v39  ;;  %v1226_v19 = vmax.f32 %v1212_v13, %v1220_v14  ;;  %v392_v14 = vld [vmem:[%s5155_s18 + $0x118] sm:$0xff] }
  0xbb   : > { %4559 = vmatmul.msk.f32.gmra.mxu0 %vm463_vm0, %v377_v40 }
  0xc0   : > { %v808_v49 = vpop.f32.mrf.mxu0 }
  0xc1   : > { %1111 = vst.msk [vmem:[#allocation2 + $0x28] sm:$0xff] %vm1105_vm1, %v808_v49 }
  0xc3   : > { %4560 = vmatmul.msk.f32.gmra.mxu0 %vm463_vm0, %v378_v50 }
  0xc8   : > { %v1214_v0 = vld [vmem:[#allocation2 + $0x20] ss:$2 sm:$0xff]  ;;  %v1222_v1 = vld [vmem:[#allocation2 + $0x21] ss:$2 sm:$0xff]  ;;  %v811_v2 = vpop.f32.mrf.mxu0 }
  0xc9   : > { %v1227_v5 = vmax.f32 %v1214_v0, %v1222_v1  ;;  %1112 = vst.msk [vmem:[#allocation2 + $0x30] sm:$0xff] %vm1105_vm1, %v811_v2  ;;  %v1087_v0 = vpop.f32.mrf.mxu3 }
  0xca   : > { %1204 = vst.msk [vmem:[#allocation2 + $0x310] sm:$0xff] %vm1105_vm1, %v1087_v0  ;;  %v402_v0 = vld [vmem:[%s5155_s18 + $0x168] sm:$0xff] }
  0xcb   : > { %v1229_v8 = vmax.f32 %v1225_v4, %v1227_v5  ;;  %4561 = vmatmul.msk.f32.gmra.mxu0 %vm463_vm0, %v379_v63  ;;  %v390_v4 = vld [vmem:[%s5155_s18 + $0x108] sm:$0xff] }
  0xcd   : > { %v1235_v9 = vadd.f32 %v4955_v6, %v1229_v8 }
  0xcf   : > { %v1237_v10 = vmax.f32 %v1235_v9, 0.0 }
  0xd0   : > { %v814_v11 = vpop.f32.mrf.mxu0 }
  0xd1   : > { %1113 = vst.msk [vmem:[#allocation2 + $0x38] sm:$0xff] %vm1105_vm1, %v814_v11  ;;  %v1090_v5 = vpop.f32.mrf.mxu3 }
  0xd2   : > { %1239 = vst.msk [vmem:[#allocation3] sm:$0xff] %vm1105_vm1, %v1237_v10 }
  0xd3   : > { %4562 = vmatmul.msk.f32.gmra.mxu0 %vm463_vm0, %v380_v12  ;;  %1205 = vst.msk [vmem:[#allocation2 + $0x318] sm:$0xff] %vm1105_vm1, %v1090_v5  ;;  %v1078_v12 = vpop.f32.mrf.mxu1 }
  0xd4   : > { %1201 = vst.msk [vmem:[#allocation2 + $0x2f8] sm:$0xff] %vm1105_vm1, %v1078_v12 }
  0xd8   : > { %v1216_v15 = vld [vmem:[#allocation2 + $0x30] ss:$2 sm:$0xff]  ;;  %v1224_v16 = vld [vmem:[#allocation2 + $0x31] ss:$2 sm:$0xff]  ;;  %v817_v17 = vpop.f32.mrf.mxu0 }
  0xd9   : > { %v1228_v20 = vmax.f32 %v1216_v15, %v1224_v16  ;;  %1114 = vst.msk [vmem:[#allocation2 + $0x40] sm:$0xff] %vm1105_vm1, %v817_v17  ;;  %v1626_v21 = vld [vmem:[#allocation3] sm:$0xff]  ;;  %v1093_v11 = vpop.f32.mrf.mxu3 }
  0xda   : > { %4673 = vmatmul.msk.f32.vlgmr.msra.gmra.mxu2 %vm1105_vm1, %v1626_v21  ;;  %1206 = vst.msk [vmem:[#allocation2 + $0x320] sm:$0xff] %vm1105_vm1, %v1093_v11  ;;  %v393_v17 = vld [vmem:[%s5155_s18 + $0x120] sm:$0xff]  ;;  %v394_v21 = vld [vmem:[%s5155_s18 + $0x128] sm:$0xff] }
  0xdb   : > { %v1230_v22 = vmax.f32 %v1226_v19, %v1228_v20  ;;  %4563 = vmatmul.msk.f32.gmra.mxu0 %vm463_vm0, %v381_v18  ;;  %v1081_v18 = vpop.f32.mrf.mxu1 }
  0xdc   : > { %1202 = vst.msk [vmem:[#allocation2 + $0x300] sm:$0xff] %vm1105_vm1, %v1081_v18 }
  0xdd   : > { %v1236_v23 = vadd.f32 %v4955_v6, %v1230_v22 }
  0xdf   : > { %v1238_v24 = vmax.f32 %v1236_v23, 0.0 }
  0xe0   : > { %v820_v25 = vpop.f32.mrf.mxu0 }
  0xe1   : > { %1115 = vst.msk [vmem:[#allocation2 + $0x48] sm:$0xff] %vm1105_vm1, %v820_v25  ;;  %v1096_v15 = vpop.f32.mrf.mxu3 }
  0xe2   : > { %1240 = vst.msk [vmem:[#allocation3 + $0x8] sm:$0xff] %vm1105_vm1, %v1238_v24 }
  0xe3   : > { %4564 = vmatmul.msk.f32.gmra.mxu0 %vm463_vm0, %v382_v26  ;;  %1207 = vst.msk [vmem:[#allocation2 + $0x328] sm:$0xff] %vm1105_vm1, %v1096_v15  ;;  %v1084_v22 = vpop.f32.mrf.mxu1 }
  0xe4   : > { %1203 = vst.msk [vmem:[#allocation2 + $0x308] sm:$0xff] %vm1105_vm1, %v1084_v22 }
  0xe8   : > { %v823_v27 = vpop.f32.mrf.mxu0  ;;  %v1242_v38 = vld [vmem:[#allocation2 + $0x40] ss:$2 sm:$0xff]  ;;  %v1250_v39 = vld [vmem:[#allocation2 + $0x41] ss:$2 sm:$0xff] }
  0xe9   : > { %1116 = vst.msk [vmem:[#allocation2 + $0x50] sm:$0xff] %vm1105_vm1, %v823_v27  ;;  %v1656_v29 = vld [vmem:[#allocation3 + $0x1] sm:$0xff]  ;;  %v1257_v44 = vmax.f32 %v1242_v38, %v1250_v39  ;;  %v1099_v19 = vpop.f32.mrf.mxu3 }
  0xea   : > { %v1627_v30 = vld [vmem:[#allocation3 + $0x8] sm:$0xff]  ;;  %4651 = vmatmul.msk.f32.vlgmr.msrb.gmra.mxu1 %vm1105_vm1, %v1656_v29  ;;  %1208 = vst.msk [vmem:[#allocation2 + $0x330] sm:$0xff] %vm1105_vm1, %v1099_v19  ;;  %v395_v29 = vld [vmem:[%s5155_s18 + $0x130] sm:$0xff] }
  0xeb   : > { %v1985_v31 = vld [vmem:[#allocation3 + $0x2] sm:$0xff]  ;;  %4674 = vmatmul.msk.f32.gmra.mxu2 %vm1105_vm1, %v1627_v30  ;;  %4565 = vmatmul.msk.f32.gmra.mxu0 %vm463_vm0, %v383_v28 }
  0xec   : > { %4703 = vmatmul.msk.f32.vlgmr.msrb.gmra.mxu3 %vm1105_vm1, %v1985_v31 }
  0xf0   : > { %v826_v32 = vpop.f32.mrf.mxu0 }
  0xf1   : > { %1117 = vst.msk [vmem:[#allocation2 + $0x58] sm:$0xff] %vm1105_vm1, %v826_v32  ;;  %v1102_v25 = vpop.f32.mrf.mxu3  ;;  %v4957_v32 = vld [vmem:[%s7661_s2] ss:$0 sm:$0xff] }
  0xf2   : > { %1209 = vst.msk [vmem:[#allocation2 + $0x338] sm:$0xff] %vm1105_vm1, %v1102_v25 }
  0xf3   : > { %4566 = vmatmul.msk.f32.gmra.mxu0 %vm463_vm0, %v384_v33 }
  0xf8   : > { %v829_v34 = vpop.f32.mrf.mxu0  ;;  %v1244_v52 = vld [vmem:[#allocation2 + $0x50] ss:$2 sm:$0xff]  ;;  %v1252_v53 = vld [vmem:[#allocation2 + $0x51] ss:$2 sm:$0xff] }
  0xf9   : > { %1118 = vst.msk [vmem:[#allocation2 + $0x60] sm:$0xff] %vm1105_vm1, %v829_v34  ;;  %v1258_v58 = vmax.f32 %v1244_v52, %v1252_v53  ;;  %v398_v53 = vld [vmem:[%s5155_s18 + $0x148] sm:$0xff] }
  0xfb   : > { %4567 = vmatmul.msk.f32.gmra.mxu0 %vm463_vm0, %v385_v35 }
 0x100   : > { %v832_v36 = vpop.f32.mrf.mxu0 }
 0x101   : > { %1119 = vst.msk [vmem:[#allocation2 + $0x68] sm:$0xff] %vm1105_vm1, %v832_v36 }
 0x103   : > { %4568 = vmatmul.msk.f32.gmra.mxu0 %vm463_vm0, %v386_v37  ;;  %v396_v37 = vld [vmem:[%s5155_s18 + $0x138] sm:$0xff] }
 0x108   : > { %v1246_v40 = vld [vmem:[#allocation2 + $0x60] ss:$2 sm:$0xff]  ;;  %v1254_v41 = vld [vmem:[#allocation2 + $0x61] ss:$2 sm:$0xff]  ;;  %v835_v42 = vpop.f32.mrf.mxu0 }
 0x109   : > { %v1259_v45 = vmax.f32 %v1246_v40, %v1254_v41  ;;  %1120 = vst.msk [vmem:[#allocation2 + $0x70] sm:$0xff] %vm1105_vm1, %v835_v42 }
 0x10b   : > { %v1261_v47 = vmax.f32 %v1257_v44, %v1259_v45  ;;  %4569 = vmatmul.msk.f32.gmra.mxu0 %vm463_vm0, %v387_v43  ;;  %v397_v43 = vld [vmem:[%s5155_s18 + $0x140] sm:$0xff] }
 0x10d   : > { %v1267_v48 = vadd.f32 %v4956_v46, %v1261_v47 }
 0x10f   : > { %v1269_v49 = vmax.f32 %v1267_v48, 0.0 }
 0x110   : > { %v838_v50 = vpop.f32.mrf.mxu0 }
 0x111   : > { %1121 = vst.msk [vmem:[#allocation2 + $0x78] sm:$0xff] %vm1105_vm1, %v838_v50 }
 0x112   : > { %1271 = vst.msk [vmem:[#allocation3 + $0x10] sm:$0xff] %vm1105_vm1, %v1269_v49 }
 0x113   : > { %4570 = vmatmul.msk.f32.gmra.mxu0 %vm463_vm0, %v388_v51 }
 0x118   : > { %v1248_v54 = vld [vmem:[#allocation2 + $0x70] ss:$2 sm:$0xff]  ;;  %v1256_v55 = vld [vmem:[#allocation2 + $0x71] ss:$2 sm:$0xff]  ;;  %v841_v56 = vpop.f32.mrf.mxu0 }
 0x119   : > { %v1260_v59 = vmax.f32 %v1248_v54, %v1256_v55  ;;  %1122 = vst.msk [vmem:[#allocation2 + $0x80] sm:$0xff] %vm1105_vm1, %v841_v56  ;;  %v1657_v60 = vld [vmem:[#allocation3 + $0x9] sm:$0xff] }
 0x11a   : > { %v1628_v61 = vld [vmem:[#allocation3 + $0x10] sm:$0xff]  ;;  %4652 = vmatmul.msk.f32.gmra.mxu1 %vm1105_vm1, %v1657_v60  ;;  %v400_v60 = vld [vmem:[%s5155_s18 + $0x158] sm:$0xff] }
 0x11b   : > { %v1986_v62 = vld [vmem:[#allocation3 + $0xa] sm:$0xff]  ;;  %4675 = vmatmul.msk.f32.gmra.mxu2 %vm1105_vm1, %v1628_v61  ;;  %v1262_v63 = vmax.f32 %v1258_v58, %v1260_v59  ;;  %4571 = vmatmul.msk.f32.gmra.mxu0 %vm463_vm0, %v389_v57 }
 0x11c   : > { %4704 = vmatmul.msk.f32.gmra.mxu3 %vm1105_vm1, %v1986_v62  ;;  %v399_v55 = vld [vmem:[%s5155_s18 + $0x150] sm:$0xff]  ;;  %v401_v62 = vld [vmem:[%s5155_s18 + $0x160] sm:$0xff] }
 0x11d   : > { %v1268_v1 = vadd.f32 %v4956_v46, %v1262_v63 }
 0x11f   : > { %v1270_v2 = vmax.f32 %v1268_v1, 0.0 }
 0x120   : > { %v844_v3 = vpop.f32.mrf.mxu0 }
 0x121   : > { %1123 = vst.msk [vmem:[#allocation2 + $0x88] sm:$0xff] %vm1105_vm1, %v844_v3 }
 0x122   : > { %1272 = vst.msk [vmem:[#allocation3 + $0x18] sm:$0xff] %vm1105_vm1, %v1270_v2 }
 0x123   : > { %4572 = vmatmul.msk.f32.gmra.mxu0 %vm463_vm0, %v390_v4 }
 0x128   : > { %v847_v6 = vpop.f32.mrf.mxu0  ;;  %v1274_v23 = vld [vmem:[#allocation2 + $0x80] ss:$2 sm:$0xff]  ;;  %v1282_v24 = vld [vmem:[#allocation2 + $0x81] ss:$2 sm:$0xff] }
 0x129   : > { %1124 = vst.msk [vmem:[#allocation2 + $0x90] sm:$0xff] %vm1105_vm1, %v847_v6  ;;  %v1658_v8 = vld [vmem:[#allocation3 + $0x11] sm:$0xff]  ;;  %v1289_v30 = vmax.f32 %v1274_v23, %v1282_v24 }
 0x12a   : > { %v1629_v9 = vld [vmem:[#allocation3 + $0x18] sm:$0xff]  ;;  %4653 = vmatmul.msk.f32.gmra.mxu1 %vm1105_vm1, %v1658_v8  ;;  %v403_v6 = vld [vmem:[%s5155_s18 + $0x170] sm:$0xff] }
 0x12b   : > { %v1987_v10 = vld [vmem:[#allocation3 + $0x12] sm:$0xff]  ;;  %4676 = vmatmul.msk.f32.gmra.mxu2 %vm1105_vm1, %v1629_v9  ;;  %4573 = vmatmul.msk.f32.gmra.mxu0 %vm463_vm0, %v391_v7  ;;  %v4958_v9 = vld [vmem:[%s7661_s2] ss:$0 sm:$0xff] }
 0x12c   : > { %4705 = vmatmul.msk.f32.gmra.mxu3 %vm1105_vm1, %v1987_v10 }
 0x130   : > { %v850_v13 = vpop.f32.mrf.mxu0 }
 0x131   : > { %1125 = vst.msk [vmem:[#allocation2 + $0x98] sm:$0xff] %vm1105_vm1, %v850_v13 }
 0x133   : > { %4574 = vmatmul.msk.f32.gmra.mxu0 %vm463_vm0, %v392_v14  ;;  %v404_v14 = vld [vmem:[%s5155_s18 + $0x178] sm:$0xff] }
 0x138   : > { %v853_v16 = vpop.f32.mrf.mxu0  ;;  %v1276_v38 = vld [vmem:[#allocation2 + $0x90] ss:$2 sm:$0xff]  ;;  %v1284_v39 = vld [vmem:[#allocation2 + $0x91] ss:$2 sm:$0xff] }
 0x139   : > { %1126 = vst.msk [vmem:[#allocation2 + $0xa0] sm:$0xff] %vm1105_vm1, %v853_v16  ;;  %v1290_v44 = vmax.f32 %v1276_v38, %v1284_v39  ;;  %v409_v39 = vld [vmem:[%s5155_s18 + $0x1a0] sm:$0xff] }
 0x13b   : > { %4575 = vmatmul.msk.f32.gmra.mxu0 %vm463_vm0, %v393_v17 }
 0x140   : > { %v856_v20 = vpop.f32.mrf.mxu0 }
 0x141   : > { %1127 = vst.msk [vmem:[#allocation2 + $0xa8] sm:$0xff] %vm1105_vm1, %v856_v20  ;;  %v405_v20 = vld [vmem:[%s5155_s18 + $0x180] sm:$0xff] }
 0x143   : > { %4576 = vmatmul.msk.f32.gmra.mxu0 %vm463_vm0, %v394_v21 }
 0x148   : > { %v1278_v26 = vld [vmem:[#allocation2 + $0xa0] ss:$2 sm:$0xff]  ;;  %v1286_v27 = vld [vmem:[#allocation2 + $0xa1] ss:$2 sm:$0xff]  ;;  %v859_v28 = vpop.f32.mrf.mxu0 }
 0x149   : > { %v1291_v31 = vmax.f32 %v1278_v26, %v1286_v27  ;;  %1128 = vst.msk [vmem:[#allocation2 + $0xb0] sm:$0xff] %vm1105_vm1, %v859_v28 }
 0x14b   : > { %v1293_v33 = vmax.f32 %v1289_v30, %v1291_v31  ;;  %4577 = vmatmul.msk.f32.gmra.mxu0 %vm463_vm0, %v395_v29  ;;  %v406_v30 = vld [vmem:[%s5155_s18 + $0x188] sm:$0xff] }
 0x14d   : > { %v1299_v34 = vadd.f32 %v4957_v32, %v1293_v33 }
 0x14f   : > { %v1301_v35 = vmax.f32 %v1299_v34, 0.0 }
 0x150   : > { %v862_v36 = vpop.f32.mrf.mxu0 }
 0x151   : > { %1129 = vst.msk [vmem:[#allocation2 + $0xb8] sm:$0xff] %vm1105_vm1, %v862_v36 }
 0x152   : > { %1303 = vst.msk [vmem:[#allocation3 + $0x20] sm:$0xff] %vm1105_vm1, %v1301_v35 }
 0x153   : > { %4578 = vmatmul.msk.f32.gmra.mxu0 %vm463_vm0, %v396_v37  ;;  %v408_v37 = vld [vmem:[%s5155_s18 + $0x198] sm:$0xff] }
 0x158   : > { %v1280_v40 = vld [vmem:[#allocation2 + $0xb0] ss:$2 sm:$0xff]  ;;  %v1288_v41 = vld [vmem:[#allocation2 + $0xb1] ss:$2 sm:$0xff]  ;;  %v865_v42 = vpop.f32.mrf.mxu0 }
 0x159   : > { %v1292_v45 = vmax.f32 %v1280_v40, %v1288_v41  ;;  %1130 = vst.msk [vmem:[#allocation2 + $0xc0] sm:$0xff] %vm1105_vm1, %v865_v42  ;;  %v1659_v46 = vld [vmem:[#allocation3 + $0x19] sm:$0xff]  ;;  %v410_v41 = vld [vmem:[%s5155_s18 + $0x1a8] sm:$0xff] }
 0x15a   : > { %v1630_v47 = vld [vmem:[#allocation3 + $0x20] sm:$0xff]  ;;  %4654 = vmatmul.msk.f32.gmra.mxu1 %vm1105_vm1, %v1659_v46 }
 0x15b   : > { %v1988_v48 = vld [vmem:[#allocation3 + $0x1a] sm:$0xff]  ;;  %4677 = vmatmul.msk.f32.gmra.mxu2 %vm1105_vm1, %v1630_v47  ;;  %v1294_v49 = vmax.f32 %v1290_v44, %v1292_v45  ;;  %4579 = vmatmul.msk.f32.gmra.mxu0 %vm463_vm0, %v397_v43  ;;  %v411_v47 = vld [vmem:[%s5155_s18 + $0x1b0] sm:$0xff] }
 0x15c   : > { %4706 = vmatmul.msk.f32.gmra.mxu3 %vm1105_vm1, %v1988_v48 }
 0x15d   : > { %v1300_v50 = vadd.f32 %v4957_v32, %v1294_v49  ;;  %v407_v32 = vld [vmem:[%s5155_s18 + $0x190] sm:$0xff] }
 0x15f   : > { %v1302_v51 = vmax.f32 %v1300_v50, 0.0  ;;  %v4959_v50 = vld [vmem:[%s7661_s2] ss:$0 sm:$0xff] }
 0x160   : > { %v868_v52 = vpop.f32.mrf.mxu0 }
 0x161   : > { %1131 = vst.msk [vmem:[#allocation2 + $0xc8] sm:$0xff] %vm1105_vm1, %v868_v52 }
 0x162   : > { %1304 = vst.msk [vmem:[#allocation3 + $0x28] sm:$0xff] %vm1105_vm1, %v1302_v51 }
 0x163   : > { %4580 = vmatmul.msk.f32.gmra.mxu0 %vm463_vm0, %v398_v53 }
 0x168   : > { %v871_v54 = vpop.f32.mrf.mxu0  ;;  %v1306_v1 = vld [vmem:[#allocation2 + $0xc0] ss:$2 sm:$0xff]  ;;  %v1314_v2 = vld [vmem:[#allocation2 + $0xc1] ss:$2 sm:$0xff] }
 0x169   : > { %1132 = vst.msk [vmem:[#allocation2 + $0xd0] sm:$0xff] %vm1105_vm1, %v871_v54  ;;  %v1660_v56 = vld [vmem:[#allocation3 + $0x21] sm:$0xff]  ;;  %v1321_v7 = vmax.f32 %v1306_v1, %v1314_v2 }
 0x16a   : > { %v1631_v57 = vld [vmem:[#allocation3 + $0x28] sm:$0xff]  ;;  %4655 = vmatmul.msk.f32.gmra.mxu1 %vm1105_vm1, %v1660_v56 }
 0x16b   : > { %v1989_v58 = vld [vmem:[#allocation3 + $0x22] sm:$0xff]  ;;  %4678 = vmatmul.msk.f32.gmra.mxu2 %vm1105_vm1, %v1631_v57  ;;  %4581 = vmatmul.msk.f32.gmra.mxu0 %vm463_vm0, %v399_v55  ;;  %v412_v55 = vld [vmem:[%s5155_s18 + $0x1b8] sm:$0xff] }
 0x16c   : > { %4707 = vmatmul.msk.f32.gmra.mxu3 %vm1105_vm1, %v1989_v58 }
 0x170   : > { %v874_v59 = vpop.f32.mrf.mxu0 }
 0x171   : > { %1133 = vst.msk [vmem:[#allocation2 + $0xd8] sm:$0xff] %vm1105_vm1, %v874_v59 }
 0x173   : > { %4582 = vmatmul.msk.f32.gmra.mxu0 %vm463_vm0, %v400_v60 }
 0x178   : > { %v877_v61 = vpop.f32.mrf.mxu0  ;;  %v1308_v15 = vld [vmem:[#allocation2 + $0xd0] ss:$2 sm:$0xff]  ;;  %v1316_v16 = vld [vmem:[#allocation2 + $0xd1] ss:$2 sm:$0xff] }
 0x179   : > { %1134 = vst.msk [vmem:[#allocation2 + $0xe0] sm:$0xff] %vm1105_vm1, %v877_v61  ;;  %v1322_v21 = vmax.f32 %v1308_v15, %v1316_v16  ;;  %v413_v61 = vld [vmem:[%s5155_s18 + $0x1c0] sm:$0xff] }
 0x17a   : > { %v417_v16 = vld [vmem:[%s5155_s18 + $0x1e0] sm:$0xff] }
 0x17b   : > { %4583 = vmatmul.msk.f32.gmra.mxu0 %vm463_vm0, %v401_v62 }
 0x180   : > { %v880_v63 = vpop.f32.mrf.mxu0 }
 0x181   : > { %1135 = vst.msk [vmem:[#allocation2 + $0xe8] sm:$0xff] %vm1105_vm1, %v880_v63 }
 0x183   : > { %4584 = vmatmul.msk.f32.gmra.mxu0 %vm463_vm0, %v402_v0 }
 0x188   : > { %v1310_v3 = vld [vmem:[#allocation2 + $0xe0] ss:$2 sm:$0xff]  ;;  %v1318_v4 = vld [vmem:[#allocation2 + $0xe1] ss:$2 sm:$0xff]  ;;  %v883_v5 = vpop.f32.mrf.mxu0 }
 0x189   : > { %v1323_v8 = vmax.f32 %v1310_v3, %v1318_v4  ;;  %1136 = vst.msk [vmem:[#allocation2 + $0xf0] sm:$0xff] %vm1105_vm1, %v883_v5 }
 0x18b   : > { %v1325_v10 = vmax.f32 %v1321_v7, %v1323_v8  ;;  %4585 = vmatmul.msk.f32.gmra.mxu0 %vm463_vm0, %v403_v6  ;;  %v414_v7 = vld [vmem:[%s5155_s18 + $0x1c8] sm:$0xff] }
 0x18d   : > { %v1331_v11 = vadd.f32 %v4958_v9, %v1325_v10 }
 0x18f   : > { %v1333_v12 = vmax.f32 %v1331_v11, 0.0 }
 0x190   : > { %v886_v13 = vpop.f32.mrf.mxu0 }
 0x191   : > { %1137 = vst.msk [vmem:[#allocation2 + $0xf8] sm:$0xff] %vm1105_vm1, %v886_v13 }
 0x192   : > { %1335 = vst.msk [vmem:[#allocation3 + $0x30] sm:$0xff] %vm1105_vm1, %v1333_v12 }
 0x193   : > { %4586 = vmatmul.msk.f32.gmra.mxu0 %vm463_vm0, %v404_v14  ;;  %v416_v14 = vld [vmem:[%s5155_s18 + $0x1d8] sm:$0xff] }
 0x198   : > { %v1312_v17 = vld [vmem:[#allocation2 + $0xf0] ss:$2 sm:$0xff]  ;;  %v1320_v18 = vld [vmem:[#allocation2 + $0xf1] ss:$2 sm:$0xff]  ;;  %v889_v19 = vpop.f32.mrf.mxu0 }
 0x199   : > { %v1324_v22 = vmax.f32 %v1312_v17, %v1320_v18  ;;  %1138 = vst.msk [vmem:[#allocation2 + $0x100] sm:$0xff] %vm1105_vm1, %v889_v19  ;;  %v1661_v23 = vld [vmem:[#allocation3 + $0x29] sm:$0xff] }
 0x19a   : > { %v1632_v24 = vld [vmem:[#allocation3 + $0x30] sm:$0xff]  ;;  %4656 = vmatmul.msk.f32.gmra.mxu1 %vm1105_vm1, %v1661_v23  ;;  %v418_v18 = vld [vmem:[%s5155_s18 + $0x1e8] sm:$0xff] }
 0x19b   : > { %v1990_v25 = vld [vmem:[#allocation3 + $0x2a] sm:$0xff]  ;;  %4679 = vmatmul.msk.f32.gmra.mxu2 %vm1105_vm1, %v1632_v24  ;;  %v1326_v26 = vmax.f32 %v1322_v21, %v1324_v22  ;;  %4587 = vmatmul.msk.f32.gmra.mxu0 %vm463_vm0, %v405_v20 }
 0x19c   : > { %4708 = vmatmul.msk.f32.gmra.mxu3 %vm1105_vm1, %v1990_v25  ;;  %v419_v24 = vld [vmem:[%s5155_s18 + $0x1f0] sm:$0xff] }
 0x19d   : > { %v1332_v27 = vadd.f32 %v4958_v9, %v1326_v26  ;;  %v415_v9 = vld [vmem:[%s5155_s18 + $0x1d0] sm:$0xff] }
 0x19f   : > { %v1334_v28 = vmax.f32 %v1332_v27, 0.0  ;;  %v4960_v27 = vld [vmem:[%s7661_s2] ss:$0 sm:$0xff] }
 0x1a0   : > { %v892_v29 = vpop.f32.mrf.mxu0 }
 0x1a1   : > { %1139 = vst.msk [vmem:[#allocation2 + $0x108] sm:$0xff] %vm1105_vm1, %v892_v29 }
 0x1a2   : > { %1336 = vst.msk [vmem:[#allocation3 + $0x38] sm:$0xff] %vm1105_vm1, %v1334_v28 }
 0x1a3   : > { %4588 = vmatmul.msk.f32.gmra.mxu0 %vm463_vm0, %v406_v30 }
 0x1a8   : > { %v895_v31 = vpop.f32.mrf.mxu0  ;;  %v1338_v42 = vld [vmem:[#allocation2 + $0x100] ss:$2 sm:$0xff]  ;;  %v1346_v43 = vld [vmem:[#allocation2 + $0x101] ss:$2 sm:$0xff] }
 0x1a9   : > { %1140 = vst.msk [vmem:[#allocation2 + $0x110] sm:$0xff] %vm1105_vm1, %v895_v31  ;;  %v1662_v33 = vld [vmem:[#allocation3 + $0x31] sm:$0xff]  ;;  %v1353_v48 = vmax.f32 %v1338_v42, %v1346_v43 }
 0x1aa   : > { %v1633_v34 = vld [vmem:[#allocation3 + $0x38] sm:$0xff]  ;;  %4657 = vmatmul.msk.f32.gmra.mxu1 %vm1105_vm1, %v1662_v33 }
 0x1ab   : > { %v1991_v35 = vld [vmem:[#allocation3 + $0x32] sm:$0xff]  ;;  %4680 = vmatmul.msk.f32.gmra.mxu2 %vm1105_vm1, %v1633_v34  ;;  %4589 = vmatmul.msk.f32.gmra.mxu0 %vm463_vm0, %v407_v32 }
 0x1ac   : > { %4709 = vmatmul.msk.f32.gmra.mxu3 %vm1105_vm1, %v1991_v35  ;;  %v420_v32 = vld [vmem:[%s5155_s18 + $0x1f8] sm:$0xff] }
 0x1b0   : > { %v898_v36 = vpop.f32.mrf.mxu0 }
 0x1b1   : > { %1141 = vst.msk [vmem:[#allocation2 + $0x118] sm:$0xff] %vm1105_vm1, %v898_v36 }
 0x1b3   : > { %4590 = vmatmul.msk.f32.gmra.mxu0 %vm463_vm0, %v408_v37 }
 0x1b8   : > { %v901_v38 = vpop.f32.mrf.mxu0  ;;  %v1340_v56 = vld [vmem:[#allocation2 + $0x110] ss:$2 sm:$0xff]  ;;  %v1348_v57 = vld [vmem:[#allocation2 + $0x111] ss:$2 sm:$0xff] }
 0x1b9   : > { %1142 = vst.msk [vmem:[#allocation2 + $0x120] sm:$0xff] %vm1105_vm1, %v901_v38  ;;  %v1354_v62 = vmax.f32 %v1340_v56, %v1348_v57  ;;  %v421_v38 = vld [vmem:[%s5155_s18 + $0x200] sm:$0xff] }
 0x1ba   : > { %v425_v57 = vld [vmem:[%s5155_s18 + $0x220] sm:$0xff] }
 0x1bb   : > { %4591 = vmatmul.msk.f32.gmra.mxu0 %vm463_vm0, %v409_v39 }
 0x1c0   : > { %v904_v40 = vpop.f32.mrf.mxu0 }
 0x1c1   : > { %1143 = vst.msk [vmem:[#allocation2 + $0x128] sm:$0xff] %vm1105_vm1, %v904_v40 }
 0x1c3   : > { %4592 = vmatmul.msk.f32.gmra.mxu0 %vm463_vm0, %v410_v41 }
 0x1c8   : > { %v1342_v44 = vld [vmem:[#allocation2 + $0x120] ss:$2 sm:$0xff]  ;;  %v1350_v45 = vld [vmem:[#allocation2 + $0x121] ss:$2 sm:$0xff]  ;;  %v907_v46 = vpop.f32.mrf.mxu0 }
 0x1c9   : > { %v1355_v49 = vmax.f32 %v1342_v44, %v1350_v45  ;;  %1144 = vst.msk [vmem:[#allocation2 + $0x130] sm:$0xff] %vm1105_vm1, %v907_v46 }
 0x1cb   : > { %v1357_v51 = vmax.f32 %v1353_v48, %v1355_v49  ;;  %4593 = vmatmul.msk.f32.gmra.mxu0 %vm463_vm0, %v411_v47  ;;  %v422_v48 = vld [vmem:[%s5155_s18 + $0x208] sm:$0xff] }
 0x1cd   : > { %v1363_v52 = vadd.f32 %v4959_v50, %v1357_v51 }
 0x1cf   : > { %v1365_v53 = vmax.f32 %v1363_v52, 0.0 }
 0x1d0   : > { %v910_v54 = vpop.f32.mrf.mxu0 }
 0x1d1   : > { %1145 = vst.msk [vmem:[#allocation2 + $0x138] sm:$0xff] %vm1105_vm1, %v910_v54 }
 0x1d2   : > { %1367 = vst.msk [vmem:[#allocation3 + $0x40] sm:$0xff] %vm1105_vm1, %v1365_v53 }
 0x1d3   : > { %4594 = vmatmul.msk.f32.gmra.mxu0 %vm463_vm0, %v412_v55  ;;  %v424_v55 = vld [vmem:[%s5155_s18 + $0x218] sm:$0xff] }
 0x1d8   : > { %v1344_v58 = vld [vmem:[#allocation2 + $0x130] ss:$2 sm:$0xff]  ;;  %v1352_v59 = vld [vmem:[#allocation2 + $0x131] ss:$2 sm:$0xff]  ;;  %v913_v60 = vpop.f32.mrf.mxu0 }
 0x1d9   : > { %v1356_v63 = vmax.f32 %v1344_v58, %v1352_v59  ;;  %1146 = vst.msk [vmem:[#allocation2 + $0x140] sm:$0xff] %vm1105_vm1, %v913_v60  ;;  %v1663_v0 = vld [vmem:[#allocation3 + $0x39] sm:$0xff]  ;;  %v426_v59 = vld [vmem:[%s5155_s18 + $0x228] sm:$0xff] }
 0x1da   : > { %v1634_v1 = vld [vmem:[#allocation3 + $0x40] sm:$0xff]  ;;  %4658 = vmatmul.msk.f32.gmra.mxu1 %vm1105_vm1, %v1663_v0 }
 0x1db   : > { %v1992_v2 = vld [vmem:[#allocation3 + $0x3a] sm:$0xff]  ;;  %4681 = vmatmul.msk.f32.gmra.mxu2 %vm1105_vm1, %v1634_v1  ;;  %v1358_v3 = vmax.f32 %v1354_v62, %v1356_v63  ;;  %4595 = vmatmul.msk.f32.gmra.mxu0 %vm463_vm0, %v413_v61  ;;  %v427_v1 = vld [vmem:[%s5155_s18 + $0x230] sm:$0xff] }
 0x1dc   : > { %4710 = vmatmul.msk.f32.gmra.mxu3 %vm1105_vm1, %v1992_v2 }
 0x1dd   : > { %v1364_v4 = vadd.f32 %v4959_v50, %v1358_v3  ;;  %v423_v50 = vld [vmem:[%s5155_s18 + $0x210] sm:$0xff] }
 0x1df   : > { %v1366_v5 = vmax.f32 %v1364_v4, 0.0  ;;  %v4961_v4 = vld [vmem:[%s7661_s2] ss:$0 sm:$0xff] }
 0x1e0   : > { %v916_v6 = vpop.f32.mrf.mxu0 }
 0x1e1   : > { %1147 = vst.msk [vmem:[#allocation2 + $0x148] sm:$0xff] %vm1105_vm1, %v916_v6 }
 0x1e2   : > { %1368 = vst.msk [vmem:[#allocation3 + $0x48] sm:$0xff] %vm1105_vm1, %v1366_v5 }
 0x1e3   : > { %4596 = vmatmul.msk.f32.gmra.mxu0 %vm463_vm0, %v414_v7 }
 0x1e8   : > { %v919_v8 = vpop.f32.mrf.mxu0  ;;  %v1370_v19 = vld [vmem:[#allocation2 + $0x140] ss:$2 sm:$0xff]  ;;  %v1378_v20 = vld [vmem:[#allocation2 + $0x141] ss:$2 sm:$0xff] }
 0x1e9   : > { %1148 = vst.msk [vmem:[#allocation2 + $0x150] sm:$0xff] %vm1105_vm1, %v919_v8  ;;  %v1664_v10 = vld [vmem:[#allocation3 + $0x41] sm:$0xff]  ;;  %v1385_v25 = vmax.f32 %v1370_v19, %v1378_v20 }
 0x1ea   : > { %v1635_v11 = vld [vmem:[#allocation3 + $0x48] sm:$0xff]  ;;  %4659 = vmatmul.msk.f32.gmra.mxu1 %vm1105_vm1, %v1664_v10 }
 0x1eb   : > { %v1993_v12 = vld [vmem:[#allocation3 + $0x42] sm:$0xff]  ;;  %4682 = vmatmul.msk.f32.gmra.mxu2 %vm1105_vm1, %v1635_v11  ;;  %4597 = vmatmul.msk.f32.gmra.mxu0 %vm463_vm0, %v415_v9  ;;  %v428_v9 = vld [vmem:[%s5155_s18 + $0x238] sm:$0xff] }
 0x1ec   : > { %4711 = vmatmul.msk.f32.gmra.mxu3 %vm1105_vm1, %v1993_v12 }
 0x1f0   : > { %v922_v13 = vpop.f32.mrf.mxu0 }
 0x1f1   : > { %1149 = vst.msk [vmem:[#allocation2 + $0x158] sm:$0xff] %vm1105_vm1, %v922_v13 }
 0x1f3   : > { %4598 = vmatmul.msk.f32.gmra.mxu0 %vm463_vm0, %v416_v14 }
 0x1f8   : > { %v925_v15 = vpop.f32.mrf.mxu0  ;;  %v1372_v33 = vld [vmem:[#allocation2 + $0x150] ss:$2 sm:$0xff]  ;;  %v1380_v34 = vld [vmem:[#allocation2 + $0x151] ss:$2 sm:$0xff] }
 0x1f9   : > { %1150 = vst.msk [vmem:[#allocation2 + $0x160] sm:$0xff] %vm1105_vm1, %v925_v15  ;;  %v1386_v39 = vmax.f32 %v1372_v33, %v1380_v34  ;;  %v429_v15 = vld [vmem:[%s5155_s18 + $0x240] sm:$0xff] }
 0x1fa   : > { %v433_v34 = vld [vmem:[%s5155_s18 + $0x260] sm:$0xff] }
 0x1fb   : > { %4599 = vmatmul.msk.f32.gmra.mxu0 %vm463_vm0, %v417_v16 }
 0x200   : > { %v928_v17 = vpop.f32.mrf.mxu0 }
 0x201   : > { %1151 = vst.msk [vmem:[#allocation2 + $0x168] sm:$0xff] %vm1105_vm1, %v928_v17 }
 0x203   : > { %4600 = vmatmul.msk.f32.gmra.mxu0 %vm463_vm0, %v418_v18 }
 0x208   : > { %v1374_v21 = vld [vmem:[#allocation2 + $0x160] ss:$2 sm:$0xff]  ;;  %v1382_v22 = vld [vmem:[#allocation2 + $0x161] ss:$2 sm:$0xff]  ;;  %v931_v23 = vpop.f32.mrf.mxu0 }
 0x209   : > { %v1387_v26 = vmax.f32 %v1374_v21, %v1382_v22  ;;  %1152 = vst.msk [vmem:[#allocation2 + $0x170] sm:$0xff] %vm1105_vm1, %v931_v23 }
 0x20b   : > { %v1389_v28 = vmax.f32 %v1385_v25, %v1387_v26  ;;  %4601 = vmatmul.msk.f32.gmra.mxu0 %vm463_vm0, %v419_v24  ;;  %v430_v25 = vld [vmem:[%s5155_s18 + $0x248] sm:$0xff] }
 0x20d   : > { %v1395_v29 = vadd.f32 %v4960_v27, %v1389_v28 }
 0x20f   : > { %v1397_v30 = vmax.f32 %v1395_v29, 0.0 }
 0x210   : > { %v934_v31 = vpop.f32.mrf.mxu0 }
 0x211   : > { %1153 = vst.msk [vmem:[#allocation2 + $0x178] sm:$0xff] %vm1105_vm1, %v934_v31 }
 0x212   : > { %1399 = vst.msk [vmem:[#allocation3 + $0x50] sm:$0xff] %vm1105_vm1, %v1397_v30 }
 0x213   : > { %4602 = vmatmul.msk.f32.gmra.mxu0 %vm463_vm0, %v420_v32  ;;  %v432_v32 = vld [vmem:[%s5155_s18 + $0x258] sm:$0xff] }
 0x218   : > { %v1376_v35 = vld [vmem:[#allocation2 + $0x170] ss:$2 sm:$0xff]  ;;  %v1384_v36 = vld [vmem:[#allocation2 + $0x171] ss:$2 sm:$0xff]  ;;  %v937_v37 = vpop.f32.mrf.mxu0 }
 0x219   : > { %v1388_v40 = vmax.f32 %v1376_v35, %v1384_v36  ;;  %1154 = vst.msk [vmem:[#allocation2 + $0x180] sm:$0xff] %vm1105_vm1, %v937_v37  ;;  %v5491_v41 = vld [vmem:[#allocation3 + $0x49] sm:$0xff] }
 0x21a   : > { %v1636_v42 = vld [vmem:[#allocation3 + $0x50] sm:$0xff]  ;;  %4660 = vmatmul.msk.f32.gmra.mxu1 %vm1105_vm1, %v5491_v41  ;;  %v434_v36 = vld [vmem:[%s5155_s18 + $0x268] sm:$0xff] }
 0x21b   : > { %v1994_v43 = vld [vmem:[#allocation3 + $0x4a] sm:$0xff]  ;;  %4683 = vmatmul.msk.f32.gmra.mxu2 %vm1105_vm1, %v1636_v42  ;;  %v1390_v44 = vmax.f32 %v1386_v39, %v1388_v40  ;;  %4603 = vmatmul.msk.f32.gmra.mxu0 %vm463_vm0, %v421_v38 }
 0x21c   : > { %4712 = vmatmul.msk.f32.gmra.mxu3 %vm1105_vm1, %v1994_v43  ;;  %v435_v43 = vld [vmem:[%s5155_s18 + $0x270] sm:$0xff] }
 0x21d   : > { %v1396_v45 = vadd.f32 %v4960_v27, %v1390_v44  ;;  %v431_v27 = vld [vmem:[%s5155_s18 + $0x250] sm:$0xff] }
 0x21f   : > { %v1398_v46 = vmax.f32 %v1396_v45, 0.0 }
 0x220   : > { %v940_v47 = vpop.f32.mrf.mxu0 }
 0x221   : > { %1155 = vst.msk [vmem:[#allocation2 + $0x188] sm:$0xff] %vm1105_vm1, %v940_v47 }
 0x222   : > { %1400 = vst.msk [vmem:[#allocation3 + $0x58] sm:$0xff] %vm1105_vm1, %v1398_v46  ;;  %v4962_v46 = vld [vmem:[%s7661_s2] ss:$0 sm:$0xff] }
 0x223   : > { %4604 = vmatmul.msk.f32.gmra.mxu0 %vm463_vm0, %v422_v48 }
 0x228   : > { %v943_v49 = vpop.f32.mrf.mxu0  ;;  %v1402_v60 = vld [vmem:[#allocation2 + $0x180] ss:$2 sm:$0xff]  ;;  %v1410_v61 = vld [vmem:[#allocation2 + $0x181] ss:$2 sm:$0xff] }
 0x229   : > { %1156 = vst.msk [vmem:[#allocation2 + $0x190] sm:$0xff] %vm1105_vm1, %v943_v49  ;;  %v5504_v51 = vld [vmem:[#allocation3 + $0x51] sm:$0xff]  ;;  %v1417_v2 = vmax.f32 %v1402_v60, %v1410_v61 }
 0x22a   : > { %v1637_v52 = vld [vmem:[#allocation3 + $0x58] sm:$0xff]  ;;  %4661 = vmatmul.msk.f32.gmra.mxu1 %vm1105_vm1, %v5504_v51 }
 0x22b   : > { %v1995_v53 = vld [vmem:[#allocation3 + $0x52] sm:$0xff]  ;;  %4684 = vmatmul.msk.f32.gmra.mxu2 %vm1105_vm1, %v1637_v52  ;;  %4605 = vmatmul.msk.f32.gmra.mxu0 %vm463_vm0, %v423_v50 }
 0x22c   : > { %4713 = vmatmul.msk.f32.gmra.mxu3 %vm1105_vm1, %v1995_v53  ;;  %v436_v52 = vld [vmem:[%s5155_s18 + $0x278] sm:$0xff] }
 0x230   : > { %v946_v54 = vpop.f32.mrf.mxu0 }
 0x231   : > { %1157 = vst.msk [vmem:[#allocation2 + $0x198] sm:$0xff] %vm1105_vm1, %v946_v54 }
 0x233   : > { %4606 = vmatmul.msk.f32.gmra.mxu0 %vm463_vm0, %v424_v55 }
 0x238   : > { %v949_v56 = vpop.f32.mrf.mxu0  ;;  %v1404_v10 = vld [vmem:[#allocation2 + $0x190] ss:$2 sm:$0xff]  ;;  %v1412_v11 = vld [vmem:[#allocation2 + $0x191] ss:$2 sm:$0xff] }
 0x239   : > { %1158 = vst.msk [vmem:[#allocation2 + $0x1a0] sm:$0xff] %vm1105_vm1, %v949_v56  ;;  %v1418_v16 = vmax.f32 %v1404_v10, %v1412_v11  ;;  %v440_v11 = vld [vmem:[%s5155_s18 + $0x298] sm:$0xff] }
 0x23b   : > { %4607 = vmatmul.msk.f32.gmra.mxu0 %vm463_vm0, %v425_v57 }
 0x240   : > { %v952_v58 = vpop.f32.mrf.mxu0 }
 0x241   : > { %1159 = vst.msk [vmem:[#allocation2 + $0x1a8] sm:$0xff] %vm1105_vm1, %v952_v58  ;;  %v437_v58 = vld [vmem:[%s5155_s18 + $0x280] sm:$0xff] }
 0x243   : > { %4608 = vmatmul.msk.f32.gmra.mxu0 %vm463_vm0, %v426_v59 }
 0x248   : > { %v1406_v62 = vld [vmem:[#allocation2 + $0x1a0] ss:$2 sm:$0xff]  ;;  %v1414_v63 = vld [vmem:[#allocation2 + $0x1a1] ss:$2 sm:$0xff]  ;;  %v955_v0 = vpop.f32.mrf.mxu0 }
 0x249   : > { %v1419_v3 = vmax.f32 %v1406_v62, %v1414_v63  ;;  %1160 = vst.msk [vmem:[#allocation2 + $0x1b0] sm:$0xff] %vm1105_vm1, %v955_v0 }
 0x24b   : > { %v1421_v5 = vmax.f32 %v1417_v2, %v1419_v3  ;;  %4609 = vmatmul.msk.f32.gmra.mxu0 %vm463_vm0, %v427_v1 }
 0x24d   : > { %v1427_v6 = vadd.f32 %v4961_v4, %v1421_v5 }
 0x24f   : > { %v1429_v7 = vmax.f32 %v1427_v6, 0.0  ;;  %v439_v6 = vld [vmem:[%s5155_s18 + $0x290] sm:$0xff] }
 0x250   : > { %v958_v8 = vpop.f32.mrf.mxu0 }
 0x251   : > { %1161 = vst.msk [vmem:[#allocation2 + $0x1b8] sm:$0xff] %vm1105_vm1, %v958_v8 }
 0x252   : > { %1431 = vst.msk [vmem:[#allocation3 + $0x60] sm:$0xff] %vm1105_vm1, %v1429_v7 }
 0x253   : > { %4610 = vmatmul.msk.f32.gmra.mxu0 %vm463_vm0, %v428_v9 }
 0x258   : > { %v1408_v12 = vld [vmem:[#allocation2 + $0x1b0] ss:$2 sm:$0xff]  ;;  %v1416_v13 = vld [vmem:[#allocation2 + $0x1b1] ss:$2 sm:$0xff]  ;;  %v961_v14 = vpop.f32.mrf.mxu0 }
 0x259   : > { %v1420_v17 = vmax.f32 %v1408_v12, %v1416_v13  ;;  %1162 = vst.msk [vmem:[#allocation2 + $0x1c0] sm:$0xff] %vm1105_vm1, %v961_v14  ;;  %v5532_v18 = vld [vmem:[#allocation3 + $0x59] sm:$0xff] }
 0x25a   : > { %v1638_v19 = vld [vmem:[#allocation3 + $0x60] sm:$0xff]  ;;  %4662 = vmatmul.msk.f32.gmra.mxu1 %vm1105_vm1, %v5532_v18 }
 0x25b   : > { %v5534_v20 = vld [vmem:[#allocation3 + $0x5a] sm:$0xff]  ;;  %4685 = vmatmul.msk.f32.gmra.mxu2 %vm1105_vm1, %v1638_v19  ;;  %v1422_v21 = vmax.f32 %v1418_v16, %v1420_v17  ;;  %4611 = vmatmul.msk.f32.gmra.mxu0 %vm463_vm0, %v429_v15  ;;  %v442_v15 = vld [vmem:[%s5155_s18 + $0x2a8] sm:$0xff] }
 0x25c   : > { %4714 = vmatmul.msk.f32.gmra.mxu3 %vm1105_vm1, %v5534_v20  ;;  %v441_v13 = vld [vmem:[%s5155_s18 + $0x2a0] sm:$0xff] }
 0x25d   : > { %v1428_v22 = vadd.f32 %v4961_v4, %v1422_v21  ;;  %v438_v4 = vld [vmem:[%s5155_s18 + $0x288] sm:$0xff] }
 0x25f   : > { %v1430_v23 = vmax.f32 %v1428_v22, 0.0 }
 0x260   : > { %v964_v24 = vpop.f32.mrf.mxu0 }
 0x261   : > { %1163 = vst.msk [vmem:[#allocation2 + $0x1c8] sm:$0xff] %vm1105_vm1, %v964_v24 }
 0x262   : > { %1432 = vst.msk [vmem:[#allocation3 + $0x68] sm:$0xff] %vm1105_vm1, %v1430_v23  ;;  %v443_v23 = vld [vmem:[%s5155_s18 + $0x2b0] sm:$0xff] }
 0x263   : > { %4612 = vmatmul.msk.f32.gmra.mxu0 %vm463_vm0, %v430_v25 }
 0x268   : > { %v967_v26 = vpop.f32.mrf.mxu0  ;;  %v1434_v37 = vld [vmem:[#allocation2 + $0x1c0] ss:$2 sm:$0xff]  ;;  %v1442_v38 = vld [vmem:[#allocation2 + $0x1c1] ss:$2 sm:$0xff] }
 0x269   : > { %1164 = vst.msk [vmem:[#allocation2 + $0x1d0] sm:$0xff] %vm1105_vm1, %v967_v26  ;;  %v5548_v28 = vld [vmem:[#allocation3 + $0x61] sm:$0xff]  ;;  %v1449_v44 = vmax.f32 %v1434_v37, %v1442_v38  ;;  %v4963_v26 = vld [vmem:[%s7661_s2] ss:$0 sm:$0xff] }
 0x26a   : > { %v5550_v29 = vld [vmem:[#allocation3 + $0x68] sm:$0xff]  ;;  %4663 = vmatmul.msk.f32.gmra.mxu1 %vm1105_vm1, %v5548_v28 }
 0x26b   : > { %v5552_v30 = vld [vmem:[#allocation3 + $0x62] sm:$0xff]  ;;  %4686 = vmatmul.msk.f32.gmra.mxu2 %vm1105_vm1, %v5550_v29  ;;  %4613 = vmatmul.msk.f32.gmra.mxu0 %vm463_vm0, %v431_v27 }
 0x26c   : > { %4715 = vmatmul.msk.f32.gmra.mxu3 %vm1105_vm1, %v5552_v30 }
 0x270   : > { %v970_v31 = vpop.f32.mrf.mxu0 }
 0x271   : > { %1165 = vst.msk [vmem:[#allocation2 + $0x1d8] sm:$0xff] %vm1105_vm1, %v970_v31 }
 0x273   : > { %4614 = vmatmul.msk.f32.gmra.mxu0 %vm463_vm0, %v432_v32 }
 0x278   : > { %v973_v33 = vpop.f32.mrf.mxu0  ;;  %v1436_v53 = vld [vmem:[#allocation2 + $0x1d0] ss:$2 sm:$0xff]  ;;  %v1444_v54 = vld [vmem:[#allocation2 + $0x1d1] ss:$2 sm:$0xff] }
 0x279   : > { %1166 = vst.msk [vmem:[#allocation2 + $0x1e0] sm:$0xff] %vm1105_vm1, %v973_v33  ;;  %v1450_v59 = vmax.f32 %v1436_v53, %v1444_v54  ;;  %v4762_v33 = vld [vmem:[%s7662_s3 + $0x138] sm:$0xff] }
 0x27a   : > { %2494 = vmatpush.msrb.mxu2 %v4762_v33 }
 0x27b   : > { %4615 = vmatmul.msk.f32.gmra.mxu0 %vm463_vm0, %v433_v34 }
 0x280   : > { %v976_v35 = vpop.f32.mrf.mxu0 }
 0x281   : > { %1167 = vst.msk [vmem:[#allocation2 + $0x1e8] sm:$0xff] %vm1105_vm1, %v976_v35  ;;  %v444_v35 = vld [vmem:[%s5155_s18 + $0x2b8] sm:$0xff] }
 0x283   : > { %4616 = vmatmul.msk.f32.gmra.mxu0 %vm463_vm0, %v434_v36 }
 0x288   : > { %v1438_v39 = vld [vmem:[#allocation2 + $0x1e0] ss:$2 sm:$0xff]  ;;  %v1446_v40 = vld [vmem:[#allocation2 + $0x1e1] ss:$2 sm:$0xff]  ;;  %v979_v42 = vpop.f32.mrf.mxu0 }
 0x289   : > { %v1451_v45 = vmax.f32 %v1438_v39, %v1446_v40  ;;  %1168 = vst.msk [vmem:[#allocation2 + $0x1f0] sm:$0xff] %vm1105_vm1, %v979_v42  ;;  %v445_v42 = vld [vmem:[%s5155_s18 + $0x2c0] sm:$0xff] }
 0x28b   : > { %v1453_v47 = vmax.f32 %v1449_v44, %v1451_v45  ;;  %4617 = vmatmul.msk.f32.gmra.mxu0 %vm463_vm0, %v435_v43 }
 0x28d   : > { %v1459_v48 = vadd.f32 %v4962_v46, %v1453_v47 }
 0x28f   : > { %v1461_v49 = vmax.f32 %v1459_v48, 0.0  ;;  %v4792_v48 = vld [vmem:[%s7662_s3 + $0x178] sm:$0xff] }
 0x290   : > { %v982_v50 = vpop.f32.mrf.mxu0  ;;  %2696 = vmatpush.msra.mxu3 %v4792_v48  ;;  %v4789_v48 = vld [vmem:[%s7662_s3 + $0x160] sm:$0xff] }
 0x291   : > { %1169 = vst.msk [vmem:[#allocation2 + $0x1f8] sm:$0xff] %vm1105_vm1, %v982_v50 }
 0x292   : > { %1463 = vst.msk [vmem:[#allocation3 + $0x70] sm:$0xff] %vm1105_vm1, %v1461_v49  ;;  %v4732_v49 = vld [vmem:[%s7662_s3 + $0xf8] sm:$0xff] }
 0x293   : > { %4618 = vmatmul.msk.f32.gmra.mxu0 %vm463_vm0, %v436_v52  ;;  %2292 = vmatpush.msra.mxu1 %v4732_v49  ;;  %v4729_v49 = vld [vmem:[%s7662_s3 + $0xe0] sm:$0xff] }
 0x298   : > { %v1440_v55 = vld [vmem:[#allocation2 + $0x1f0] ss:$2 sm:$0xff]  ;;  %v1448_v56 = vld [vmem:[#allocation2 + $0x1f1] ss:$2 sm:$0xff]  ;;  %v985_v57 = vpop.f32.mrf.mxu0 }
 0x299   : > { %v1452_v60 = vmax.f32 %v1440_v55, %v1448_v56  ;;  %1170 = vst.msk [vmem:[#allocation2 + $0x200] sm:$0xff] %vm1105_vm1, %v985_v57  ;;  %v5582_v61 = vld [vmem:[#allocation3 + $0x69] sm:$0xff] }
 0x29a   : > { %v5584_v62 = vld [vmem:[#allocation3 + $0x70] sm:$0xff]  ;;  %4664 = vmatmul.msk.f32.gmra.mxu1 %vm1105_vm1, %v5582_v61  ;;  %v446_v55 = vld [vmem:[%s5155_s18 + $0x2c8] sm:$0xff] }
 0x29b   : > { %v5586_v63 = vld [vmem:[#allocation3 + $0x6a] sm:$0xff]  ;;  %4687 = vmatmul.msk.f32.gmra.mxu2 %vm1105_vm1, %v5584_v62  ;;  %v1454_v0 = vmax.f32 %v1450_v59, %v1452_v60  ;;  %4619 = vmatmul.msk.f32.gmra.mxu0 %vm463_vm0, %v437_v58 }
 0x29c   : > { %4716 = vmatmul.msk.f32.gmra.mxu3 %vm1105_vm1, %v5586_v63  ;;  %v447_v57 = vld [vmem:[%s5155_s18 + $0x2d0] sm:$0xff] }
 0x29d   : > { %v1460_v1 = vadd.f32 %v4962_v46, %v1454_v0  ;;  %v4761_v0 = vld [vmem:[%s7662_s3 + $0x130] sm:$0xff] }
 0x29e   : > { %2495 = vmatpush.msrb.mxu2 %v4761_v0  ;;  %v1606_v0 = vld [vmem:[#allocation2 + $0x321] ss:$2 sm:$0xff] }
 0x29f   : > { %v1462_v2 = vmax.f32 %v1460_v1, 0.0  ;;  %v4791_v1 = vld [vmem:[%s7662_s3 + $0x170] sm:$0xff] }
 0x2a0   : > { %v988_v3 = vpop.f32.mrf.mxu0  ;;  %2697 = vmatpush.msra.mxu3 %v4791_v1  ;;  %v1594_v1 = vld [vmem:[#allocation2 + $0x300] ss:$2 sm:$0xff] }
 0x2a1   : > { %1171 = vst.msk [vmem:[#allocation2 + $0x208] sm:$0xff] %vm1105_vm1, %v988_v3 }
 0x2a2   : > { %1464 = vst.msk [vmem:[#allocation3 + $0x78] sm:$0xff] %vm1105_vm1, %v1462_v2  ;;  %v4731_v2 = vld [vmem:[%s7662_s3 + $0xf0] sm:$0xff] }
 0x2a3   : > { %4620 = vmatmul.msk.f32.gmra.mxu0 %vm463_vm0, %v438_v4  ;;  %2293 = vmatpush.msra.mxu1 %v4731_v2  ;;  %v448_v4 = vld [vmem:[%s5155_s18 + $0x2d8] sm:$0xff]  ;;  %v1602_v2 = vld [vmem:[#allocation2 + $0x301] ss:$2 sm:$0xff] }
 0x2a8   : > { %v991_v5 = vpop.f32.mrf.mxu0  ;;  %v1466_v16 = vld [vmem:[#allocation2 + $0x200] ss:$2 sm:$0xff]  ;;  %v1474_v17 = vld [vmem:[#allocation2 + $0x201] ss:$2 sm:$0xff] }
 0x2a9   : > { %1172 = vst.msk [vmem:[#allocation2 + $0x210] sm:$0xff] %vm1105_vm1, %v991_v5  ;;  %v5601_v7 = vld [vmem:[#allocation3 + $0x71] sm:$0xff]  ;;  %v1481_v24 = vmax.f32 %v1466_v16, %v1474_v17 }
 0x2aa   : > { %v5603_v8 = vld [vmem:[#allocation3 + $0x78] sm:$0xff]  ;;  %4665 = vmatmul.msk.f32.gmra.mxu1 %vm1105_vm1, %v5601_v7 }
 0x2ab   : > { %v5605_v9 = vld [vmem:[#allocation3 + $0x72] sm:$0xff]  ;;  %4688 = vmatmul.msk.f32.gmra.mxu2 %vm1105_vm1, %v5603_v8  ;;  %4621 = vmatmul.msk.f32.gmra.mxu0 %vm463_vm0, %v439_v6  ;;  %v449_v6 = vld [vmem:[%s5155_s18 + $0x2e0] sm:$0xff] }
 0x2ac   : > { %4717 = vmatmul.msk.f32.gmra.mxu3 %vm1105_vm1, %v5605_v9 }
 0x2b0   : > { %v994_v10 = vpop.f32.mrf.mxu0 }
 0x2b1   : > { %1173 = vst.msk [vmem:[#allocation2 + $0x218] sm:$0xff] %vm1105_vm1, %v994_v10  ;;  %v4760_v10 = vld [vmem:[%s7662_s3 + $0x128] sm:$0xff] }
 0x2b2   : > { %2496 = vmatpush.msrb.mxu2 %v4760_v10 }
 0x2b3   : > { %4622 = vmatmul.msk.f32.gmra.mxu0 %vm463_vm0, %v440_v11  ;;  %v4790_v11 = vld [vmem:[%s7662_s3 + $0x168] sm:$0xff] }
 0x2b4   : > { %2698 = vmatpush.msra.mxu3 %v4790_v11 }
 0x2b6   : > { %2699 = vmatpush.msra.mxu3 %v4789_v48 }
 0x2b8   : > { %v997_v12 = vpop.f32.mrf.mxu0  ;;  %v1468_v36 = vld [vmem:[#allocation2 + $0x210] ss:$2 sm:$0xff]  ;;  %v1476_v37 = vld [vmem:[#allocation2 + $0x211] ss:$2 sm:$0xff] }
 0x2b9   : > { %1174 = vst.msk [vmem:[#allocation2 + $0x220] sm:$0xff] %vm1105_vm1, %v997_v12  ;;  %v1482_v43 = vmax.f32 %v1468_v36, %v1476_v37  ;;  %v4730_v12 = vld [vmem:[%s7662_s3 + $0xe8] sm:$0xff] }
 0x2ba   : > { %2294 = vmatpush.msra.mxu1 %v4730_v12 }
 0x2bb   : > { %4623 = vmatmul.msk.f32.gmra.mxu0 %vm463_vm0, %v441_v13 }
 0x2bc   : > { %2295 = vmatpush.msra.mxu1 %v4729_v49 }
 0x2c0   : > { %v1000_v14 = vpop.f32.mrf.mxu0 }
 0x2c1   : > { %1175 = vst.msk [vmem:[#allocation2 + $0x228] sm:$0xff] %vm1105_vm1, %v1000_v14  ;;  %v450_v14 = vld [vmem:[%s5155_s18 + $0x2e8] sm:$0xff] }
 0x2c3   : > { %4624 = vmatmul.msk.f32.gmra.mxu0 %vm463_vm0, %v442_v15 }
 0x2c8   : > { %v1470_v19 = vld [vmem:[#allocation2 + $0x220] ss:$2 sm:$0xff]  ;;  %v1478_v21 = vld [vmem:[#allocation2 + $0x221] ss:$2 sm:$0xff]  ;;  %v1003_v22 = vpop.f32.mrf.mxu0 }
 0x2c9   : > { %v1483_v25 = vmax.f32 %v1470_v19, %v1478_v21  ;;  %1176 = vst.msk [vmem:[#allocation2 + $0x230] sm:$0xff] %vm1105_vm1, %v1003_v22  ;;  %v451_v22 = vld [vmem:[%s5155_s18 + $0x2f0] sm:$0xff]  ;;  %s351_s18 = scalar_lea.vmem [#allocation7], %s350_s20 }
 0x2ca   : > { %s4477_s29 = sshll.u32 %s351_s18, 4  ;;  %s4478_s29 = int_to_ptr.vmem [resolvable:$true] %s4477_s29 }
 0x2cb   : > { %v1485_v27 = vmax.f32 %v1481_v24, %v1483_v25  ;;  %4625 = vmatmul.msk.f32.gmra.mxu0 %vm463_vm0, %v443_v23  ;;  %v4964_v25 = vld [vmem:[%s7661_s2] ss:$0 sm:$0xff] }
 0x2cd   : > { %v1491_v31 = vadd.f32 %v4963_v26, %v1485_v27 }
 0x2cf   : > { %v1493_v32 = vmax.f32 %v1491_v31, 0.0 }
 0x2d0   : > { %v1006_v34 = vpop.f32.mrf.mxu0 }
 0x2d1   : > { %1177 = vst.msk [vmem:[#allocation2 + $0x238] sm:$0xff] %vm1105_vm1, %v1006_v34 }
 0x2d2   : > { %1495 = vst.msk [vmem:[#allocation3 + $0x80] sm:$0xff] %vm1105_vm1, %v1493_v32 }
 0x2d3   : > { %4626 = vmatmul.msk.f32.gmra.mxu0 %vm463_vm0, %v444_v35 }
 0x2d8   : > { %v1472_v38 = vld [vmem:[#allocation2 + $0x230] ss:$2 sm:$0xff]  ;;  %v1480_v39 = vld [vmem:[#allocation2 + $0x231] ss:$2 sm:$0xff]  ;;  %v1009_v40 = vpop.f32.mrf.mxu0 }
 0x2d9   : > { %v1484_v44 = vmax.f32 %v1472_v38, %v1480_v39  ;;  %1178 = vst.msk [vmem:[#allocation2 + $0x240] sm:$0xff] %vm1105_vm1, %v1009_v40  ;;  %v5638_v45 = vld [vmem:[#allocation3 + $0x79] sm:$0xff] }
 0x2da   : > { %v5640_v46 = vld [vmem:[#allocation3 + $0x80] sm:$0xff]  ;;  %4666 = vmatmul.msk.f32.gmra.mxu1 %vm1105_vm1, %v5638_v45 }
 0x2db   : > { %v5642_v47 = vld [vmem:[#allocation3 + $0x7a] sm:$0xff]  ;;  %4689 = vmatmul.msk.f32.gmra.mxu2 %vm1105_vm1, %v5640_v46  ;;  %v1486_v50 = vmax.f32 %v1482_v43, %v1484_v44  ;;  %4627 = vmatmul.msk.f32.gmra.mxu0 %vm463_vm0, %v445_v42 }
 0x2dc   : > { %4718 = vmatmul.msk.f32.gmra.mxu3 %vm1105_vm1, %v5642_v47  ;;  %v4759_v44 = vld [vmem:[%s7662_s3 + $0x120] sm:$0xff] }
 0x2dd   : > { %v1492_v52 = vadd.f32 %v4963_v26, %v1486_v50  ;;  %2497 = vmatpush.msrb.mxu2 %v4759_v44 }
 0x2df   : > { %v1494_v53 = vmax.f32 %v1492_v52, 0.0 }
 0x2e0   : > { %v1012_v54 = vpop.f32.mrf.mxu0 }
 0x2e1   : > { %1179 = vst.msk [vmem:[#allocation2 + $0x248] sm:$0xff] %vm1105_vm1, %v1012_v54 }
 0x2e2   : > { %1496 = vst.msk [vmem:[#allocation3 + $0x88] sm:$0xff] %vm1105_vm1, %v1494_v53 }
 0x2e3   : > { %4628 = vmatmul.msk.f32.gmra.mxu0 %vm463_vm0, %v446_v55  ;;  %v1596_v55 = vld [vmem:[#allocation2 + $0x310] ss:$2 sm:$0xff] }
 0x2e8   : > { %v1015_v56 = vpop.f32.mrf.mxu0  ;;  %v1498_v15 = vld [vmem:[#allocation2 + $0x240] ss:$2 sm:$0xff]  ;;  %v1506_v16 = vld [vmem:[#allocation2 + $0x241] ss:$2 sm:$0xff] }
 0x2e9   : > { %1180 = vst.msk [vmem:[#allocation2 + $0x250] sm:$0xff] %vm1105_vm1, %v1015_v56  ;;  %v5663_v58 = vld [vmem:[#allocation3 + $0x81] sm:$0xff]  ;;  %v1513_v23 = vmax.f32 %v1498_v15, %v1506_v16  ;;  %v1604_v56 = vld [vmem:[#allocation2 + $0x311] ss:$2 sm:$0xff] }
 0x2ea   : > { %v5665_v59 = vld [vmem:[#allocation3 + $0x88] sm:$0xff]  ;;  %4667 = vmatmul.msk.f32.gmra.mxu1 %vm1105_vm1, %v5663_v58  ;;  %v1610_v12 = vmax.f32 %v1596_v55, %v1604_v56  ;;  %v4728_v15 = vld [vmem:[%s7662_s3 + $0xd8] sm:$0xff] }
 0x2eb   : > { %v5667_v60 = vld [vmem:[#allocation3 + $0x82] sm:$0xff]  ;;  %4690 = vmatmul.msk.f32.gmra.mxu2 %vm1105_vm1, %v5665_v59  ;;  %4629 = vmatmul.msk.f32.gmra.mxu0 %vm463_vm0, %v447_v57 }
 0x2ec   : > { %4719 = vmatmul.msk.f32.gmra.mxu3 %vm1105_vm1, %v5667_v60  ;;  %v1598_v57 = vld [vmem:[#allocation2 + $0x320] ss:$2 sm:$0xff]  ;;  %2296 = vmatpush.msra.mxu1 %v4728_v15 }
 0x2ed   : > { %v1611_v16 = vmax.f32 %v1598_v57, %v1606_v0 }
 0x2f0   : > { %v1018_v3 = vpop.f32.mrf.mxu0 }
 0x2f1   : > { %1181 = vst.msk [vmem:[#allocation2 + $0x258] sm:$0xff] %vm1105_vm1, %v1018_v3  ;;  %v1600_v3 = vld [vmem:[#allocation2 + $0x330] ss:$2 sm:$0xff] }
 0x2f3   : > { %4630 = vmatmul.msk.f32.gmra.mxu0 %vm463_vm0, %v448_v4  ;;  %v1608_v4 = vld [vmem:[#allocation2 + $0x331] ss:$2 sm:$0xff] }
 0x2f8   : > { %v1021_v5 = vpop.f32.mrf.mxu0  ;;  %v1500_v33 = vld [vmem:[#allocation2 + $0x250] ss:$2 sm:$0xff]  ;;  %v1508_v34 = vld [vmem:[#allocation2 + $0x251] ss:$2 sm:$0xff] }
 0x2f9   : > { %1182 = vst.msk [vmem:[#allocation2 + $0x260] sm:$0xff] %vm1105_vm1, %v1021_v5  ;;  %v1514_v38 = vmax.f32 %v1500_v33, %v1508_v34  ;;  %v5039_v33 = vmov 0.0   ;;  %v4757_v34 = vld [vmem:[%s7662_s3 + $0x110] sm:$0xff] }
 0x2fa   : > { %1625 = vst.msk [vmem:[#allocation3 + $0xd0] sm:$0xff] %vm1105_vm1, %v5039_v33 }
 0x2fb   : > { %4631 = vmatmul.msk.f32.gmra.mxu0 %vm463_vm0, %v449_v6  ;;  %3510 = vst [vmem:[#allocation5 + $0x28] sm:$0xff] %v5039_v33 }
 0x300   : > { %v1024_v13 = vpop.f32.mrf.mxu0 }
 0x301   : > { %1183 = vst.msk [vmem:[#allocation2 + $0x268] sm:$0xff] %vm1105_vm1, %v1024_v13  ;;  %v4758_v13 = vld [vmem:[%s7662_s3 + $0x118] sm:$0xff] }
 0x302   : > { %2498 = vmatpush.msrb.mxu2 %v4758_v13 }
 0x303   : > { %4632 = vmatmul.msk.f32.gmra.mxu0 %vm463_vm0, %v450_v14  ;;  %v4788_v14 = vld [vmem:[%s7662_s3 + $0x158] sm:$0xff] }
 0x304   : > { %2700 = vmatpush.msra.mxu3 %v4788_v14  ;;  %2499 = vmatpush.msrb.mxu2 %v4757_v34 }
 0x308   : > { %v1502_v17 = vld [vmem:[#allocation2 + $0x260] ss:$2 sm:$0xff]  ;;  %v1510_v19 = vld [vmem:[#allocation2 + $0x261] ss:$2 sm:$0xff]  ;;  %v1027_v21 = vpop.f32.mrf.mxu0 }
 0x309   : > { %v1515_v24 = vmax.f32 %v1502_v17, %v1510_v19  ;;  %1184 = vst.msk [vmem:[#allocation2 + $0x270] sm:$0xff] %vm1105_vm1, %v1027_v21  ;;  %v1609_v17 = vmax.f32 %v1594_v1, %v1602_v2  ;;  %v1612_v19 = vmax.f32 %v1600_v3, %v1608_v4  ;;  %v4756_v1 = vld [vmem:[%s7662_s3 + $0x108] sm:$0xff]  ;;  %v4755_v3 = vld [vmem:[%s7662_s3 + $0x100] sm:$0xff] }
 0x30a   : > { %2500 = vmatpush.msrb.mxu2 %v4756_v1 }
 0x30b   : > { %v1517_v26 = vmax.f32 %v1513_v23, %v1515_v24  ;;  %4633 = vmatmul.msk.f32.gmra.mxu0 %vm463_vm0, %v451_v22  ;;  %v1613_v21 = vmax.f32 %v1609_v17, %v1611_v16  ;;  %v1614_v22 = vmax.f32 %v1610_v12, %v1612_v19  ;;  %v4967_v24 = vld [vmem:[%s7661_s2] ss:$0 sm:$0xff] }
 0x30c   : > { %2501 = vmatpush.msrb.mxu2 %v4755_v3 }
 0x30d   : > { %v1523_v27 = vadd.f32 %v4964_v25, %v1517_v26  ;;  %v1620_v26 = vadd.f32 %v4967_v24, %v1614_v22 }
 0x30f   : > { %v1525_v31 = vmax.f32 %v1523_v27, 0.0 }
 0x310   : > { %v1030_v32 = vpop.f32.mrf.mxu0 }
 0x311   : > { %1185 = vst.msk [vmem:[#allocation2 + $0x278] sm:$0xff] %vm1105_vm1, %v1030_v32 }
 0x312   : > { %1527 = vst.msk [vmem:[#allocation3 + $0x90] sm:$0xff] %vm1105_vm1, %v1525_v31  ;;  %v1622_v31 = vmax.f32 %v1620_v26, 0.0 }
 0x314   : > { %1624 = vst.msk [vmem:[#allocation3 + $0xc8] sm:$0xff] %vm1105_vm1, %v1622_v31 }
 0x318   : > { %v1504_v35 = vld [vmem:[#allocation2 + $0x270] ss:$2 sm:$0xff]  ;;  %v1512_v36 = vld [vmem:[#allocation2 + $0x271] ss:$2 sm:$0xff]  ;;  %v1033_v37 = vpop.f32.mrf.mxu0 }
 0x319   : > { %v1516_v39 = vmax.f32 %v1504_v35, %v1512_v36  ;;  %1186 = vst.msk [vmem:[#allocation2 + $0x280] sm:$0xff] %vm1105_vm1, %v1033_v37  ;;  %v5712_v40 = vld [vmem:[#allocation3 + $0x89] sm:$0xff]  ;;  %v5772_v37 = vpop.f32.mrf.mxu2 }
 0x31a   : > { %v5714_v42 = vld [vmem:[#allocation3 + $0x90] sm:$0xff]  ;;  %4668 = vmatmul.msk.f32.gmra.mxu1 %vm1105_vm1, %v5712_v40 }
 0x31b   : > { %v5716_v43 = vld [vmem:[#allocation3 + $0x8a] sm:$0xff]  ;;  %4691 = vmatmul.msk.f32.gmra.mxu2 %vm1105_vm1, %v5714_v42  ;;  %v1518_v50 = vmax.f32 %v1514_v38, %v1516_v39 }
 0x31c   : > { %4720 = vmatmul.msk.f32.gmra.mxu3 %vm1105_vm1, %v5716_v43  ;;  %v4787_v35 = vld [vmem:[%s7662_s3 + $0x150] sm:$0xff] }
 0x31d   : > { %v1524_v52 = vadd.f32 %v4964_v25, %v1518_v50  ;;  %v1619_v25 = vadd.f32 %v4967_v24, %v1613_v21  ;;  %2701 = vmatpush.msra.mxu3 %v4787_v35  ;;  %v4726_v24 = vld [vmem:[%s7662_s3 + $0xc8] sm:$0xff] }
 0x31f   : > { %v1526_v53 = vmax.f32 %v1524_v52, 0.0  ;;  %v1621_v27 = vmax.f32 %v1619_v25, 0.0 }
 0x320   : > { %v1036_v54 = vpop.f32.mrf.mxu0 }
 0x321   : > { %1187 = vst.msk [vmem:[#allocation2 + $0x288] sm:$0xff] %vm1105_vm1, %v1036_v54  ;;  %v4727_v54 = vld [vmem:[%s7662_s3 + $0xd0] sm:$0xff]  ;;  %v5781_v56 = vpop.f32.mrf.mxu2 }
 0x322   : > { %1528 = vst.msk [vmem:[#allocation3 + $0x98] sm:$0xff] %vm1105_vm1, %v1526_v53  ;;  %v4965_v53 = vld [vmem:[%s7661_s2] ss:$0 sm:$0xff]  ;;  %2297 = vmatpush.msra.mxu1 %v4727_v54 }
 0x323   : > { %1623 = vst.msk [vmem:[#allocation3 + $0xc0] sm:$0xff] %vm1105_vm1, %v1621_v27  ;;  %v4725_v54 = vld [vmem:[%s7662_s3 + $0xc0] sm:$0xff] }
 0x324   : > { %2298 = vmatpush.msra.mxu1 %v4726_v24 }
 0x326   : > { %2299 = vmatpush.msra.mxu1 %v4725_v54 }
 0x328   : > { %v1039_v5 = vpop.f32.mrf.mxu0  ;;  %v1530_v38 = vld [vmem:[#allocation2 + $0x280] ss:$2 sm:$0xff]  ;;  %v1538_v39 = vld [vmem:[#allocation2 + $0x281] ss:$2 sm:$0xff] }
 0x329   : > { %1188 = vst.msk [vmem:[#allocation2 + $0x290] sm:$0xff] %vm1105_vm1, %v1039_v5  ;;  %v5736_v6 = vld [vmem:[#allocation3 + $0x91] sm:$0xff]  ;;  %v1545_v50 = vmax.f32 %v1530_v38, %v1538_v39  ;;  %v5791_v4 = vpop.f32.mrf.mxu2 }
 0x32a   : > { %v5738_v10 = vld [vmem:[#allocation3 + $0x98] sm:$0xff]  ;;  %4669 = vmatmul.msk.f32.gmra.mxu1 %vm1105_vm1, %v5736_v6 }
 0x32b   : > { %v5740_v11 = vld [vmem:[#allocation3 + $0x92] sm:$0xff]  ;;  %4692 = vmatmul.msk.f32.gmra.mxu2 %vm1105_vm1, %v5738_v10 }
 0x32c   : > { %4721 = vmatmul.msk.f32.gmra.mxu3 %vm1105_vm1, %v5740_v11 }
 0x330   : > { %v1042_v23 = vpop.f32.mrf.mxu0 }
 0x331   : > { %1189 = vst.msk [vmem:[#allocation2 + $0x298] sm:$0xff] %vm1105_vm1, %v1042_v23  ;;  %v4786_v23 = vld [vmem:[%s7662_s3 + $0x148] sm:$0xff]  ;;  %v5812_v26 = vpop.f32.mrf.mxu2 }
 0x332   : > { %2702 = vmatpush.msra.mxu3 %v4786_v23 }
 0x338   : > { %v1045_v32 = vpop.f32.mrf.mxu0  ;;  %v1532_v5 = vld [vmem:[#allocation2 + $0x290] ss:$2 sm:$0xff]  ;;  %v1540_v12 = vld [vmem:[#allocation2 + $0x291] ss:$2 sm:$0xff] }
 0x339   : > { %1190 = vst.msk [vmem:[#allocation2 + $0x2a0] sm:$0xff] %vm1105_vm1, %v1045_v32  ;;  %v1546_v16 = vmax.f32 %v1532_v5, %v1540_v12  ;;  %v5816_v33 = vpop.f32.mrf.mxu2  ;;  %v4852_v5 = vld [vmem:[%s7662_s3 + $0x1f8] sm:$0xff] }
 0x33a   : > { %3100 = vmatpush.msra.mxu2 %v4852_v5 }
 0x340   : > { %v1048_v36 = vpop.f32.mrf.mxu0 }
 0x341   : > { %1191 = vst.msk [vmem:[#allocation2 + $0x2a8] sm:$0xff] %vm1105_vm1, %v1048_v36  ;;  %v5831_v39 = vpop.f32.mrf.mxu2 }
 0x348   : > { %v1534_v44 = vld [vmem:[#allocation2 + $0x2a0] ss:$2 sm:$0xff]  ;;  %v1542_v48 = vld [vmem:[#allocation2 + $0x2a1] ss:$2 sm:$0xff]  ;;  %v1051_v49 = vpop.f32.mrf.mxu0 }
 0x349   : > { %v1547_v52 = vmax.f32 %v1534_v44, %v1542_v48  ;;  %1192 = vst.msk [vmem:[#allocation2 + $0x2b0] sm:$0xff] %vm1105_vm1, %v1051_v49  ;;  %v5833_v44 = vpop.f32.mrf.mxu1  ;;  %v2389_v49 = vld [vmem:[#allocation3 + $0x11] sm:$0xff] }
 0x34b   : > { %v1549_v55 = vmax.f32 %v1545_v50, %v1547_v52  ;;  %v5837_v50 = vpop.f32.mrf.mxu3  ;;  %v5839_v52 = vpop.f32.mrf.mxu2 }
 0x34c   : > { %7679 = vst [vmem:[#allocation10_spill] sm:$0xff] %v5839_v52  ;;  %v2592_v52 = vld [vmem:[#allocation3 + $0x1a] sm:$0xff] }
 0x34d   : > { %v1555_v57 = vadd.f32 %v4965_v53, %v1549_v55 }
 0x34f   : > { %v1557_v0 = vmax.f32 %v1555_v57, 0.0 }
 0x350   : > { %v1054_v2 = vpop.f32.mrf.mxu0 }
 0x351   : > { %1193 = vst.msk [vmem:[#allocation2 + $0x2b8] sm:$0xff] %vm1105_vm1, %v1054_v2  ;;  %v5847_v55 = vpop.f32.mrf.mxu1 }
 0x352   : > { %1559 = vst.msk [vmem:[#allocation3 + $0xa0] sm:$0xff] %vm1105_vm1, %v1557_v0  ;;  %v2390_v0 = vld [vmem:[#allocation3 + $0x19] sm:$0xff] }
 0x353   : > { %v5851_v1 = vpop.f32.mrf.mxu3  ;;  %v5853_v2 = vpop.f32.mrf.mxu2 }
 0x354   : > { %7680 = vst [vmem:[#allocation11_spill] sm:$0xff] %v5853_v2 }
 0x358   : > { %v1536_v13 = vld [vmem:[#allocation2 + $0x2b0] ss:$2 sm:$0xff]  ;;  %v1544_v14 = vld [vmem:[#allocation2 + $0x2b1] ss:$2 sm:$0xff]  ;;  %v1057_v15 = vpop.f32.mrf.mxu0 }
 0x359   : > { %v1548_v17 = vmax.f32 %v1536_v13, %v1544_v14  ;;  %1194 = vst.msk [vmem:[#allocation2 + $0x2c0] sm:$0xff] %vm1105_vm1, %v1057_v15  ;;  %v5794_v19 = vld [vmem:[#allocation3 + $0x99] sm:$0xff]  ;;  %v5855_v3 = vpop.f32.mrf.mxu1  ;;  %v5861_v13 = vld [vmem:[#allocation3 + $0x21] sm:$0xff] }
 0x35a   : > { %v5796_v21 = vld [vmem:[#allocation3 + $0xa0] sm:$0xff]  ;;  %4670 = vmatmul.msk.f32.gmra.mxu1 %vm1105_vm1, %v5794_v19  ;;  %v4882_v14 = vld [vmem:[%s7662_s3 + $0x238] sm:$0xff] }
 0x35b   : > { %v5798_v22 = vld [vmem:[#allocation3 + $0x9a] sm:$0xff]  ;;  %4693 = vmatmul.msk.f32.gmra.mxu2 %vm1105_vm1, %v5796_v21  ;;  %v1550_v25 = vmax.f32 %v1546_v16, %v1548_v17  ;;  %v5871_v16 = vpop.f32.mrf.mxu3  ;;  %v5873_v17 = vpop.f32.mrf.mxu2 }
 0x35c   : > { %4722 = vmatmul.msk.f32.gmra.mxu3 %vm1105_vm1, %v5798_v22  ;;  %v4822_v15 = vld [vmem:[%s7662_s3 + $0x1b8] sm:$0xff]  ;;  %7681 = vst [vmem:[#allocation12_spill] sm:$0xff] %v5873_v17 }
 0x35d   : > { %v1556_v27 = vadd.f32 %v4965_v53, %v1550_v25  ;;  %v4785_v53 = vld [vmem:[%s7662_s3 + $0x140] sm:$0xff]  ;;  %2898 = vmatpush.msrb.mxu1 %v4822_v15  ;;  %v5891_v17 = vld [vmem:[#allocation3 + $0x31] sm:$0xff] }
 0x35e   : > { %2703 = vmatpush.msra.mxu3 %v4785_v53  ;;  %v5881_v53 = vld [vmem:[#allocation3 + $0x29] sm:$0xff] }
 0x35f   : > { %v1558_v31 = vmax.f32 %v1556_v27, 0.0 }
 0x360   : > { %v1060_v32 = vpop.f32.mrf.mxu0  ;;  %3302 = vmatpush.msrb.mxu3 %v4882_v14 }
 0x361   : > { %1195 = vst.msk [vmem:[#allocation2 + $0x2c8] sm:$0xff] %vm1105_vm1, %v1060_v32  ;;  %v5875_v23 = vpop.f32.mrf.mxu1 }
 0x362   : > { %1560 = vst.msk [vmem:[#allocation3 + $0xa8] sm:$0xff] %vm1105_vm1, %v1558_v31 }
 0x368   : > { %v1063_v34 = vpop.f32.mrf.mxu0  ;;  %v1562_v24 = vld [vmem:[#allocation2 + $0x2c0] ss:$2 sm:$0xff]  ;;  %v1570_v25 = vld [vmem:[#allocation2 + $0x2c1] ss:$2 sm:$0xff] }
 0x369   : > { %1196 = vst.msk [vmem:[#allocation2 + $0x2d0] sm:$0xff] %vm1105_vm1, %v1063_v34  ;;  %v5819_v35 = vld [vmem:[#allocation3 + $0xa1] sm:$0xff]  ;;  %v1577_v34 = vmax.f32 %v1562_v24, %v1570_v25 }
 0x36a   : > { %v5821_v36 = vld [vmem:[#allocation3 + $0xa8] sm:$0xff]  ;;  %4671 = vmatmul.msk.f32.gmra.mxu1 %vm1105_vm1, %v5819_v35 }
 0x36b   : > { %v5823_v38 = vld [vmem:[#allocation3 + $0xa2] sm:$0xff]  ;;  %4694 = vmatmul.msk.f32.gmra.mxu2 %vm1105_vm1, %v5821_v36 }
 0x36c   : > { %4723 = vmatmul.msk.f32.gmra.mxu3 %vm1105_vm1, %v5823_v38 }
 0x370   : > { %v1066_v48 = vpop.f32.mrf.mxu0 }
 0x371   : > { %1197 = vst.msk [vmem:[#allocation2 + $0x2d8] sm:$0xff] %vm1105_vm1, %v1066_v48 }
 0x373   : > { %4763 = vmatmul.msk.f32.vlgmr.msrb.gmra.mxu2 %vm1105_vm1, %v2389_v49  ;;  %v4966_v49 = vld [vmem:[%s7661_s2] ss:$0 sm:$0xff] }
 0x378   : > { %v1069_v57 = vpop.f32.mrf.mxu0  ;;  %v1564_v14 = vld [vmem:[#allocation2 + $0x2d0] ss:$2 sm:$0xff]  ;;  %v1572_v15 = vld [vmem:[#allocation2 + $0x2d1] ss:$2 sm:$0xff] }
 0x379   : > { %1198 = vst.msk [vmem:[#allocation2 + $0x2e0] sm:$0xff] %vm1105_vm1, %v1069_v57  ;;  %v5885_v57 = vpop.f32.mrf.mxu3 }
 0x37b   : > { %4764 = vmatmul.msk.f32.gmra.mxu2 %vm1105_vm1, %v2390_v0  ;;  %v5887_v0 = vpop.f32.mrf.mxu2 }
 0x37c   : > { %7682 = vst [vmem:[#allocation13_spill] sm:$0xff] %v5887_v0 }
 0x380   : > { %v1072_v12 = vpop.f32.mrf.mxu0 }
 0x381   : > { %1199 = vst.msk [vmem:[#allocation2 + $0x2e8] sm:$0xff] %vm1105_vm1, %v1072_v12  ;;  %v5889_v12 = vpop.f32.mrf.mxu1 }
 0x383   : > { %4765 = vmatmul.msk.f32.gmra.mxu2 %vm1105_vm1, %v5861_v13 }
 0x388   : > { %v1566_v27 = vld [vmem:[#allocation2 + $0x2e0] ss:$2 sm:$0xff]  ;;  %v1574_v31 = vld [vmem:[#allocation2 + $0x2e1] ss:$2 sm:$0xff]  ;;  %v1075_v32 = vpop.f32.mrf.mxu0 }
 0x389   : > { %v1579_v48 = vmax.f32 %v1566_v27, %v1574_v31  ;;  %1200 = vst.msk [vmem:[#allocation2 + $0x2f0] sm:$0xff] %vm1105_vm1, %v1075_v32  ;;  %v1578_v31 = vmax.f32 %v1564_v14, %v1572_v15  ;;  %v5904_v14 = vpop.f32.mrf.mxu2 }
 0x38a   : > { %7683 = vst [vmem:[#allocation14_spill] sm:$0xff] %v5904_v14  ;;  %v5931_v14 = vld [vmem:[#allocation3 + $0x41] sm:$0xff] }
 0x38b   : > { %4766 = vmatmul.msk.f32.gmra.mxu2 %vm1105_vm1, %v5881_v53  ;;  %v1581_v54 = vmax.f32 %v1577_v34, %v1579_v48  ;;  %v4851_v34 = vld [vmem:[%s7662_s3 + $0x1f0] sm:$0xff] }
 0x38c   : > { %v4881_v48 = vld [vmem:[%s7662_s3 + $0x230] sm:$0xff]  ;;  %3101 = vmatpush.msra.mxu2 %v4851_v34 }
 0x38d   : > { %v1587_v5 = vadd.f32 %v4966_v49, %v1581_v54  ;;  %3303 = vmatpush.msrb.mxu3 %v4881_v48 }
 0x38f   : > { %v1589_v24 = vmax.f32 %v1587_v5, 0.0  ;;  %v5902_v5 = vpop.f32.mrf.mxu3 }
 0x390   : > { %v1568_v25 = vld [vmem:[#allocation2 + $0x2f0] ss:$2 sm:$0xff]  ;;  %v1576_v27 = vld [vmem:[#allocation2 + $0x2f1] ss:$2 sm:$0xff] }
 0x391   : > { %v1580_v32 = vmax.f32 %v1568_v25, %v1576_v27  ;;  %1591 = vst.msk [vmem:[#allocation3 + $0xb0] sm:$0xff] %vm1105_vm1, %v1589_v24  ;;  %v5906_v24 = vpop.f32.mrf.mxu1  ;;  %v5926_v34 = vpop.f32.mrf.mxu2 }
 0x392   : > { %7684 = vst [vmem:[#allocation15_spill] sm:$0xff] %v5926_v34  ;;  %v2188_v34 = vld [vmem:[#allocation3 + $0x18] sm:$0xff] }
 0x393   : > { %4767 = vmatmul.msk.f32.gmra.mxu2 %vm1105_vm1, %v5891_v17  ;;  %v1582_v54 = vmax.f32 %v1578_v31, %v1580_v32  ;;  %v5916_v31 = vld [vmem:[#allocation3 + $0x39] sm:$0xff] }
 0x395   : > { %v1588_v15 = vadd.f32 %v4966_v49, %v1582_v54  ;;  %v4821_v49 = vld [vmem:[%s7662_s3 + $0x1b0] sm:$0xff] }
 0x396   : > { %2899 = vmatpush.msrb.mxu1 %v4821_v49  ;;  %v2187_v54 = vld [vmem:[#allocation3 + $0x10] sm:$0xff] }
 0x397   : > { %v1590_v25 = vmax.f32 %v1588_v15, 0.0  ;;  %v5924_v32 = vpop.f32.mrf.mxu3  ;;  %v2591_v15 = vld [vmem:[#allocation3 + $0x12] sm:$0xff] }
 0x398   : > { %v5908_v27 = vld [vmem:[#allocation3 + $0xa9] sm:$0xff] }
 0x399   : > { %v5910_v0 = vld [vmem:[#allocation3 + $0xaa] sm:$0xff]  ;;  %4672 = vmatmul.msk.f32.gmra.mxu1 %vm1105_vm1, %v5908_v27  ;;  %1592 = vst.msk [vmem:[#allocation3 + $0xb8] sm:$0xff] %vm1105_vm1, %v1590_v25  ;;  %v5928_v48 = vpop.f32.mrf.mxu1  ;;  %v5938_v49 = vpop.f32.mrf.mxu2 }
 0x39a   : > { %4724 = vmatmul.msk.f32.gmra.mxu3 %vm1105_vm1, %v5910_v0  ;;  %7686 = vst [vmem:[#allocation17_spill] sm:$0xff] %v5938_v49  ;;  %v4820_v49 = vld [vmem:[%s7662_s3 + $0x1a8] sm:$0xff] }
 0x39b   : > { %4768 = vmatmul.msk.f32.gmra.mxu2 %vm1105_vm1, %v5916_v31  ;;  %2900 = vmatpush.msrb.mxu1 %v4820_v49 }
 0x39f   : > { %v5936_v25 = vpop.f32.mrf.mxu3 }
 0x3a0   : > { %7685 = vst [vmem:[#allocation16_spill] sm:$0xff] %v5936_v25  ;;  %v5963_v25 = vld [vmem:[#allocation3 + $0x22] sm:$0xff] }
 0x3a1   : > { %4733 = vmatmul.msk.f32.vlgmr.msra.gmra.mxu1 %vm1105_vm1, %v2187_v54  ;;  %v5940_v2 = vpop.f32.mrf.mxu1  ;;  %v4850_v54 = vld [vmem:[%s7662_s3 + $0x1e8] sm:$0xff] }
 0x3a2   : > { %4793 = vmatmul.msk.f32.vlgmr.msra.gmra.mxu3 %vm1105_vm1, %v2591_v15  ;;  %7687 = vst [vmem:[#allocation18_spill] sm:$0xff] %v5940_v2  ;;  %v4880_v15 = vld [vmem:[%s7662_s3 + $0x228] sm:$0xff]  ;;  %3102 = vmatpush.msra.mxu2 %v4850_v54  ;;  %v5961_v2 = vld [vmem:[#allocation3 + $0x20] sm:$0xff] }
 0x3a3   : > { %4769 = vmatmul.msk.f32.gmra.mxu2 %vm1105_vm1, %v5931_v14  ;;  %3304 = vmatpush.msrb.mxu3 %v4880_v15 }
 0x3a9   : > { %4734 = vmatmul.msk.f32.gmra.mxu1 %vm1105_vm1, %v2188_v34  ;;  %v5955_v34 = vpop.f32.mrf.mxu3 }
 0x3aa   : > { %4794 = vmatmul.msk.f32.gmra.mxu3 %vm1105_vm1, %v2592_v52  ;;  %7688 = vst [vmem:[#allocation19_spill] sm:$0xff] %v5955_v34  ;;  %v5957_v52 = vpop.f32.mrf.mxu2  ;;  %v5995_v34 = vld [vmem:[#allocation3 + $0x32] sm:$0xff] }
 0x3ab   : > { %4770 = vmatmul.msk.f32.gmra.mxu2 %vm1105_vm1, %v5491_v41  ;;  %7689 = vst [vmem:[#allocation20_spill] sm:$0xff] %v5957_v52  ;;  %v5959_v41 = vpop.f32.mrf.mxu1  ;;  %v5977_v52 = vld [vmem:[#allocation3 + $0x28] sm:$0xff] }
 0x3ac   : > { %7690 = vst [vmem:[#allocation21_spill] sm:$0xff] %v5959_v41  ;;  %v5979_v41 = vld [vmem:[#allocation3 + $0x2a] sm:$0xff] }
 0x3ad   : > { %7694 = vst [vmem:[#allocation25_spill] sm:$0xff] %v5979_v41 }
 0x3ae   : > { %7699 = vst [vmem:[#allocation30_spill] sm:$0xff] %v5995_v34 }
 0x3b1   : > { %4735 = vmatmul.msk.f32.gmra.mxu1 %vm1105_vm1, %v5961_v2  ;;  %v5971_v54 = vpop.f32.mrf.mxu3 }
 0x3b2   : > { %4795 = vmatmul.msk.f32.gmra.mxu3 %vm1105_vm1, %v5963_v25  ;;  %7691 = vst [vmem:[#allocation22_spill] sm:$0xff] %v5971_v54  ;;  %v5973_v49 = vpop.f32.mrf.mxu2 }
 0x3b3   : > { %4771 = vmatmul.msk.f32.gmra.mxu2 %vm1105_vm1, %v5504_v51  ;;  %7692 = vst [vmem:[#allocation23_spill] sm:$0xff] %v5973_v49  ;;  %v5975_v15 = vpop.f32.mrf.mxu1 }
 0x3b4   : > { %7693 = vst [vmem:[#allocation24_spill] sm:$0xff] %v5975_v15  ;;  %v5993_v15 = vld [vmem:[#allocation3 + $0x30] sm:$0xff] }
 0x3b5   : > { %7698 = vst [vmem:[#allocation29_spill] sm:$0xff] %v5993_v15 }
 0x3b9   : > { %4736 = vmatmul.msk.f32.gmra.mxu1 %vm1105_vm1, %v5977_v52  ;;  %v5987_v51 = vpop.f32.mrf.mxu3 }
 0x3ba   : > { %4796 = vmatmul.msk.f32.gmra.mxu3 %vm1105_vm1, %v5979_v41  ;;  %7695 = vst [vmem:[#allocation26_spill] sm:$0xff] %v5987_v51  ;;  %v5989_v54 = vpop.f32.mrf.mxu2  ;;  %v6020_v41 = vld [vmem:[#allocation3 + $0x3a] sm:$0xff] }
 0x3bb   : > { %4772 = vmatmul.msk.f32.gmra.mxu2 %vm1105_vm1, %v5532_v18  ;;  %7696 = vst [vmem:[#allocation27_spill] sm:$0xff] %v5989_v54  ;;  %v5991_v49 = vpop.f32.mrf.mxu1  ;;  %v4849_v18 = vld [vmem:[%s7662_s3 + $0x1e0] sm:$0xff] }
 0x3bc   : > { %7697 = vst [vmem:[#allocation28_spill] sm:$0xff] %v5991_v49  ;;  %v4879_v54 = vld [vmem:[%s7662_s3 + $0x220] sm:$0xff]  ;;  %3103 = vmatpush.msra.mxu2 %v4849_v18 }
 0x3bd   : > { %v4819_v49 = vld [vmem:[%s7662_s3 + $0x1a0] sm:$0xff]  ;;  %3305 = vmatpush.msrb.mxu3 %v4879_v54 }
 0x3be   : > { %2901 = vmatpush.msrb.mxu1 %v4819_v49 }
 0x3c1   : > { %4737 = vmatmul.msk.f32.gmra.mxu1 %vm1105_vm1, %v5993_v15  ;;  %v6012_v51 = vpop.f32.mrf.mxu3  ;;  %v6018_v15 = vld [vmem:[#allocation3 + $0x38] sm:$0xff] }
 0x3c2   : > { %4797 = vmatmul.msk.f32.gmra.mxu3 %vm1105_vm1, %v5995_v34  ;;  %7700 = vst [vmem:[#allocation31_spill] sm:$0xff] %v6012_v51  ;;  %v6014_v34 = vpop.f32.mrf.mxu2  ;;  %v6053_v51 = vld [vmem:[#allocation3 + $0x48] sm:$0xff] }
 0x3c3   : > { %4773 = vmatmul.msk.f32.gmra.mxu2 %vm1105_vm1, %v5548_v28  ;;  %7701 = vst [vmem:[#allocation32_spill] sm:$0xff] %v6014_v34  ;;  %v6016_v28 = vpop.f32.mrf.mxu1  ;;  %v6034_v34 = vld [vmem:[#allocation3 + $0x40] sm:$0xff] }
 0x3c4   : > { %7702 = vst [vmem:[#allocation33_spill] sm:$0xff] %v6016_v28  ;;  %v6036_v28 = vld [vmem:[#allocation3 + $0x42] sm:$0xff] }
 0x3c5   : > { %7706 = vst [vmem:[#allocation37_spill] sm:$0xff] %v6034_v34 }
 0x3c6   : > { %7710 = vst [vmem:[#allocation41_spill] sm:$0xff] %v6053_v51 }
 0x3c9   : > { %4738 = vmatmul.msk.f32.gmra.mxu1 %vm1105_vm1, %v6018_v15  ;;  %v6028_v54 = vpop.f32.mrf.mxu3 }
 0x3ca   : > { %4798 = vmatmul.msk.f32.gmra.mxu3 %vm1105_vm1, %v6020_v41  ;;  %7703 = vst [vmem:[#allocation34_spill] sm:$0xff] %v6028_v54  ;;  %v6030_v49 = vpop.f32.mrf.mxu2 }
 0x3cb   : > { %4774 = vmatmul.msk.f32.gmra.mxu2 %vm1105_vm1, %v5582_v61  ;;  %7704 = vst [vmem:[#allocation35_spill] sm:$0xff] %v6030_v49  ;;  %v6032_v18 = vpop.f32.mrf.mxu1  ;;  %v4848_v49 = vld [vmem:[%s7662_s3 + $0x1d8] sm:$0xff] }
 0x3cc   : > { %7705 = vst [vmem:[#allocation36_spill] sm:$0xff] %v6032_v18  ;;  %3104 = vmatpush.msra.mxu2 %v4848_v49  ;;  %v4818_v49 = vld [vmem:[%s7662_s3 + $0x198] sm:$0xff] }
 0x3cd   : > { %2902 = vmatpush.msrb.mxu1 %v4818_v49 }
 0x3d1   : > { %4739 = vmatmul.msk.f32.gmra.mxu1 %vm1105_vm1, %v6034_v34  ;;  %v6044_v61 = vpop.f32.mrf.mxu3  ;;  %v6055_v34 = vld [vmem:[#allocation3 + $0x4a] sm:$0xff] }
 0x3d2   : > { %4799 = vmatmul.msk.f32.gmra.mxu3 %vm1105_vm1, %v6036_v28  ;;  %7707 = vst [vmem:[#allocation38_spill] sm:$0xff] %v6044_v61  ;;  %v6046_v54 = vpop.f32.mrf.mxu2 }
 0x3d3   : > { %4775 = vmatmul.msk.f32.gmra.mxu2 %vm1105_vm1, %v5601_v7  ;;  %7708 = vst [vmem:[#allocation39_spill] sm:$0xff] %v6046_v54  ;;  %v6051_v18 = vpop.f32.mrf.mxu1  ;;  %v4878_v7 = vld [vmem:[%s7662_s3 + $0x218] sm:$0xff] }
 0x3d4   : > { %7709 = vst [vmem:[#allocation40_spill] sm:$0xff] %v6051_v18  ;;  %3306 = vmatpush.msrb.mxu3 %v4878_v7 }
 0x3d5   : > { %7711 = vst [vmem:[#allocation42_spill] sm:$0xff] %v6055_v34 }
 0x3d9   : > { %4740 = vmatmul.msk.f32.gmra.mxu1 %vm1105_vm1, %v6053_v51  ;;  %v6069_v54 = vpop.f32.mrf.mxu3  ;;  %v6077_v51 = vld [vmem:[#allocation3 + $0x52] sm:$0xff] }
 0x3da   : > { %4800 = vmatmul.msk.f32.gmra.mxu3 %vm1105_vm1, %v6055_v34  ;;  %7712 = vst [vmem:[#allocation43_spill] sm:$0xff] %v6069_v54  ;;  %v6071_v18 = vpop.f32.mrf.mxu2  ;;  %v6075_v34 = vld [vmem:[#allocation3 + $0x50] sm:$0xff] }
 0x3db   : > { %4776 = vmatmul.msk.f32.gmra.mxu2 %vm1105_vm1, %v5638_v45  ;;  %7713 = vst [vmem:[#allocation44_spill] sm:$0xff] %v6071_v18  ;;  %v6073_v61 = vpop.f32.mrf.mxu1  ;;  %v6089_v18 = vld [vmem:[#allocation3 + $0x58] sm:$0xff] }
 0x3dc   : > { %7714 = vst [vmem:[#allocation45_spill] sm:$0xff] %v6073_v61 }
 0x3e1   : > { %4741 = vmatmul.msk.f32.gmra.mxu1 %vm1105_vm1, %v6075_v34  ;;  %v6085_v45 = vpop.f32.mrf.mxu3 }
 0x3e2   : > { %4801 = vmatmul.msk.f32.gmra.mxu3 %vm1105_vm1, %v6077_v51  ;;  %7715 = vst [vmem:[#allocation46_spill] sm:$0xff] %v6085_v45  ;;  %v1979_v7 = vpop.f32.mrf.mxu2  ;;  %v4973_v45 = vld [vmem:[#allocation3 + $0x60] sm:$0xff] }
 0x3e3   : > { %4777 = vmatmul.msk.f32.gmra.mxu2 %vm1105_vm1, %v5663_v58  ;;  %v6087_v49 = vpop.f32.mrf.mxu1  ;;  %v4847_v58 = vld [vmem:[%s7662_s3 + $0x1d0] sm:$0xff] }
 0x3e4   : > { %7716 = vst [vmem:[#allocation47_spill] sm:$0xff] %v6087_v49  ;;  %v4877_v7 = vld [vmem:[%s7662_s3 + $0x210] sm:$0xff]  ;;  %3105 = vmatpush.msra.mxu2 %v4847_v58 }
 0x3e5   : > { %3307 = vmatpush.msrb.mxu3 %v4877_v7  ;;  %v4846_v7 = vld [vmem:[%s7662_s3 + $0x1c8] sm:$0xff] }
 0x3e6   : > { %3106 = vmatpush.msra.mxu2 %v4846_v7  ;;  %v4876_v7 = vld [vmem:[%s7662_s3 + $0x208] sm:$0xff] }
 0x3e7   : > { %3308 = vmatpush.msrb.mxu3 %v4876_v7  ;;  %v6161_v7 = vld [vmem:[#allocation3 + $0xb1] sm:$0xff] }
 0x3e9   : > { %4742 = vmatmul.msk.f32.gmra.mxu1 %vm1105_vm1, %v6089_v18  ;;  %v6097_v61 = vpop.f32.mrf.mxu3 }
 0x3ea   : > { %4802 = vmatmul.msk.f32.gmra.mxu3 %vm1105_vm1, %v5534_v20  ;;  %v4817_v20 = vld [vmem:[%s7662_s3 + $0x190] sm:$0xff] }
 0x3eb   : > { %4778 = vmatmul.msk.f32.gmra.mxu2 %vm1105_vm1, %v5712_v40  ;;  %v6105_v49 = vpop.f32.mrf.mxu1  ;;  %2903 = vmatpush.msrb.mxu1 %v4817_v20 }
 0x3ec   : > { %7717 = vst [vmem:[#allocation48_spill] sm:$0xff] %v6105_v49 }
 0x3ee   : > { %v1982_v54 = vpop.f32.mrf.mxu2 }
 0x3f1   : > { %4743 = vmatmul.msk.f32.gmra.mxu1 %vm1105_vm1, %v4973_v45  ;;  %v6115_v40 = vpop.f32.mrf.mxu3 }
 0x3f2   : > { %4803 = vmatmul.msk.f32.gmra.mxu3 %vm1105_vm1, %v5552_v30 }
 0x3f3   : > { %4779 = vmatmul.msk.f32.gmra.mxu2 %vm1105_vm1, %v5736_v6  ;;  %v6117_v49 = vpop.f32.mrf.mxu1 }
 0x3f6   : > { %v2503_v54 = vpop.f32.mrf.mxu2 }
 0x3f9   : > { %4744 = vmatmul.msk.f32.gmra.mxu1 %vm1105_vm1, %v5550_v29  ;;  %v6125_v30 = vpop.f32.mrf.mxu3  ;;  %v4845_v29 = vld [vmem:[%s7662_s3 + $0x1c0] sm:$0xff] }
 0x3fa   : > { %4804 = vmatmul.msk.f32.gmra.mxu3 %vm1105_vm1, %v5586_v63  ;;  %3107 = vmatpush.msra.mxu2 %v4845_v29 }
 0x3fb   : > { %4780 = vmatmul.msk.f32.gmra.mxu2 %vm1105_vm1, %v5794_v19  ;;  %v6127_v58 = vpop.f32.mrf.mxu1 }
 0x3fc   : > { %7718 = vst [vmem:[#allocation49_spill] sm:$0xff] %v6127_v58 }
 0x3fe   : > { %v2506_v45 = vpop.f32.mrf.mxu2 }
 0x401   : > { %4745 = vmatmul.msk.f32.gmra.mxu1 %vm1105_vm1, %v5584_v62  ;;  %v6141_v63 = vpop.f32.mrf.mxu3  ;;  %v4816_v62 = vld [vmem:[%s7662_s3 + $0x188] sm:$0xff] }
 0x402   : > { %4805 = vmatmul.msk.f32.gmra.mxu3 %vm1105_vm1, %v5605_v9  ;;  %7719 = vst [vmem:[#allocation50_spill] sm:$0xff] %v6141_v63  ;;  %2904 = vmatpush.msrb.mxu1 %v4816_v62 }
 0x403   : > { %4781 = vmatmul.msk.f32.gmra.mxu2 %vm1105_vm1, %v5819_v35  ;;  %v6146_v58 = vpop.f32.mrf.mxu1 }
 0x406   : > { %v2509_v20 = vpop.f32.mrf.mxu2 }
 0x409   : > { %4746 = vmatmul.msk.f32.gmra.mxu1 %vm1105_vm1, %v5603_v8  ;;  %v6157_v9 = vpop.f32.mrf.mxu3 }
 0x40a   : > { %4806 = vmatmul.msk.f32.gmra.mxu3 %vm1105_vm1, %v5642_v47  ;;  %7720 = vst [vmem:[#allocation51_spill] sm:$0xff] %v6157_v9  ;;  %v6171_v9 = vld [vmem:[#allocation3 + $0xb9] sm:$0xff] }
 0x40b   : > { %4782 = vmatmul.msk.f32.gmra.mxu2 %vm1105_vm1, %v5908_v27  ;;  %v1830_v63 = vpop.f32.mrf.mxu1  ;;  %7721 = vst [vmem:[#allocation52_spill] sm:$0xff] %v6171_v9 }
 0x40e   : > { %v2512_v29 = vpop.f32.mrf.mxu2 }
 0x411   : > { %4747 = vmatmul.msk.f32.gmra.mxu1 %vm1105_vm1, %v5640_v46  ;;  %v2159_v8 = vpop.f32.mrf.mxu3  ;;  %v4875_v46 = vld [vmem:[%s7662_s3 + $0x200] sm:$0xff] }
 0x412   : > { %4807 = vmatmul.msk.f32.gmra.mxu3 %vm1105_vm1, %v5667_v60  ;;  %v1920_v60 = vadd.f32 %v5772_v37, %v5833_v44  ;;  %v1923_v37 = vadd.f32 %v5781_v56, %v5847_v55 }
 0x413   : > { %4783 = vmatmul.msk.f32.gmra.mxu2 %vm1105_vm1, %v6161_v7  ;;  %3309 = vmatpush.msrb.mxu3 %v4875_v46 }
 0x414   : > { %v2165_v8 = vadd.f32 %v5837_v50, %v1920_v60  ;;  %v2166_v46 = vadd.f32 %v5851_v1, %v1923_v37 }
 0x416   : > { %v6167_v47 = vpop.f32.mrf.mxu2  ;;  %v1833_v62 = vpop.f32.mrf.mxu1 }
 0x419   : > { %4748 = vmatmul.msk.f32.gmra.mxu1 %vm1105_vm1, %v5665_v59 }
 0x41a   : > { %4808 = vmatmul.msk.f32.gmra.mxu3 %vm1105_vm1, %v5716_v43  ;;  %v4815_v43 = vld [vmem:[%s7662_s3 + $0x180] sm:$0xff] }
 0x41b   : > { %4784 = vmatmul.msk.f32.gmra.mxu2 %vm1105_vm1, %v6171_v9  ;;  %2905 = vmatpush.msrb.mxu1 %v4815_v43 }
 0x41d   : > { %v2162_v63 = vpop.f32.mrf.mxu3 }
 0x41e   : > { %v6183_v59 = vpop.f32.mrf.mxu2  ;;  %v2301_v62 = vpop.f32.mrf.mxu1 }
 0x41f   : > { %v2367_v9 = vadd.f32 %v2301_v62, %v2165_v8 }
 0x421   : > { %4749 = vmatmul.msk.f32.gmra.mxu1 %vm1105_vm1, %v5714_v42  ;;  %v2569_v44 = vadd.f32 %v2503_v54, %v2367_v9  ;;  %v1926_v42 = vadd.f32 %v5791_v4, %v5855_v3 }
 0x422   : > { %4809 = vmatmul.msk.f32.gmra.mxu3 %vm1105_vm1, %v5740_v11 }
 0x423   : > { %4853 = vmatmul.msk.f32.vlgmr.msra.gmra.mxu2 %vm1105_vm1, %v5861_v13  ;;  %v2167_v55 = vadd.f32 %v5871_v16, %v1926_v42  ;;  %v6260_v42 = vld [vmem:[#allocation3 + $0xba] sm:$0xff] }
 0x425   : > { %v2705_v50 = vpop.f32.mrf.mxu3 }
 0x426   : > { %v6197_v60 = vpop.f32.mrf.mxu2  ;;  %v6199_v63 = vadd.f32 %v2705_v50, %v2569_v44  ;;  %v2304_v8 = vpop.f32.mrf.mxu1  ;;  %v6242_v44 = vld [vmem:[#allocation3 + $0xb2] sm:$0xff] }
 0x427   : > { %v2368_v43 = vadd.f32 %v2304_v8, %v2166_v46 }
 0x429   : > { %4750 = vmatmul.msk.f32.gmra.mxu1 %vm1105_vm1, %v5738_v10  ;;  %v2570_v11 = vadd.f32 %v2506_v45, %v2368_v43  ;;  %v1929_v10 = vadd.f32 %v5812_v26, %v5875_v23  ;;  %v6258_v43 = vld [vmem:[#allocation3 + $0xb8] sm:$0xff] }
 0x42a   : > { %4810 = vmatmul.msk.f32.gmra.mxu3 %vm1105_vm1, %v5798_v22 }
 0x42b   : > { %4854 = vmatmul.msk.f32.gmra.mxu2 %vm1105_vm1, %v5881_v53  ;;  %v2168_v3 = vadd.f32 %v5885_v57, %v1929_v10 }
 0x42d   : > { %v2708_v56 = vpop.f32.mrf.mxu3 }
 0x42e   : > { %v6210_v1 = vpop.f32.mrf.mxu2  ;;  %v6212_v13 = vadd.f32 %v2708_v56, %v2570_v11  ;;  %v2307_v54 = vpop.f32.mrf.mxu1  ;;  %v7723_v11 = vld [vmem:[#allocation16_spill] sm:$0xff] }
 0x42f   : > { %v2369_v9 = vadd.f32 %v2307_v54, %v2167_v55 }
 0x431   : > { %4751 = vmatmul.msk.f32.gmra.mxu1 %vm1105_vm1, %v5796_v21  ;;  %v2571_v4 = vadd.f32 %v2509_v20, %v2369_v9  ;;  %v1932_v21 = vadd.f32 %v5816_v33, %v5889_v12  ;;  %v1935_v33 = vadd.f32 %v5831_v39, %v5906_v24  ;;  %v3000_v39 = vld [vmem:[#allocation3 + $0x49] sm:$0xff] }
 0x432   : > { %4811 = vmatmul.msk.f32.gmra.mxu3 %vm1105_vm1, %v5823_v38 }
 0x433   : > { %4855 = vmatmul.msk.f32.gmra.mxu2 %vm1105_vm1, %v5891_v17  ;;  %v2169_v17 = vadd.f32 %v5902_v5, %v1932_v21 }
 0x435   : > { %v2711_v22 = vpop.f32.mrf.mxu3 }
 0x436   : > { %v6223_v16 = vpop.f32.mrf.mxu2  ;;  %v6225_v53 = vadd.f32 %v2711_v22, %v2571_v4  ;;  %v2310_v45 = vpop.f32.mrf.mxu1  ;;  %v3001_v4 = vld [vmem:[#allocation3 + $0x51] sm:$0xff] }
 0x437   : > { %v2370_v62 = vadd.f32 %v2310_v45, %v2168_v3 }
 0x439   : > { %4752 = vmatmul.msk.f32.gmra.mxu1 %vm1105_vm1, %v5821_v36  ;;  %v2572_v26 = vadd.f32 %v2512_v29, %v2370_v62  ;;  %v6240_v36 = vld [vmem:[#allocation3 + $0xb0] sm:$0xff]  ;;  %v7726_v62 = vld [vmem:[#allocation19_spill] sm:$0xff] }
 0x43a   : > { %4812 = vmatmul.msk.f32.gmra.mxu3 %vm1105_vm1, %v5910_v0 }
 0x43b   : > { %4856 = vmatmul.msk.f32.gmra.mxu2 %vm1105_vm1, %v5916_v31  ;;  %v2170_v31 = vadd.f32 %v5924_v32, %v1935_v33 }
 0x43d   : > { %v2714_v38 = vpop.f32.mrf.mxu3 }
 0x43e   : > { %v6236_v23 = vpop.f32.mrf.mxu2  ;;  %v6238_v57 = vadd.f32 %v2714_v38, %v2572_v26  ;;  %v2313_v20 = vpop.f32.mrf.mxu1 }
 0x43f   : > { %v2371_v37 = vadd.f32 %v2313_v20, %v2169_v17  ;;  %v7727_v20 = vld [vmem:[#allocation25_spill] sm:$0xff] }
 0x441   : > { %4753 = vmatmul.msk.f32.gmra.mxu1 %vm1105_vm1, %v6240_v36  ;;  %v2573_v12 = vadd.f32 %v6167_v47, %v2371_v37  ;;  %v7728_v37 = vld [vmem:[#allocation21_spill] sm:$0xff] }
 0x442   : > { %4813 = vmatmul.msk.f32.gmra.mxu3 %vm1105_vm1, %v6242_v44 }
 0x443   : > { %4857 = vmatmul.msk.f32.gmra.mxu2 %vm1105_vm1, %v5931_v14  ;;  %v7722_v14 = vld [vmem:[#allocation10_spill] sm:$0xff] }
 0x444   : > { %v1938_v24 = vadd.f32 %v7722_v14, %v5928_v48  ;;  %v7724_v48 = vld [vmem:[#allocation18_spill] sm:$0xff] }
 0x445   : > { %v2717_v5 = vpop.f32.mrf.mxu3 }
 0x446   : > { %v6254_v29 = vpop.f32.mrf.mxu2  ;;  %v6256_v50 = vadd.f32 %v2717_v5, %v2573_v12  ;;  %v2316_v46 = vpop.f32.mrf.mxu1  ;;  %v2171_v56 = vadd.f32 %v7723_v11, %v1938_v24  ;;  %v7731_v24 = vld [vmem:[#allocation29_spill] sm:$0xff]  ;;  %v7733_v11 = vld [vmem:[#allocation24_spill] sm:$0xff] }
 0x447   : > { %v2372_v8 = vadd.f32 %v2316_v46, %v2170_v31  ;;  %v7730_v31 = vld [vmem:[#allocation22_spill] sm:$0xff] }
 0x449   : > { %4754 = vmatmul.msk.f32.gmra.mxu1 %vm1105_vm1, %v6258_v43  ;;  %v2574_v32 = vadd.f32 %v6183_v59, %v2372_v8  ;;  %v7725_v59 = vld [vmem:[#allocation11_spill] sm:$0xff] }
 0x44a   : > { %4814 = vmatmul.msk.f32.gmra.mxu3 %vm1105_vm1, %v6260_v42  ;;  %v1941_v22 = vadd.f32 %v7725_v59, %v7724_v48 }
 0x44b   : > { %4858 = vmatmul.msk.f32.gmra.mxu2 %vm1105_vm1, %v3000_v39 }
 0x44c   : > { %v2172_v21 = vadd.f32 %v7726_v62, %v1941_v22  ;;  %v3004_v62 = vld [vmem:[#allocation3 + $0x69] sm:$0xff] }
 0x44d   : > { %v2720_v47 = vpop.f32.mrf.mxu3 }
 0x44e   : > { %v6271_v55 = vpop.f32.mrf.mxu2  ;;  %v6273_v54 = vadd.f32 %v2720_v47, %v2574_v32  ;;  %v2319_v9 = vpop.f32.mrf.mxu1  ;;  %v3003_v32 = vld [vmem:[#allocation3 + $0x61] sm:$0xff] }
 0x44f   : > { %v2373_v10 = vadd.f32 %v2319_v9, %v2171_v56  ;;  %v7732_v47 = vld [vmem:[#allocation30_spill] sm:$0xff] }
 0x451   : > { %4823 = vmatmul.msk.f32.vlgmr.msrb.gmra.mxu1 %vm1105_vm1, %v5961_v2  ;;  %v2575_v3 = vadd.f32 %v6197_v60, %v2373_v10  ;;  %v7729_v60 = vld [vmem:[#allocation12_spill] sm:$0xff] }
 0x452   : > { %4883 = vmatmul.msk.f32.vlgmr.msrb.gmra.mxu3 %vm1105_vm1, %v5963_v25  ;;  %v3002_v25 = vld [vmem:[#allocation3 + $0x59] sm:$0xff]  ;;  %v1944_v33 = vadd.f32 %v7729_v60, %v7728_v37 }
 0x453   : > { %4859 = vmatmul.msk.f32.gmra.mxu2 %vm1105_vm1, %v3001_v4  ;;  %v7735_v4 = vld [vmem:[#allocation26_spill] sm:$0xff] }
 0x454   : > { %v2173_v46 = vadd.f32 %v7730_v31, %v1944_v33  ;;  %v7740_v31 = vld [vmem:[#allocation33_spill] sm:$0xff] }
 0x455   : > { %v2723_v45 = vpop.f32.mrf.mxu3 }
 0x456   : > { %v6284_v26 = vpop.f32.mrf.mxu2  ;;  %v6286_v38 = vadd.f32 %v2723_v45, %v2575_v3  ;;  %v2322_v17 = vpop.f32.mrf.mxu1 }
 0x457   : > { %v2374_v2 = vadd.f32 %v2322_v17, %v2172_v21  ;;  %v7736_v21 = vld [vmem:[#allocation28_spill] sm:$0xff] }
 0x459   : > { %4824 = vmatmul.msk.f32.gmra.mxu1 %vm1105_vm1, %v5977_v52  ;;  %v2576_v12 = vadd.f32 %v6210_v1, %v2374_v2  ;;  %v7734_v1 = vld [vmem:[#allocation13_spill] sm:$0xff] }
 0x45a   : > { %4884 = vmatmul.msk.f32.gmra.mxu3 %vm1105_vm1, %v7727_v20  ;;  %v1947_v56 = vadd.f32 %v7734_v1, %v7733_v11  ;;  %v7738_v20 = vld [vmem:[#allocation31_spill] sm:$0xff] }
 0x45b   : > { %4860 = vmatmul.msk.f32.gmra.mxu2 %vm1105_vm1, %v3002_v25 }
 0x45c   : > { %v2174_v48 = vadd.f32 %v7735_v4, %v1947_v56  ;;  %v7745_v4 = vld [vmem:[#allocation36_spill] sm:$0xff] }
 0x45d   : > { %v2726_v5 = vpop.f32.mrf.mxu3 }
 0x45e   : > { %v6297_v8 = vpop.f32.mrf.mxu2  ;;  %v6299_v39 = vadd.f32 %v2726_v5, %v2576_v12  ;;  %v2325_v14 = vpop.f32.mrf.mxu1  ;;  %v7739_v5 = vld [vmem:[#allocation37_spill] sm:$0xff] }
 0x45f   : > { %v2375_v52 = vadd.f32 %v2325_v14, %v2173_v46 }
 0x461   : > { %4825 = vmatmul.msk.f32.gmra.mxu1 %vm1105_vm1, %v7731_v24  ;;  %v2577_v9 = vadd.f32 %v6223_v16, %v2375_v52  ;;  %v7737_v16 = vld [vmem:[#allocation14_spill] sm:$0xff] }
 0x462   : > { %4885 = vmatmul.msk.f32.gmra.mxu3 %vm1105_vm1, %v7732_v47  ;;  %v1950_v17 = vadd.f32 %v7737_v16, %v7736_v21  ;;  %v7742_v24 = vld [vmem:[#allocation34_spill] sm:$0xff] }
 0x463   : > { %4861 = vmatmul.msk.f32.gmra.mxu2 %vm1105_vm1, %v3003_v32 }
 0x464   : > { %v2175_v37 = vadd.f32 %v7738_v20, %v1950_v17  ;;  %v3007_v20 = vld [vmem:[#allocation3 + $0x81] sm:$0xff] }
 0x465   : > { %v2729_v10 = vpop.f32.mrf.mxu3 }
 0x466   : > { %v6310_v59 = vpop.f32.mrf.mxu2  ;;  %v6312_v22 = vadd.f32 %v2729_v10, %v2577_v9  ;;  %v2328_v3 = vpop.f32.mrf.mxu1  ;;  %v7743_v9 = vld [vmem:[#allocation41_spill] sm:$0xff]  ;;  %v7744_v10 = vld [vmem:[#allocation42_spill] sm:$0xff] }
 0x467   : > { %v2376_v45 = vadd.f32 %v2328_v3, %v2174_v48 }
 0x469   : > { %4826 = vmatmul.msk.f32.gmra.mxu1 %vm1105_vm1, %v6018_v15  ;;  %v2578_v2 = vadd.f32 %v6236_v23, %v2376_v45  ;;  %v7741_v23 = vld [vmem:[#allocation15_spill] sm:$0xff] }
 0x46a   : > { %4886 = vmatmul.msk.f32.gmra.mxu3 %vm1105_vm1, %v6020_v41  ;;  %v3005_v41 = vld [vmem:[#allocation3 + $0x71] sm:$0xff]  ;;  %v1953_v46 = vadd.f32 %v7741_v23, %v7740_v31 }
 0x46b   : > { %4862 = vmatmul.msk.f32.gmra.mxu2 %vm1105_vm1, %v3004_v62  ;;  %v7747_v62 = vld [vmem:[#allocation38_spill] sm:$0xff] }
 0x46c   : > { %v2176_v32 = vadd.f32 %v7742_v24, %v1953_v46  ;;  %v7751_v24 = vld [vmem:[#allocation45_spill] sm:$0xff] }
 0x46d   : > { %v2732_v25 = vpop.f32.mrf.mxu3 }
 0x46e   : > { %v6323_v60 = vpop.f32.mrf.mxu2  ;;  %v6325_v33 = vadd.f32 %v2732_v25, %v2578_v2  ;;  %v2331_v12 = vpop.f32.mrf.mxu1 }
 0x46f   : > { %v2377_v15 = vadd.f32 %v2331_v12, %v2175_v37  ;;  %v7748_v37 = vld [vmem:[#allocation40_spill] sm:$0xff] }
 0x471   : > { %4827 = vmatmul.msk.f32.gmra.mxu1 %vm1105_vm1, %v7739_v5  ;;  %v2579_v14 = vadd.f32 %v6254_v29, %v2377_v15  ;;  %v7746_v29 = vld [vmem:[#allocation17_spill] sm:$0xff] }
 0x472   : > { %4887 = vmatmul.msk.f32.gmra.mxu3 %vm1105_vm1, %v6036_v28  ;;  %v3006_v28 = vld [vmem:[#allocation3 + $0x79] sm:$0xff]  ;;  %v1956_v48 = vadd.f32 %v7746_v29, %v7745_v4 }
 0x473   : > { %4863 = vmatmul.msk.f32.gmra.mxu2 %vm1105_vm1, %v3005_v41  ;;  %v7750_v41 = vld [vmem:[#allocation43_spill] sm:$0xff] }
 0x474   : > { %v2177_v21 = vadd.f32 %v7747_v62, %v1956_v48  ;;  %v3622_v62 = vld [vmem:[%s7664_s5 + $0xf0] sm:$0xff] }
 0x475   : > { %v2735_v52 = vpop.f32.mrf.mxu3  ;;  %3898 = vmatpush.msra.mxu1 %v3622_v62 }
 0x476   : > { %v6336_v47 = vpop.f32.mrf.mxu2  ;;  %v6338_v11 = vadd.f32 %v2735_v52, %v2579_v14  ;;  %v2334_v1 = vpop.f32.mrf.mxu1  ;;  %v3204_v52 = vld [vmem:[#allocation3 + $0x5a] sm:$0xff] }
 0x477   : > { %v2378_v56 = vadd.f32 %v2334_v1, %v2176_v32 }
 0x479   : > { %4828 = vmatmul.msk.f32.gmra.mxu1 %vm1105_vm1, %v7743_v9  ;;  %v2580_v3 = vadd.f32 %v6271_v55, %v2378_v56  ;;  %v7749_v55 = vld [vmem:[#allocation20_spill] sm:$0xff]  ;;  %v7753_v9 = vld [vmem:[#allocation46_spill] sm:$0xff] }
 0x47a   : > { %4888 = vmatmul.msk.f32.gmra.mxu3 %vm1105_vm1, %v7744_v10  ;;  %v1959_v12 = vadd.f32 %v7749_v55, %v7748_v37 }
 0x47b   : > { %4864 = vmatmul.msk.f32.gmra.mxu2 %vm1105_vm1, %v3006_v28 }
 0x47c   : > { %v2178_v31 = vadd.f32 %v7750_v41, %v1959_v12  ;;  %v2802_v41 = vld [vmem:[#allocation3 + $0x68] sm:$0xff] }
 0x47d   : > { %v2738_v45 = vpop.f32.mrf.mxu3 }
 0x47e   : > { %v6349_v16 = vpop.f32.mrf.mxu2  ;;  %v6351_v17 = vadd.f32 %v2738_v45, %v2580_v3  ;;  %v2337_v2 = vpop.f32.mrf.mxu1  ;;  %v2801_v3 = vld [vmem:[#allocation3 + $0x60] sm:$0xff] }
 0x47f   : > { %v2379_v25 = vadd.f32 %v2337_v2, %v2177_v21  ;;  %v3205_v45 = vld [vmem:[#allocation3 + $0x62] sm:$0xff] }
 0x480   : > { %v7754_v21 = vld [vmem:[#allocation47_spill] sm:$0xff] }
 0x481   : > { %4829 = vmatmul.msk.f32.gmra.mxu1 %vm1105_vm1, %v6075_v34  ;;  %v2581_v15 = vadd.f32 %v6284_v26, %v2379_v25  ;;  %v7752_v26 = vld [vmem:[#allocation23_spill] sm:$0xff] }
 0x482   : > { %4889 = vmatmul.msk.f32.gmra.mxu3 %vm1105_vm1, %v6077_v51  ;;  %v4974_v51 = vld [vmem:[#allocation3 + $0x89] sm:$0xff]  ;;  %v1962_v32 = vadd.f32 %v7752_v26, %v7751_v24 }
 0x483   : > { %4865 = vmatmul.msk.f32.gmra.mxu2 %vm1105_vm1, %v3007_v20  ;;  %v7755_v2 = vld [vmem:[#allocation27_spill] sm:$0xff] }
 0x484   : > { %v2179_v28 = vadd.f32 %v7753_v9, %v1962_v32  ;;  %v1965_v25 = vadd.f32 %v7755_v2, %v7754_v21  ;;  %v3684_v32 = vld [vmem:[%s7664_s5 + $0x2e0] sm:$0xff] }
 0x485   : > { %v2741_v5 = vpop.f32.mrf.mxu3  ;;  %v3620_v9 = vld [vmem:[%s7664_s5 + $0xe0] sm:$0xff] }
 0x486   : > { %v6362_v23 = vpop.f32.mrf.mxu2  ;;  %v6364_v46 = vadd.f32 %v2741_v5, %v2581_v15  ;;  %v2340_v14 = vpop.f32.mrf.mxu1  ;;  %v2180_v55 = vadd.f32 %v6097_v61, %v1965_v25  ;;  %v7757_v61 = vld [vmem:[#allocation32_spill] sm:$0xff]  ;;  %3899 = vmatpush.msra.mxu1 %v3620_v9  ;;  %v7759_v25 = vld [vmem:[#allocation49_spill] sm:$0xff] }
 0x487   : > { %v2380_v34 = vadd.f32 %v2340_v14, %v2178_v31  ;;  %v3206_v31 = vld [vmem:[#allocation3 + $0x6a] sm:$0xff] }
 0x488   : > { %v7756_v14 = vld [vmem:[#allocation48_spill] sm:$0xff] }
 0x489   : > { %4830 = vmatmul.msk.f32.gmra.mxu1 %vm1105_vm1, %v6089_v18  ;;  %v2582_v1 = vadd.f32 %v6297_v8, %v2380_v34  ;;  %v3654_v18 = vld [vmem:[%s7664_s5 + $0x1f0] sm:$0xff]  ;;  %v1968_v34 = vadd.f32 %v7757_v61, %v7756_v14  ;;  %v2805_v14 = vld [vmem:[#allocation3 + $0x80] sm:$0xff] }
 0x48a   : > { %4890 = vmatmul.msk.f32.gmra.mxu3 %vm1105_vm1, %v3204_v52  ;;  %3924 = vmatpush.msrb.mxu2 %v3654_v18  ;;  %v3686_v8 = vld [vmem:[%s7664_s5 + $0x2f0] sm:$0xff]  ;;  %v3209_v61 = vld [vmem:[#allocation3 + $0x82] sm:$0xff] }
 0x48b   : > { %4866 = vmatmul.msk.f32.gmra.mxu2 %vm1105_vm1, %v4974_v51  ;;  %3950 = vmatpush.msra.mxu3 %v3686_v8  ;;  %v2181_v24 = vadd.f32 %v6115_v40, %v1968_v34  ;;  %v7758_v40 = vld [vmem:[#allocation35_spill] sm:$0xff]  ;;  %v3650_v8 = vld [vmem:[%s7664_s5 + $0x1d0] sm:$0xff] }
 0x48d   : > { %v2744_v56 = vpop.f32.mrf.mxu3  ;;  %3951 = vmatpush.msra.mxu3 %v3684_v32 }
 0x48e   : > { %v6374_v10 = vpop.f32.mrf.mxu2  ;;  %v6376_v4 = vadd.f32 %v2744_v56, %v2582_v1  ;;  %v2343_v29 = vpop.f32.mrf.mxu1 }
 0x48f   : > { %v2381_v48 = vadd.f32 %v2343_v29, %v2179_v28  ;;  %v2803_v28 = vld [vmem:[#allocation3 + $0x70] sm:$0xff]  ;;  %v1971_v29 = vadd.f32 %v7758_v40, %v6117_v49  ;;  %v2804_v49 = vld [vmem:[#allocation3 + $0x78] sm:$0xff]  ;;  %v2806_v40 = vld [vmem:[#allocation3 + $0x88] sm:$0xff] }
 0x491   : > { %4831 = vmatmul.msk.f32.gmra.mxu1 %vm1105_vm1, %v2801_v3  ;;  %v2583_v20 = vadd.f32 %v6310_v59, %v2381_v48  ;;  %v3652_v59 = vld [vmem:[%s7664_s5 + $0x1e0] sm:$0xff]  ;;  %v2182_v3 = vadd.f32 %v6125_v30, %v1971_v29  ;;  %v3618_v30 = vld [vmem:[%s7664_s5 + $0xd0] sm:$0xff] }
 0x492   : > { %4891 = vmatmul.msk.f32.gmra.mxu3 %vm1105_vm1, %v3205_v45  ;;  %3925 = vmatpush.msrb.mxu2 %v3652_v59  ;;  %v3210_v29 = vld [vmem:[#allocation3 + $0x8a] sm:$0xff] }
 0x493   : > { %4867 = vmatmul.msk.f32.gmra.mxu2 %vm1105_vm1, %v5736_v6  ;;  %3900 = vmatpush.msra.mxu1 %v3618_v30  ;;  %v2808_v30 = vld [vmem:[#allocation3 + $0x98] sm:$0xff] }
 0x494   : > { %3926 = vmatpush.msrb.mxu2 %v3650_v8 }
 0x495   : > { %v2747_v37 = vpop.f32.mrf.mxu3 }
 0x496   : > { %v2563_v12 = vpop.f32.mrf.mxu2  ;;  %v6395_v6 = vadd.f32 %v2747_v37, %v2583_v20  ;;  %v2346_v15 = vpop.f32.mrf.mxu1  ;;  %v7760_v20 = vld [vmem:[#allocation39_spill] sm:$0xff] }
 0x497   : > { %v2382_v5 = vadd.f32 %v2346_v15, %v2180_v55  ;;  %v1974_v37 = vadd.f32 %v7760_v20, %v7759_v25  ;;  %v7761_v15 = vld [vmem:[#allocation50_spill] sm:$0xff]  ;;  %v3678_v25 = vld [vmem:[%s7664_s5 + $0x2b0] sm:$0xff] }
 0x498   : > { %v3614_v20 = vld [vmem:[%s7664_s5 + $0xb0] sm:$0xff] }
 0x499   : > { %4832 = vmatmul.msk.f32.gmra.mxu1 %vm1105_vm1, %v2802_v41  ;;  %v2584_v52 = vadd.f32 %v6323_v60, %v2382_v5  ;;  %v3207_v60 = vld [vmem:[#allocation3 + $0x72] sm:$0xff]  ;;  %v2183_v5 = vadd.f32 %v7761_v15, %v1974_v37  ;;  %v3212_v37 = vld [vmem:[#allocation3 + $0x9a] sm:$0xff]  ;;  %v3016_v15 = vld [vmem:[#allocation3 + $0xc9] sm:$0xff] }
 0x49a   : > { %4892 = vmatmul.msk.f32.gmra.mxu3 %vm1105_vm1, %v3206_v31 }
 0x49b   : > { %4868 = vmatmul.msk.f32.gmra.mxu2 %vm1105_vm1, %v5794_v19 }
 0x49d   : > { %v2750_v51 = vpop.f32.mrf.mxu3 }
 0x49e   : > { %v6408_v26 = vadd.f32 %v2750_v51, %v2584_v52  ;;  %v2566_v19 = vpop.f32.mrf.mxu2  ;;  %v2349_v1 = vpop.f32.mrf.mxu1  ;;  %v7762_v52 = vld [vmem:[#allocation44_spill] sm:$0xff] }
 0x49f   : > { %v2383_v56 = vadd.f32 %v2349_v1, %v2181_v24  ;;  %v1977_v51 = vadd.f32 %v7762_v52, %v6146_v58  ;;  %v7763_v19 = vld [vmem:[#allocation51_spill] sm:$0xff]  ;;  %v3646_v58 = vld [vmem:[%s7664_s5 + $0x1b0] sm:$0xff] }
 0x4a0   : > { %v3610_v52 = vld [vmem:[%s7664_s5 + $0x90] sm:$0xff] }
 0x4a1   : > { %4833 = vmatmul.msk.f32.gmra.mxu1 %vm1105_vm1, %v2803_v28  ;;  %v2585_v48 = vadd.f32 %v6336_v47, %v2383_v56  ;;  %v3208_v47 = vld [vmem:[#allocation3 + $0x7a] sm:$0xff]  ;;  %v2184_v1 = vadd.f32 %v7763_v19, %v1977_v51 }
 0x4a2   : > { %4893 = vmatmul.msk.f32.gmra.mxu3 %vm1105_vm1, %v3207_v60  ;;  %v3616_v60 = vld [vmem:[%s7664_s5 + $0xc0] sm:$0xff] }
 0x4a3   : > { %4869 = vmatmul.msk.f32.gmra.mxu2 %vm1105_vm1, %v5819_v35  ;;  %v3682_v35 = vld [vmem:[%s7664_s5 + $0x2d0] sm:$0xff]  ;;  %3901 = vmatpush.msra.mxu1 %v3616_v60  ;;  %v3608_v51 = vld [vmem:[%s7664_s5 + $0x80] sm:$0xff]  ;;  %v2810_v60 = vld [vmem:[#allocation3 + $0xa8] sm:$0xff] }
 0x4a4   : > { %3952 = vmatpush.msra.mxu3 %v3682_v35  ;;  %v3015_v35 = vld [vmem:[#allocation3 + $0xc1] sm:$0xff] }
 0x4a5   : > { %v2753_v18 = vpop.f32.mrf.mxu3  ;;  %3902 = vmatpush.msra.mxu1 %v3614_v20  ;;  %v3638_v20 = vld [vmem:[%s7664_s5 + $0x170] sm:$0xff] }
 0x4a6   : > { %v6424_v45 = vadd.f32 %v2753_v18, %v2585_v48  ;;  %v2352_v62 = vpop.f32.mrf.mxu1  ;;  %v6432_v2 = vpop.f32.mrf.mxu2 }
 0x4a7   : > { %v2384_v21 = vadd.f32 %v2352_v62, %v2182_v3  ;;  %v2807_v62 = vld [vmem:[#allocation3 + $0x90] sm:$0xff] }
 0x4a9   : > { %4834 = vmatmul.msk.f32.gmra.mxu1 %vm1105_vm1, %v2804_v49  ;;  %v2586_v55 = vadd.f32 %v6349_v16, %v2384_v21  ;;  %v3680_v16 = vld [vmem:[%s7664_s5 + $0x2c0] sm:$0xff]  ;;  %v3211_v21 = vld [vmem:[#allocation3 + $0x92] sm:$0xff] }
 0x4aa   : > { %4894 = vmatmul.msk.f32.gmra.mxu3 %vm1105_vm1, %v3208_v47 }
 0x4ab   : > { %4870 = vmatmul.msk.f32.gmra.mxu2 %vm1105_vm1, %v5908_v27  ;;  %v3648_v27 = vld [vmem:[%s7664_s5 + $0x1c0] sm:$0xff]  ;;  %3953 = vmatpush.msra.mxu3 %v3680_v16 }
 0x4ac   : > { %3927 = vmatpush.msrb.mxu2 %v3648_v27  ;;  %v3213_v16 = vld [vmem:[#allocation3 + $0xa2] sm:$0xff] }
 0x4ad   : > { %v2756_v12 = vpop.f32.mrf.mxu3  ;;  %3954 = vmatpush.msra.mxu3 %v3678_v25  ;;  %v3640_v25 = vld [vmem:[%s7664_s5 + $0x180] sm:$0xff] }
 0x4ae   : > { %v6445_v41 = vadd.f32 %v2756_v12, %v2586_v55  ;;  %v2355_v31 = vpop.f32.mrf.mxu1  ;;  %v6455_v34 = vpop.f32.mrf.mxu2  ;;  %3928 = vmatpush.msrb.mxu2 %v3646_v58  ;;  %v3644_v55 = vld [vmem:[%s7664_s5 + $0x1a0] sm:$0xff] }
 0x4af   : > { %v2385_v59 = vadd.f32 %v2355_v31, %v2183_v5  ;;  %v3676_v12 = vld [vmem:[%s7664_s5 + $0x2a0] sm:$0xff] }
 0x4b0   : > { %v3612_v5 = vld [vmem:[%s7664_s5 + $0xa0] sm:$0xff]  ;;  %3955 = vmatpush.msra.mxu3 %v3676_v12  ;;  %3929 = vmatpush.msrb.mxu2 %v3644_v55 }
 0x4b1   : > { %4835 = vmatmul.msk.f32.gmra.mxu1 %vm1105_vm1, %v2805_v14  ;;  %v2587_v24 = vadd.f32 %v6362_v23, %v2385_v59  ;;  %v3600_v58 = vld [vmem:[%s7664_s5 + $0x40] sm:$0xff] }
 0x4b2   : > { %4895 = vmatmul.msk.f32.gmra.mxu3 %vm1105_vm1, %v3209_v61  ;;  %3903 = vmatpush.msra.mxu1 %v3612_v5  ;;  %v2809_v61 = vld [vmem:[#allocation3 + $0xa0] sm:$0xff] }
 0x4b3   : > { %4871 = vmatmul.msk.f32.gmra.mxu2 %vm1105_vm1, %v6161_v7  ;;  %v7764_v7 = vld [vmem:[#allocation52_spill] sm:$0xff] }
 0x4b4   : > { %3904 = vmatpush.msra.mxu1 %v3610_v52 }
 0x4b5   : > { %v2759_v32 = vpop.f32.mrf.mxu3 }
 0x4b6   : > { %v6463_v56 = vadd.f32 %v2759_v32, %v2587_v24  ;;  %v2358_v9 = vpop.f32.mrf.mxu1  ;;  %v6476_v48 = vpop.f32.mrf.mxu2  ;;  %3905 = vmatpush.msra.mxu1 %v3608_v51  ;;  %v3606_v32 = vld [vmem:[%s7664_s5 + $0x70] sm:$0xff] }
 0x4b7   : > { %v2386_v28 = vadd.f32 %v2358_v9, %v2184_v1  ;;  %v3604_v9 = vld [vmem:[%s7664_s5 + $0x60] sm:$0xff] }
 0x4b8   : > { %3906 = vmatpush.msra.mxu1 %v3606_v32 }
 0x4b9   : > { %4836 = vmatmul.msk.f32.gmra.mxu1 %vm1105_vm1, %v2806_v40  ;;  %v2588_v23 = vadd.f32 %v6374_v10, %v2386_v28  ;;  %v3642_v40 = vld [vmem:[%s7664_s5 + $0x190] sm:$0xff] }
 0x4ba   : > { %4896 = vmatmul.msk.f32.gmra.mxu3 %vm1105_vm1, %v3210_v29  ;;  %3907 = vmatpush.msra.mxu1 %v3604_v9  ;;  %v3674_v29 = vld [vmem:[%s7664_s5 + $0x290] sm:$0xff]  ;;  %v4968_v9 = vld [vmem:[%s7663_s4] ss:$0 sm:$0xff] }
 0x4bb   : > { %4872 = vmatmul.msk.f32.gmra.mxu2 %vm1105_vm1, %v7764_v7  ;;  %3956 = vmatpush.msra.mxu3 %v3674_v29 }
 0x4bc   : > { %3930 = vmatpush.msrb.mxu2 %v3642_v40  ;;  %v3218_v40 = vld [vmem:[#allocation3 + $0xca] sm:$0xff] }
 0x4bd   : > { %v2762_v18 = vpop.f32.mrf.mxu3 }
 0x4be   : > { %v6478_v3 = vadd.f32 %v2762_v18, %v2588_v23  ;;  %v2361_v8 = vpop.f32.mrf.mxu1  ;;  %v6483_v47 = vpop.f32.mrf.mxu2  ;;  %v3598_v23 = vld [vmem:[%s7664_s5 + $0x30] sm:$0xff]  ;;  %3931 = vmatpush.msrb.mxu2 %v3640_v25 }
 0x4c0   : > { %3932 = vmatpush.msrb.mxu2 %v3638_v20  ;;  %v3660_v20 = vld [vmem:[%s7664_s5 + $0x220] sm:$0xff] }
 0x4c1   : > { %4837 = vmatmul.msk.f32.gmra.mxu1 %vm1105_vm1, %v2807_v62 }
 0x4c2   : > { %4897 = vmatmul.msk.f32.gmra.mxu3 %vm1105_vm1, %v3211_v21  ;;  %v3596_v21 = vld [vmem:[%s7664_s5 + $0x20] sm:$0xff] }
 0x4c3   : > { %4873 = vmatmul.msk.f32.gmra.mxu2 %vm1105_vm1, %v3015_v35 }
 0x4c5   : > { %v2765_v49 = vpop.f32.mrf.mxu3 }
 0x4c6   : > { %v2364_v10 = vpop.f32.mrf.mxu1  ;;  %v6504_v14 = vpop.f32.mrf.mxu2 }
 0x4c9   : > { %4838 = vmatmul.msk.f32.gmra.mxu1 %vm1105_vm1, %v2808_v30 }
 0x4ca   : > { %4898 = vmatmul.msk.f32.gmra.mxu3 %vm1105_vm1, %v3212_v37  ;;  %v3670_v37 = vld [vmem:[%s7664_s5 + $0x270] sm:$0xff] }
 0x4cb   : > { %4874 = vmatmul.msk.f32.gmra.mxu2 %vm1105_vm1, %v3016_v15 }
 0x4cd   : > { %v2768_v31 = vpop.f32.mrf.mxu3 }
 0x4ce   : > { %v2907_v59 = vpop.f32.mrf.mxu1  ;;  %v5040_v31 = vmov 0  }
 0x4cf   : > { %v2973_v27 = vadd.f32 %v2907_v59, %v6199_v63  ;;  %4953 = vset.pattern.permute.xlu0 %v5040_v31  ;;  %v3880_v59 = vld [vmem:[%s7668_s9] sm:$0xff]  ;;  %4954 = vset.pattern.permute.xlu1 %v5040_v31 }
 0x4d0   : > { %3885 = vperm.xlu0 %4953, %v3880_v59   ;;  %v3624_v31 = vld [vmem:[%s7664_s5 + $0x100] sm:$0xff] }
 0x4d1   : > { %4839 = vmatmul.msk.f32.gmra.mxu1 %vm1105_vm1, %v2809_v61  ;;  %v3175_v24 = vadd.f32 %v6432_v2, %v2973_v27  ;;  %v3602_v2 = vld [vmem:[%s7664_s5 + $0x50] sm:$0xff]  ;;  %v3217_v27 = vld [vmem:[#allocation3 + $0xc2] sm:$0xff] }
 0x4d2   : > { %4899 = vmatmul.msk.f32.gmra.mxu3 %vm1105_vm1, %v3213_v16  ;;  %3908 = vmatpush.msra.mxu1 %v3602_v2  ;;  %v2814_v2 = vld [vmem:[#allocation3 + $0xc8] sm:$0xff]  ;;  %v3656_v59 = vld [vmem:[%s7664_s5 + $0x200] sm:$0xff] }
 0x4d4   : > { %3909 = vmatpush.msra.mxu1 %v3600_v58 }
 0x4d5   : > { %v3311_v63 = vpop.f32.mrf.mxu3 }
 0x4d6   : > { %v3377_v19 = vadd.f32 %v3311_v63, %v3175_v24  ;;  %v2910_v1 = vpop.f32.mrf.mxu1  ;;  %3910 = vmatpush.msra.mxu1 %v3598_v23 }
 0x4d7   : > { %v2974_v28 = vadd.f32 %v2910_v1, %v6212_v13  ;;  %v6534_v13 = vpop.f32.mrf.mxu2 }
 0x4d8   : > { %3399 = vst [vmem:[#allocation4] sm:$0xff] %v3377_v19  ;;  %3911 = vmatpush.msra.mxu1 %v3596_v21  ;;  %v3718_v21 = vld [vmem:[%s7664_s5 + $0x3f0] sm:$0xff] }
 0x4d9   : > { %4840 = vmatmul.msk.f32.gmra.mxu1 %vm1105_vm1, %v2810_v60  ;;  %v3176_v7 = vadd.f32 %v6455_v34, %v2974_v28  ;;  %v3594_v34 = vld [vmem:[%s7664_s5 + $0x10] sm:$0xff]  ;;  %v3668_v28 = vld [vmem:[%s7664_s5 + $0x260] sm:$0xff] }
 0x4da   : > { %4900 = vmatmul.msk.f32.gmra.mxu3 %vm1105_vm1, %v5910_v0  ;;  %3912 = vmatpush.msra.mxu1 %v3594_v34  ;;  %v3632_v34 = vld [vmem:[%s7664_s5 + $0x140] sm:$0xff] }
 0x4dd   : > { %v3314_v0 = vpop.f32.mrf.mxu3 }
 0x4de   : > { %v3378_v18 = vadd.f32 %v3314_v0, %v3176_v7  ;;  %v2913_v8 = vpop.f32.mrf.mxu1 }
 0x4df   : > { %v2975_v62 = vadd.f32 %v2913_v8, %v6225_v53  ;;  %v3592_v53 = vld [vmem:[%s7664_s5] sm:$0xff]  ;;  %v6558_v49 = vpop.f32.mrf.mxu2  ;;  %v3634_v8 = vld [vmem:[%s7664_s5 + $0x150] sm:$0xff] }
 0x4e0   : > { %3400 = vst [vmem:[#allocation4 + $0x8] sm:$0xff] %v3378_v18  ;;  %3913 = vmatpush.msra.mxu1 %v3592_v53  ;;  %v3716_v53 = vld [vmem:[%s7664_s5 + $0x3e0] sm:$0xff] }
 0x4e1   : > { %4841 = vmatmul.msk.f32.gmra.mxu1 %vm1105_vm1, %v6240_v36  ;;  %v3177_v35 = vadd.f32 %v6476_v48, %v2975_v62  ;;  %v3672_v48 = vld [vmem:[%s7664_s5 + $0x280] sm:$0xff]  ;;  %v3666_v62 = vld [vmem:[%s7664_s5 + $0x250] sm:$0xff] }
 0x4e2   : > { %4901 = vmatmul.msk.f32.gmra.mxu3 %vm1105_vm1, %v6242_v44  ;;  %3976 = vmatpush.msrb.mxu1 %v3718_v21  ;;  %v3690_v21 = vld [vmem:[%s7664_s5 + $0x310] sm:$0xff] }
 0x4e3   : > { %3957 = vmatpush.msra.mxu3 %v3672_v48  ;;  %v3628_v48 = vld [vmem:[%s7664_s5 + $0x120] sm:$0xff] }
 0x4e4   : > { %3977 = vmatpush.msrb.mxu1 %v3716_v53 }
 0x4e5   : > { %v3317_v10 = vpop.f32.mrf.mxu3  ;;  %3958 = vmatpush.msra.mxu3 %v3670_v37  ;;  %v3712_v37 = vld [vmem:[%s7664_s5 + $0x3c0] sm:$0xff] }
 0x4e6   : > { %v3379_v30 = vadd.f32 %v3317_v10, %v3177_v35  ;;  %v2916_v36 = vpop.f32.mrf.mxu1  ;;  %v3664_v35 = vld [vmem:[%s7664_s5 + $0x240] sm:$0xff]  ;;  %v3630_v10 = vld [vmem:[%s7664_s5 + $0x130] sm:$0xff] }
 0x4e7   : > { %v2976_v44 = vadd.f32 %v2916_v36, %v6238_v57  ;;  %v6578_v15 = vpop.f32.mrf.mxu2  ;;  %v3421_v61 = vld [vmem:[#allocation4] ss:$2 sm:$0xff]  ;;  %v3425_v16 = vld [vmem:[#allocation4 + $0x1] ss:$2 sm:$0xff]  ;;  %3959 = vmatpush.msra.mxu3 %v3668_v28  ;;  %v3714_v36 = vld [vmem:[%s7664_s5 + $0x3d0] sm:$0xff] }
 0x4e8   : > { %3401 = vst [vmem:[#allocation4 + $0x10] sm:$0xff] %v3379_v30  ;;  %v3428_v19 = vmax.f32 %v3421_v61, %v3425_v16  ;;  %v3662_v30 = vld [vmem:[%s7664_s5 + $0x230] sm:$0xff]  ;;  %3978 = vmatpush.msrb.mxu1 %v3714_v36  ;;  %v3881_v16 = vld [vmem:[%s7668_s9 + $0x8] sm:$0xff] }
 0x4e9   : > { %4842 = vmatmul.msk.f32.gmra.mxu1 %vm1105_vm1, %v6258_v43  ;;  %v3178_v57 = vadd.f32 %v6483_v47, %v2976_v44  ;;  %3960 = vmatpush.msra.mxu3 %v3666_v62  ;;  %v3750_v36 = vld [vmem:[%s7664_s5 + $0x4f0] sm:$0xff] }
 0x4ea   : > { %4902 = vmatmul.msk.f32.gmra.mxu3 %vm1105_vm1, %v6260_v42  ;;  %v2813_v42 = vld [vmem:[#allocation3 + $0xc0] sm:$0xff]  ;;  %3979 = vmatpush.msrb.mxu1 %v3712_v37 }
 0x4eb   : > { %3961 = vmatpush.msra.mxu3 %v3664_v35  ;;  %3890 = vperm.xlu1 %4954, %v3881_v16   ;;  %v3780_v37 = vld [vmem:[%s7664_s5 + $0x5e0] sm:$0xff] }
 0x4ed   : > { %v3320_v55 = vpop.f32.mrf.mxu3  ;;  %3962 = vmatpush.msra.mxu3 %v3662_v30 }
 0x4ee   : > { %v3380_v12 = vadd.f32 %v3320_v55, %v3178_v57  ;;  %v2919_v5 = vpop.f32.mrf.mxu1 }
 0x4ef   : > { %v2977_v43 = vadd.f32 %v2919_v5, %v6256_v50  ;;  %v6597_v60 = vpop.f32.mrf.mxu2  ;;  %3963 = vmatpush.msra.mxu3 %v3660_v20  ;;  %v3658_v5 = vld [vmem:[%s7664_s5 + $0x210] sm:$0xff]  ;;  %v3748_v20 = vld [vmem:[%s7664_s5 + $0x4e0] sm:$0xff] }
 0x4f0   : > { %3402 = vst [vmem:[#allocation4 + $0x18] sm:$0xff] %v3380_v12 }
 0x4f1   : > { %4843 = vmatmul.msk.f32.gmra.mxu1 %vm1105_vm1, %v2813_v42  ;;  %v3179_v47 = vadd.f32 %v6504_v14, %v2977_v43  ;;  %v3636_v14 = vld [vmem:[%s7664_s5 + $0x160] sm:$0xff]  ;;  %3964 = vmatpush.msra.mxu3 %v3658_v5  ;;  %v3710_v43 = vld [vmem:[%s7664_s5 + $0x3b0] sm:$0xff] }
 0x4f2   : > { %4903 = vmatmul.msk.f32.gmra.mxu3 %vm1105_vm1, %v3217_v27  ;;  %3933 = vmatpush.msrb.mxu2 %v3636_v14  ;;  %v3706_v42 = vld [vmem:[%s7664_s5 + $0x390] sm:$0xff] }
 0x4f3   : > { %3980 = vmatpush.msrb.mxu1 %v3710_v43  ;;  %3965 = vmatpush.msra.mxu3 %v3656_v59  ;;  %v3776_v59 = vld [vmem:[%s7664_s5 + $0x5c0] sm:$0xff] }
 0x4f4   : > { %3934 = vmatpush.msrb.mxu2 %v3634_v8  ;;  %v3692_v8 = vld [vmem:[%s7664_s5 + $0x320] sm:$0xff] }
 0x4f5   : > { %v3323_v52 = vpop.f32.mrf.mxu3  ;;  %v3808_v43 = vld [vmem:[%s7664_s5 + $0x6c0] sm:$0xff] }
 0x4f6   : > { %v3381_v51 = vadd.f32 %v3323_v52, %v3179_v47  ;;  %v2922_v32 = vpop.f32.mrf.mxu1  ;;  %3935 = vmatpush.msrb.mxu2 %v3632_v34  ;;  %v3704_v52 = vld [vmem:[%s7664_s5 + $0x380] sm:$0xff] }
 0x4f7   : > { %v3423_v24 = vld [vmem:[#allocation4 + $0x10] ss:$2 sm:$0xff]  ;;  %v3427_v63 = vld [vmem:[#allocation4 + $0x11] ss:$2 sm:$0xff]  ;;  %v2978_v50 = vadd.f32 %v2922_v32, %v6273_v54  ;;  %v3700_v32 = vld [vmem:[%s7664_s5 + $0x360] sm:$0xff] }
 0x4f8   : > { %v3429_v1 = vmax.f32 %v3423_v24, %v3427_v63  ;;  %3403 = vst [vmem:[#allocation4 + $0x20] sm:$0xff] %v3381_v51  ;;  %3936 = vmatpush.msrb.mxu2 %v3630_v10  ;;  %v3688_v10 = vld [vmem:[%s7664_s5 + $0x300] sm:$0xff] }
 0x4f9   : > { %4844 = vmatmul.msk.f32.gmra.mxu1 %vm1105_vm1, %v2814_v2  ;;  %v3180_v54 = vadd.f32 %v6534_v13, %v2978_v50 }
 0x4fa   : > { %v3430_v29 = vmax.f32 %v3428_v19, %v3429_v1  ;;  %4904 = vmatmul.msk.f32.gmra.mxu3 %vm1105_vm1, %v3218_v40  ;;  %3937 = vmatpush.msrb.mxu2 %v3628_v48  ;;  %v3698_v19 = vld [vmem:[%s7664_s5 + $0x350] sm:$0xff] }
 0x4fc   : > { %v3435_v58 = vadd.f32 %v4968_v9, %v3430_v29 }
 0x4fd   : > { %v3326_v7 = vpop.f32.mrf.mxu3 }
 0x4fe   : > { %v3382_v0 = vadd.f32 %v3326_v7, %v3180_v54  ;;  %v6602_v23 = vmax.f32 %v3435_v58, 0.0  ;;  %v2925_v18 = vpop.f32.mrf.mxu1  ;;  %v3694_v58 = vld [vmem:[%s7664_s5 + $0x330] sm:$0xff] }
 0x4ff   : > { %v2979_v13 = vadd.f32 %v2925_v18, %v6286_v38  ;;  %v6625_v38 = vpop.f32.mrf.mxu2  ;;  %v4969_v18 = vld [vmem:[%s7663_s4] ss:$0 sm:$0xff] }
 0x500   : > { %3404 = vst [vmem:[#allocation4 + $0x28] sm:$0xff] %v3382_v0 }
 0x501   : > { %3437 = vst [vmem:[#allocation5] sm:$0xff] %v6602_v23  ;;  %3914 = vmatmul.f32.vlgmr.msra.gmra.mxu1 %v6602_v23  ;;  %v3181_v44 = vadd.f32 %v6558_v49, %v2979_v13  ;;  %v3626_v49 = vld [vmem:[%s7664_s5 + $0x110] sm:$0xff] }
 0x502   : > { %3938 = vmatpush.msrb.mxu2 %v3626_v49  ;;  %v3810_v49 = vld [vmem:[%s7664_s5 + $0x6d0] sm:$0xff] }
 0x504   : > { %3939 = vmatpush.msrb.mxu2 %v3624_v31  ;;  %v3744_v31 = vld [vmem:[%s7664_s5 + $0x4c0] sm:$0xff] }
 0x505   : > { %v3329_v25 = vpop.f32.mrf.mxu3 }
 0x506   : > { %v3383_v57 = vadd.f32 %v3329_v25, %v3181_v44  ;;  %v2928_v55 = vpop.f32.mrf.mxu1  ;;  %v3814_v44 = vld [vmem:[%s7664_s5 + $0x6f0] sm:$0xff]  ;;  %4002 = vmatpush.msra.mxu2 %v3750_v36  ;;  %v3760_v36 = vld [vmem:[%s7664_s5 + $0x540] sm:$0xff] }
 0x507   : > { %v2980_v12 = vadd.f32 %v2928_v55, %v6299_v39  ;;  %v3708_v39 = vld [vmem:[%s7664_s5 + $0x3a0] sm:$0xff]  ;;  %v6669_v47 = vpop.f32.mrf.mxu2  ;;  %v3778_v55 = vld [vmem:[%s7664_s5 + $0x5d0] sm:$0xff] }
 0x508   : > { %3405 = vst [vmem:[#allocation4 + $0x30] sm:$0xff] %v3383_v57  ;;  %3981 = vmatpush.msrb.mxu1 %v3708_v39  ;;  %v3439_v50 = vld [vmem:[#allocation4 + $0x20] ss:$2 sm:$0xff]  ;;  %v3443_v9 = vld [vmem:[#allocation4 + $0x21] ss:$2 sm:$0xff]  ;;  %4003 = vmatpush.msra.mxu2 %v3748_v20  ;;  %v3746_v57 = vld [vmem:[%s7664_s5 + $0x4d0] sm:$0xff] }
 0x509   : > { %v3182_v27 = vadd.f32 %v6578_v15, %v2980_v12  ;;  %v3702_v15 = vld [vmem:[%s7664_s5 + $0x370] sm:$0xff] }
 0x50a   : > { %3982 = vmatpush.msrb.mxu1 %v3706_v42  ;;  %4004 = vmatpush.msra.mxu2 %v3746_v57 }
 0x50c   : > { %3983 = vmatpush.msrb.mxu1 %v3704_v52  ;;  %4005 = vmatpush.msra.mxu2 %v3744_v31  ;;  %v3790_v31 = vld [vmem:[%s7664_s5 + $0x630] sm:$0xff] }
 0x50d   : > { %v3332_v61 = vpop.f32.mrf.mxu3 }
 0x50e   : > { %v3384_v51 = vadd.f32 %v3332_v61, %v3182_v27  ;;  %v2931_v24 = vpop.f32.mrf.mxu1  ;;  %3984 = vmatpush.msrb.mxu1 %v3702_v15  ;;  %v3742_v27 = vld [vmem:[%s7664_s5 + $0x4b0] sm:$0xff] }
 0x50f   : > { %v2981_v63 = vadd.f32 %v2931_v24, %v6312_v22  ;;  %v3696_v22 = vld [vmem:[%s7664_s5 + $0x340] sm:$0xff]  ;;  %v6691_v2 = vpop.f32.mrf.mxu2  ;;  %4006 = vmatpush.msra.mxu2 %v3742_v27  ;;  %v3738_v15 = vld [vmem:[%s7664_s5 + $0x490] sm:$0xff] }
 0x510   : > { %3406 = vst [vmem:[#allocation4 + $0x38] sm:$0xff] %v3384_v51  ;;  %3985 = vmatpush.msrb.mxu1 %v3700_v32  ;;  %v3774_v51 = vld [vmem:[%s7664_s5 + $0x5b0] sm:$0xff]  ;;  %v3740_v24 = vld [vmem:[%s7664_s5 + $0x4a0] sm:$0xff] }
 0x511   : > { %v3183_v1 = vadd.f32 %v6597_v60, %v2981_v63  ;;  %v3446_v60 = vmax.f32 %v3439_v50, %v3443_v9  ;;  %4007 = vmatpush.msra.mxu2 %v3740_v24  ;;  %v3770_v32 = vld [vmem:[%s7664_s5 + $0x590] sm:$0xff]  ;;  %v3788_v27 = vld [vmem:[%s7664_s5 + $0x620] sm:$0xff] }
 0x512   : > { %3986 = vmatpush.msrb.mxu1 %v3698_v19  ;;  %v3736_v19 = vld [vmem:[%s7664_s5 + $0x480] sm:$0xff]  ;;  %v3802_v9 = vld [vmem:[%s7664_s5 + $0x690] sm:$0xff] }
 0x513   : > { %4008 = vmatpush.msra.mxu2 %v3738_v15  ;;  %v3786_v24 = vld [vmem:[%s7664_s5 + $0x610] sm:$0xff]  ;;  %v3752_v15 = vld [vmem:[%s7664_s5 + $0x500] sm:$0xff] }
 0x514   : > { %3987 = vmatpush.msrb.mxu1 %v3696_v22  ;;  %v3768_v22 = vld [vmem:[%s7664_s5 + $0x580] sm:$0xff] }
 0x515   : > { %v3335_v14 = vpop.f32.mrf.mxu3  ;;  %4009 = vmatpush.msra.mxu2 %v3736_v19 }
 0x516   : > { %v3385_v28 = vadd.f32 %v3335_v14, %v3183_v1  ;;  %v2934_v54 = vpop.f32.mrf.mxu1  ;;  %3988 = vmatpush.msrb.mxu1 %v3694_v58  ;;  %v3804_v1 = vld [vmem:[%s7664_s5 + $0x6a0] sm:$0xff]  ;;  %v3766_v58 = vld [vmem:[%s7664_s5 + $0x570] sm:$0xff] }
 0x517   : > { %v3441_v40 = vld [vmem:[#allocation4 + $0x30] ss:$2 sm:$0xff]  ;;  %v3445_v29 = vld [vmem:[#allocation4 + $0x31] ss:$2 sm:$0xff]  ;;  %v2982_v0 = vadd.f32 %v2934_v54, %v6325_v33  ;;  %v6723_v48 = vpop.f32.mrf.mxu2 }
 0x518   : > { %v3447_v7 = vmax.f32 %v3441_v40, %v3445_v29  ;;  %3407 = vst [vmem:[#allocation4 + $0x40] sm:$0xff] %v3385_v28  ;;  %3989 = vmatpush.msrb.mxu1 %v3692_v8  ;;  %v3882_v28 = vld [vmem:[%s7668_s9 + $0x10] sm:$0xff] }
 0x519   : > { %v3184_v13 = vadd.f32 %v6625_v38, %v2982_v0  ;;  %v3782_v38 = vld [vmem:[%s7664_s5 + $0x5f0] sm:$0xff]  ;;  %3895 = vperm.xlu0 %4953, %v3882_v28   ;;  %v3732_v0 = vld [vmem:[%s7664_s5 + $0x460] sm:$0xff] }
 0x51a   : > { %v3448_v62 = vmax.f32 %v3446_v60, %v3447_v7  ;;  %3990 = vmatpush.msrb.mxu1 %v3690_v21  ;;  %4028 = vmatpush.msrb.mxu3 %v3782_v38  ;;  %v3734_v54 = vld [vmem:[%s7664_s5 + $0x470] sm:$0xff]  ;;  %v3876_v28 = vld [vmem:[%s7664_s5 + $0x8e0] sm:$0xff] }
 0x51b   : > { %4010 = vmatpush.msra.mxu2 %v3734_v54  ;;  %v3798_v7 = vld [vmem:[%s7664_s5 + $0x670] sm:$0xff]  ;;  %v3872_v54 = vld [vmem:[%s7664_s5 + $0x8c0] sm:$0xff] }
 0x51c   : > { %v3453_v34 = vadd.f32 %v4969_v18, %v3448_v62  ;;  %3991 = vmatpush.msrb.mxu1 %v3688_v10  ;;  %4029 = vmatpush.msrb.mxu3 %v3780_v37  ;;  %v3764_v18 = vld [vmem:[%s7664_s5 + $0x560] sm:$0xff]  ;;  %v3730_v8 = vld [vmem:[%s7664_s5 + $0x450] sm:$0xff] }
 0x51d   : > { %v3338_v33 = vpop.f32.mrf.mxu3  ;;  %4011 = vmatpush.msra.mxu2 %v3732_v0  ;;  %v3762_v62 = vld [vmem:[%s7664_s5 + $0x550] sm:$0xff] }
 0x51e   : > { %v3386_v35 = vadd.f32 %v3338_v33, %v3184_v13  ;;  %v6707_v53 = vmax.f32 %v3453_v34, 0.0  ;;  %v2937_v30 = vpop.f32.mrf.mxu1  ;;  %4054 = vmatpush.msra.mxu1 %v3814_v44  ;;  %4030 = vmatpush.msrb.mxu3 %v3778_v55  ;;  %v3794_v34 = vld [vmem:[%s7664_s5 + $0x650] sm:$0xff]  ;;  %v4970_v44 = vld [vmem:[%s7663_s4] ss:$0 sm:$0xff] }
 0x51f   : > { %v2983_v25 = vadd.f32 %v2937_v30, %v6338_v11  ;;  %v3812_v11 = vld [vmem:[%s7664_s5 + $0x6e0] sm:$0xff]  ;;  %v6779_v63 = vpop.f32.mrf.mxu2  ;;  %4012 = vmatpush.msra.mxu2 %v3730_v8 }
 0x520   : > { %3408 = vst [vmem:[#allocation4 + $0x48] sm:$0xff] %v3386_v35  ;;  %3917 = vmatmul.f32.gmra.mxu1 %v6707_v53  ;;  %4031 = vmatpush.msrb.mxu3 %v3776_v59  ;;  %v3728_v30 = vld [vmem:[%s7664_s5 + $0x440] sm:$0xff] }
 0x521   : > { %3455 = vst [vmem:[#allocation5 + $0x8] sm:$0xff] %v6707_v53  ;;  %v3185_v12 = vadd.f32 %v6669_v47, %v2983_v25  ;;  %4055 = vmatpush.msra.mxu1 %v3812_v11  ;;  %v3806_v47 = vld [vmem:[%s7664_s5 + $0x6b0] sm:$0xff]  ;;  %4013 = vmatpush.msra.mxu2 %v3728_v30  ;;  %v3792_v25 = vld [vmem:[%s7664_s5 + $0x640] sm:$0xff] }
 0x522   : > { %4032 = vmatpush.msrb.mxu3 %v3774_v51  ;;  %v3726_v11 = vld [vmem:[%s7664_s5 + $0x430] sm:$0xff]  ;;  %v3756_v59 = vld [vmem:[%s7664_s5 + $0x520] sm:$0xff] }
 0x523   : > { %4056 = vmatpush.msra.mxu1 %v3810_v49  ;;  %4014 = vmatpush.msra.mxu2 %v3726_v11  ;;  %v3846_v51 = vld [vmem:[%s7664_s5 + $0x7f0] sm:$0xff] }
 0x524   : > { %v3866_v30 = vld [vmem:[%s7664_s5 + $0x890] sm:$0xff] }
 0x525   : > { %v3341_v5 = vpop.f32.mrf.mxu3  ;;  %4057 = vmatpush.msra.mxu1 %v3808_v43 }
 0x526   : > { %v3387_v39 = vadd.f32 %v3341_v5, %v3185_v12  ;;  %v2940_v42 = vpop.f32.mrf.mxu1  ;;  %v3758_v12 = vld [vmem:[%s7664_s5 + $0x530] sm:$0xff]  ;;  %v3724_v5 = vld [vmem:[%s7664_s5 + $0x420] sm:$0xff] }
 0x527   : > { %v2984_v61 = vadd.f32 %v2940_v42, %v6351_v17  ;;  %v3772_v17 = vld [vmem:[%s7664_s5 + $0x5a0] sm:$0xff]  ;;  %4058 = vmatpush.msra.mxu1 %v3806_v47  ;;  %v6832_v33 = vpop.f32.mrf.mxu2  ;;  %4015 = vmatpush.msra.mxu2 %v3724_v5 }
 0x528   : > { %3409 = vst [vmem:[#allocation4 + $0x50] sm:$0xff] %v3387_v39  ;;  %v6761_v16 = vld [vmem:[#allocation5 + $0x1] sm:$0xff]  ;;  %4033 = vmatpush.msrb.mxu3 %v3772_v17  ;;  %v3457_v21 = vld [vmem:[#allocation4 + $0x40] ss:$2 sm:$0xff]  ;;  %v3461_v35 = vld [vmem:[#allocation4 + $0x41] ss:$2 sm:$0xff] }
 0x529   : > { %v6763_v52 = vld [vmem:[#allocation5 + $0x2] sm:$0xff]  ;;  %3940 = vmatmul.f32.vlgmr.msrb.gmra.mxu2 %v6761_v16  ;;  %v3186_v50 = vadd.f32 %v6691_v2, %v2984_v61  ;;  %4059 = vmatpush.msra.mxu1 %v3804_v1  ;;  %v3800_v2 = vld [vmem:[%s7664_s5 + $0x680] sm:$0xff]  ;;  %v3464_v57 = vmax.f32 %v3457_v21, %v3461_v35 }
 0x52a   : > { %3966 = vmatmul.f32.vlgmr.msra.gmra.mxu3 %v6763_v52  ;;  %v3754_v39 = vld [vmem:[%s7664_s5 + $0x510] sm:$0xff]  ;;  %v3720_v42 = vld [vmem:[%s7664_s5 + $0x400] sm:$0xff] }
 0x52b   : > { %4034 = vmatpush.msrb.mxu3 %v3770_v32  ;;  %4060 = vmatpush.msra.mxu1 %v3802_v9  ;;  %v3784_v9 = vld [vmem:[%s7664_s5 + $0x600] sm:$0xff]  ;;  %v3834_v35 = vld [vmem:[%s7664_s5 + $0x790] sm:$0xff] }
 0x52c   : > { %v3860_v5 = vld [vmem:[%s7664_s5 + $0x860] sm:$0xff] }
 0x52d   : > { %v3344_v14 = vpop.f32.mrf.mxu3  ;;  %4035 = vmatpush.msrb.mxu3 %v3768_v22  ;;  %4061 = vmatpush.msra.mxu1 %v3800_v2  ;;  %v3844_v22 = vld [vmem:[%s7664_s5 + $0x7e0] sm:$0xff] }
 0x52e   : > { %v3388_v40 = vadd.f32 %v3344_v14, %v3186_v50  ;;  %v2943_v29 = vpop.f32.mrf.mxu1 }
 0x52f   : > { %v2985_v60 = vadd.f32 %v2943_v29, %v6364_v46  ;;  %4036 = vmatpush.msrb.mxu3 %v3766_v58  ;;  %v3796_v46 = vld [vmem:[%s7664_s5 + $0x660] sm:$0xff]  ;;  %4062 = vmatpush.msra.mxu1 %v3798_v7  ;;  %v3154_v1 = vpop.f32.mrf.mxu2  ;;  %v3838_v7 = vld [vmem:[%s7664_s5 + $0x7b0] sm:$0xff] }
 0x530   : > { %3410 = vst [vmem:[#allocation4 + $0x58] sm:$0xff] %v3388_v40  ;;  %v3842_v40 = vld [vmem:[%s7664_s5 + $0x7d0] sm:$0xff]  ;;  %v3840_v29 = vld [vmem:[%s7664_s5 + $0x7c0] sm:$0xff] }
 0x531   : > { %v3187_v13 = vadd.f32 %v6723_v48, %v2985_v60  ;;  %4037 = vmatpush.msrb.mxu3 %v3764_v18  ;;  %4063 = vmatpush.msra.mxu1 %v3796_v46  ;;  %v3623_v18 = vld [vmem:[%s7664_s5 + $0xf8] sm:$0xff]  ;;  %v3870_v46 = vld [vmem:[%s7664_s5 + $0x8b0] sm:$0xff] }
 0x533   : > { %4038 = vmatpush.msrb.mxu3 %v3762_v62  ;;  %4064 = vmatpush.msra.mxu1 %v3794_v34 }
 0x535   : > { %v3347_v10 = vpop.f32.mrf.mxu3  ;;  %4039 = vmatpush.msrb.mxu3 %v3760_v36  ;;  %4065 = vmatpush.msra.mxu1 %v3792_v25  ;;  %v3864_v25 = vld [vmem:[%s7664_s5 + $0x880] sm:$0xff] }
 0x536   : > { %v3389_v38 = vadd.f32 %v3347_v10, %v3187_v13  ;;  %v2946_v37 = vpop.f32.mrf.mxu1  ;;  %v3836_v13 = vld [vmem:[%s7664_s5 + $0x7a0] sm:$0xff]  ;;  %v3619_v10 = vld [vmem:[%s7664_s5 + $0xd8] sm:$0xff] }
 0x537   : > { %v3459_v48 = vld [vmem:[#allocation4 + $0x50] ss:$2 sm:$0xff]  ;;  %v3463_v20 = vld [vmem:[#allocation4 + $0x51] ss:$2 sm:$0xff]  ;;  %v2986_v49 = vadd.f32 %v2946_v37, %v6376_v4  ;;  %4040 = vmatpush.msrb.mxu3 %v3758_v12  ;;  %4066 = vmatpush.msra.mxu1 %v3790_v31  ;;  %v3157_v34 = vpop.f32.mrf.mxu2  ;;  %v3828_v12 = vld [vmem:[%s7664_s5 + $0x760] sm:$0xff] }
 0x538   : > { %v3465_v55 = vmax.f32 %v3459_v48, %v3463_v20  ;;  %3411 = vst [vmem:[#allocation4 + $0x60] sm:$0xff] %v3389_v38  ;;  %v3722_v4 = vld [vmem:[%s7664_s5 + $0x410] sm:$0xff]  ;;  %v3832_v38 = vld [vmem:[%s7664_s5 + $0x780] sm:$0xff]  ;;  %v3617_v20 = vld [vmem:[%s7664_s5 + $0xc8] sm:$0xff] }
 0x539   : > { %v3188_v47 = vadd.f32 %v6779_v63, %v2986_v49  ;;  %4041 = vmatpush.msrb.mxu3 %v3756_v59  ;;  %4016 = vmatpush.msra.mxu2 %v3722_v4  ;;  %v3878_v63 = vld [vmem:[%s7664_s5 + $0x8f0] sm:$0xff]  ;;  %v3615_v49 = vld [vmem:[%s7664_s5 + $0xb8] sm:$0xff] }
 0x53a   : > { %v3466_v43 = vmax.f32 %v3464_v57, %v3465_v55  ;;  %4067 = vmatpush.msra.mxu1 %v3788_v27  ;;  %v3830_v37 = vld [vmem:[%s7664_s5 + $0x770] sm:$0xff] }
 0x53b   : > { %4042 = vmatpush.msrb.mxu3 %v3754_v39  ;;  %4017 = vmatpush.msra.mxu2 %v3720_v42  ;;  %v3862_v57 = vld [vmem:[%s7664_s5 + $0x870] sm:$0xff]  ;;  %v3611_v39 = vld [vmem:[%s7664_s5 + $0x98] sm:$0xff]  ;;  %v3824_v42 = vld [vmem:[%s7664_s5 + $0x740] sm:$0xff] }
 0x53c   : > { %v3471_v61 = vadd.f32 %v4970_v44, %v3466_v43  ;;  %4068 = vmatpush.msra.mxu1 %v3786_v24  ;;  %v3826_v31 = vld [vmem:[%s7664_s5 + $0x750] sm:$0xff] }
 0x53d   : > { %v3350_v17 = vpop.f32.mrf.mxu3  ;;  %4080 = vmatpush.msrb.mxu2 %v3846_v51  ;;  %4043 = vmatpush.msrb.mxu3 %v3752_v15  ;;  %v3858_v4 = vld [vmem:[%s7664_s5 + $0x850] sm:$0xff]  ;;  %v3856_v51 = vld [vmem:[%s7664_s5 + $0x840] sm:$0xff] }
 0x53e   : > { %v3390_v32 = vadd.f32 %v3350_v17, %v3188_v47  ;;  %v6884_v19 = vmax.f32 %v3471_v61, 0.0  ;;  %v2949_v50 = vpop.f32.mrf.mxu1  ;;  %4069 = vmatpush.msra.mxu1 %v3784_v9  ;;  %v3609_v17 = vld [vmem:[%s7664_s5 + $0x88] sm:$0xff]  ;;  %v3822_v15 = vld [vmem:[%s7664_s5 + $0x730] sm:$0xff] }
 0x53f   : > { %v2987_v14 = vadd.f32 %v2949_v50, %v6395_v6  ;;  %4106 = vmatpush.msra.mxu3 %v3878_v63  ;;  %4081 = vmatpush.msrb.mxu2 %v3844_v22  ;;  %v3874_v6 = vld [vmem:[%s7664_s5 + $0x8d0] sm:$0xff]  ;;  %v3160_v59 = vpop.f32.mrf.mxu2 }
 0x540   : > { %3412 = vst [vmem:[#allocation4 + $0x68] sm:$0xff] %v3390_v32  ;;  %3920 = vmatmul.f32.gmra.mxu1 %v6884_v19  ;;  %v3854_v50 = vld [vmem:[%s7664_s5 + $0x830] sm:$0xff] }
 0x541   : > { %3473 = vst [vmem:[#allocation5 + $0x10] sm:$0xff] %v6884_v19  ;;  %4107 = vmatpush.msra.mxu3 %v3876_v28  ;;  %4082 = vmatpush.msrb.mxu2 %v3842_v40  ;;  %v3189_v2 = vadd.f32 %v6832_v33, %v2987_v14  ;;  %v3621_v33 = vld [vmem:[%s7664_s5 + $0xe8] sm:$0xff]  ;;  %v4971_v28 = vld [vmem:[%s7663_s4] ss:$0 sm:$0xff]  ;;  %v3607_v40 = vld [vmem:[%s7664_s5 + $0x78] sm:$0xff] }
 0x543   : > { %4108 = vmatpush.msra.mxu3 %v3874_v6  ;;  %4083 = vmatpush.msrb.mxu2 %v3840_v29  ;;  %v3820_v6 = vld [vmem:[%s7664_s5 + $0x720] sm:$0xff]  ;;  %v3605_v29 = vld [vmem:[%s7664_s5 + $0x68] sm:$0xff] }
 0x545   : > { %v3353_v58 = vpop.f32.mrf.mxu3  ;;  %4109 = vmatpush.msra.mxu3 %v3872_v54  ;;  %4084 = vmatpush.msrb.mxu2 %v3838_v7  ;;  %v3818_v54 = vld [vmem:[%s7664_s5 + $0x710] sm:$0xff] }
 0x546   : > { %v3391_v60 = vadd.f32 %v3353_v58, %v3189_v2  ;;  %v2952_v0 = vpop.f32.mrf.mxu1  ;;  %v3852_v2 = vld [vmem:[%s7664_s5 + $0x820] sm:$0xff]  ;;  %v3850_v58 = vld [vmem:[%s7664_s5 + $0x810] sm:$0xff] }
 0x547   : > { %v2988_v8 = vadd.f32 %v2952_v0, %v6408_v26  ;;  %v3868_v26 = vld [vmem:[%s7664_s5 + $0x8a0] sm:$0xff]  ;;  %4110 = vmatpush.msra.mxu3 %v3870_v46  ;;  %4085 = vmatpush.msrb.mxu2 %v3836_v13  ;;  %v3603_v0 = vld [vmem:[%s7664_s5 + $0x58] sm:$0xff]  ;;  %v3163_v46 = vpop.f32.mrf.mxu2 }
 0x548   : > { %3413 = vst [vmem:[#allocation4 + $0x70] sm:$0xff] %v3391_v60  ;;  %v6924_v62 = vld [vmem:[#allocation5 + $0x9] sm:$0xff]  ;;  %3992 = vmatmul.f32.vlgmr.msrb.gmra.mxu1 %v6707_v53  ;;  %v3479_v47 = vld [vmem:[#allocation4 + $0x61] ss:$2 sm:$0xff] }
 0x549   : > { %v6926_v21 = vld [vmem:[#allocation5 + $0xa] sm:$0xff]  ;;  %3943 = vmatmul.f32.gmra.mxu2 %v6924_v62  ;;  %4132 = vmatpush.msrb.mxu1 %v3623_v18  ;;  %v3190_v36 = vadd.f32 %v3154_v1, %v2988_v8  ;;  %v3816_v18 = vld [vmem:[%s7664_s5 + $0x700] sm:$0xff] }
 0x54a   : > { %3969 = vmatmul.f32.gmra.mxu3 %v6926_v21  ;;  %4086 = vmatpush.msrb.mxu2 %v3834_v35  ;;  %v3475_v27 = vld [vmem:[#allocation4 + $0x60] ss:$2 sm:$0xff] }
 0x54b   : > { %4133 = vmatpush.msrb.mxu1 %v3621_v33  ;;  %4111 = vmatpush.msra.mxu3 %v3868_v26  ;;  %v3482_v9 = vmax.f32 %v3475_v27, %v3479_v47  ;;  %v3848_v13 = vld [vmem:[%s7664_s5 + $0x800] sm:$0xff]  ;;  %v3601_v26 = vld [vmem:[%s7664_s5 + $0x48] sm:$0xff] }
 0x54c   : > { %4087 = vmatpush.msrb.mxu2 %v3832_v38  ;;  %v3653_v27 = vld [vmem:[%s7664_s5 + $0x1e8] sm:$0xff] }
 0x54d   : > { %v3356_v44 = vpop.f32.mrf.mxu3  ;;  %4134 = vmatpush.msrb.mxu1 %v3619_v10  ;;  %4112 = vmatpush.msra.mxu3 %v3866_v30  ;;  %v3599_v30 = vld [vmem:[%s7664_s5 + $0x38] sm:$0xff]  ;;  %v3685_v47 = vld [vmem:[%s7664_s5 + $0x2e8] sm:$0xff] }
 0x54e   : > { %v3392_v48 = vadd.f32 %v3356_v44, %v3190_v36  ;;  %v2955_v11 = vpop.f32.mrf.mxu1  ;;  %4088 = vmatpush.msrb.mxu2 %v3830_v37  ;;  %v3597_v36 = vld [vmem:[%s7664_s5 + $0x28] sm:$0xff] }
 0x54f   : > { %v2989_v55 = vadd.f32 %v2955_v11, %v6424_v45  ;;  %4113 = vmatpush.msra.mxu3 %v3864_v25  ;;  %4135 = vmatpush.msrb.mxu1 %v3617_v20  ;;  %v3613_v45 = vld [vmem:[%s7664_s5 + $0xa8] sm:$0xff] }
 0x550   : > { %3414 = vst [vmem:[#allocation4 + $0x78] sm:$0xff] %v3392_v48  ;;  %3995 = vmatmul.f32.gmra.mxu1 %v6884_v19  ;;  %4089 = vmatpush.msrb.mxu2 %v3828_v12  ;;  %v3166_v48 = vpop.f32.mrf.mxu2  ;;  %v3593_v37 = vld [vmem:[%s7664_s5 + $0x8] sm:$0xff] }
 0x551   : > { %4114 = vmatpush.msra.mxu3 %v3862_v57  ;;  %4136 = vmatpush.msrb.mxu1 %v3615_v49  ;;  %v3191_v43 = vadd.f32 %v3157_v34, %v2989_v55  ;;  %v3719_v49 = vld [vmem:[%s7664_s5 + $0x3f8] sm:$0xff]  ;;  %v3717_v12 = vld [vmem:[%s7664_s5 + $0x3e8] sm:$0xff] }
 0x552   : > { %4090 = vmatpush.msrb.mxu2 %v3826_v31 }
 0x553   : > { %4115 = vmatpush.msra.mxu3 %v3860_v5  ;;  %4137 = vmatpush.msrb.mxu1 %v3613_v45  ;;  %v3715_v5 = vld [vmem:[%s7664_s5 + $0x3d8] sm:$0xff] }
 0x554   : > { %4091 = vmatpush.msrb.mxu2 %v3824_v42 }
 0x555   : > { %v3359_v61 = vpop.f32.mrf.mxu3  ;;  %4116 = vmatpush.msra.mxu3 %v3858_v4  ;;  %4138 = vmatpush.msrb.mxu1 %v3611_v39  ;;  %v3655_v4 = vld [vmem:[%s7664_s5 + $0x1f8] sm:$0xff]  ;;  %v3713_v39 = vld [vmem:[%s7664_s5 + $0x3c8] sm:$0xff] }
 0x556   : > { %v3393_v24 = vadd.f32 %v3359_v61, %v3191_v43  ;;  %v2958_v1 = vpop.f32.mrf.mxu1  ;;  %4092 = vmatpush.msrb.mxu2 %v3822_v15  ;;  %v3687_v43 = vld [vmem:[%s7664_s5 + $0x2f8] sm:$0xff]  ;;  %v3709_v15 = vld [vmem:[%s7664_s5 + $0x3a8] sm:$0xff] }
 0x557   : > { %v3477_v32 = vld [vmem:[#allocation4 + $0x70] ss:$2 sm:$0xff]  ;;  %v3481_v63 = vld [vmem:[#allocation4 + $0x71] ss:$2 sm:$0xff]  ;;  %v2990_v22 = vadd.f32 %v2958_v1, %v6445_v41  ;;  %4117 = vmatpush.msra.mxu3 %v3856_v51  ;;  %4139 = vmatpush.msrb.mxu1 %v3609_v17  ;;  %v3711_v61 = vld [vmem:[%s7664_s5 + $0x3b8] sm:$0xff] }
 0x558   : > { %v3483_v14 = vmax.f32 %v3477_v32, %v3481_v63  ;;  %3415 = vst [vmem:[#allocation4 + $0x80] sm:$0xff] %v3393_v24  ;;  %4093 = vmatpush.msrb.mxu2 %v3820_v6  ;;  %v3169_v42 = vpop.f32.mrf.mxu2  ;;  %v3651_v51 = vld [vmem:[%s7664_s5 + $0x1d8] sm:$0xff]  ;;  %v3649_v17 = vld [vmem:[%s7664_s5 + $0x1c8] sm:$0xff] }
 0x559   : > { %4118 = vmatpush.msra.mxu3 %v3854_v50  ;;  %4140 = vmatpush.msrb.mxu1 %v3607_v40  ;;  %v3192_v60 = vadd.f32 %v3160_v59, %v2990_v22  ;;  %v3683_v24 = vld [vmem:[%s7664_s5 + $0x2d8] sm:$0xff]  ;;  %v3681_v50 = vld [vmem:[%s7664_s5 + $0x2c8] sm:$0xff] }
 0x55a   : > { %v3484_v41 = vmax.f32 %v3482_v9, %v3483_v14  ;;  %4094 = vmatpush.msrb.mxu2 %v3818_v54  ;;  %v3647_v9 = vld [vmem:[%s7664_s5 + $0x1b8] sm:$0xff]  ;;  %v3645_v54 = vld [vmem:[%s7664_s5 + $0x1a8] sm:$0xff] }
 0x55b   : > { %4119 = vmatpush.msra.mxu3 %v3852_v2  ;;  %4141 = vmatpush.msrb.mxu1 %v3605_v29  ;;  %v3679_v40 = vld [vmem:[%s7664_s5 + $0x2b8] sm:$0xff]  ;;  %v3689_v42 = vld [vmem:[%s7664_s5 + $0x308] sm:$0xff] }
 0x55c   : > { %v3489_v7 = vadd.f32 %v4971_v28, %v3484_v41  ;;  %4095 = vmatpush.msrb.mxu2 %v3816_v18  ;;  %v4972_v41 = vld [vmem:[%s7663_s4] ss:$0 sm:$0xff]  ;;  %v3707_v29 = vld [vmem:[%s7664_s5 + $0x398] sm:$0xff] }
 0x55d   : > { %v3362_v8 = vpop.f32.mrf.mxu3  ;;  %4120 = vmatpush.msra.mxu3 %v3850_v58  ;;  %4142 = vmatpush.msrb.mxu1 %v3603_v0  ;;  %v3677_v58 = vld [vmem:[%s7664_s5 + $0x2a8] sm:$0xff]  ;;  %v3643_v18 = vld [vmem:[%s7664_s5 + $0x198] sm:$0xff] }
 0x55e   : > { %v3394_v34 = vadd.f32 %v3362_v8, %v3192_v60  ;;  %v7033_v33 = vmax.f32 %v3489_v7, 0.0  ;;  %v2961_v35 = vpop.f32.mrf.mxu1  ;;  %v3705_v7 = vld [vmem:[%s7664_s5 + $0x388] sm:$0xff] }
 0x55f   : > { %v2991_v10 = vadd.f32 %v2961_v35, %v6463_v56  ;;  %4121 = vmatpush.msra.mxu3 %v3848_v13  ;;  %4143 = vmatpush.msrb.mxu1 %v3601_v26  ;;  %v3595_v56 = vld [vmem:[%s7664_s5 + $0x18] sm:$0xff]  ;;  %v3641_v26 = vld [vmem:[%s7664_s5 + $0x188] sm:$0xff] }
 0x560   : > { %3416 = vst [vmem:[#allocation4 + $0x88] sm:$0xff] %v3394_v34  ;;  %3998 = vmatmul.f32.gmra.mxu1 %v7033_v33  ;;  %v3172_v0 = vpop.f32.mrf.mxu2  ;;  %v3703_v13 = vld [vmem:[%s7664_s5 + $0x378] sm:$0xff] }
 0x561   : > { %3491 = vst [vmem:[#allocation5 + $0x18] sm:$0xff] %v7033_v33  ;;  %4144 = vmatpush.msrb.mxu1 %v3599_v30  ;;  %v3193_v38 = vadd.f32 %v3163_v46, %v2991_v10  ;;  %v3675_v46 = vld [vmem:[%s7664_s5 + $0x298] sm:$0xff]  ;;  %v3673_v10 = vld [vmem:[%s7664_s5 + $0x288] sm:$0xff] }
 0x562   : > { %v3701_v30 = vld [vmem:[%s7664_s5 + $0x368] sm:$0xff] }
 0x563   : > { %4145 = vmatpush.msrb.mxu1 %v3597_v36  ;;  %v3639_v36 = vld [vmem:[%s7664_s5 + $0x178] sm:$0xff] }
 0x565   : > { %v3365_v44 = vpop.f32.mrf.mxu3  ;;  %4146 = vmatpush.msrb.mxu1 %v3595_v56  ;;  %v3699_v56 = vld [vmem:[%s7664_s5 + $0x358] sm:$0xff] }
 0x566   : > { %v3395_v25 = vadd.f32 %v3365_v44, %v3193_v38  ;;  %v2964_v20 = vpop.f32.mrf.mxu1  ;;  %v3671_v38 = vld [vmem:[%s7664_s5 + $0x278] sm:$0xff]  ;;  %v3637_v44 = vld [vmem:[%s7664_s5 + $0x168] sm:$0xff] }
 0x567   : > { %v2992_v11 = vadd.f32 %v2964_v20, %v6478_v3  ;;  %4147 = vmatpush.msrb.mxu1 %v3593_v37  ;;  %v3493_v32 = vld [vmem:[#allocation4 + $0x80] ss:$2 sm:$0xff]  ;;  %v3497_v63 = vld [vmem:[#allocation4 + $0x81] ss:$2 sm:$0xff] }
 0x568   : > { %3417 = vst [vmem:[#allocation4 + $0x90] sm:$0xff] %v3395_v25  ;;  %v7054_v57 = vld [vmem:[#allocation5 + $0x11] sm:$0xff]  ;;  %4070 = vmatmul.f32.vlgmr.msra.gmra.mxu1 %v6884_v19  ;;  %v3500_v6 = vmax.f32 %v3493_v32, %v3497_v63  ;;  %v3669_v25 = vld [vmem:[%s7664_s5 + $0x268] sm:$0xff] }
 0x569   : > { %v7056_v55 = vld [vmem:[#allocation5 + $0x12] sm:$0xff]  ;;  %3946 = vmatmul.f32.gmra.mxu2 %v7054_v57  ;;  %4210 = vmatpush.msra.mxu1 %v3719_v49  ;;  %v3194_v3 = vadd.f32 %v3166_v48, %v2992_v11  ;;  %v3697_v48 = vld [vmem:[%s7664_s5 + $0x348] sm:$0xff] }
 0x56a   : > { %3972 = vmatmul.f32.gmra.mxu3 %v7056_v55  ;;  %v3635_v20 = vld [vmem:[%s7664_s5 + $0x158] sm:$0xff]  ;;  %v3633_v49 = vld [vmem:[%s7664_s5 + $0x148] sm:$0xff] }
 0x56b   : > { %4211 = vmatpush.msra.mxu1 %v3717_v12  ;;  %v3667_v37 = vld [vmem:[%s7664_s5 + $0x258] sm:$0xff]  ;;  %v3665_v12 = vld [vmem:[%s7664_s5 + $0x248] sm:$0xff] }
 0x56c   : > { %v3695_v11 = vld [vmem:[%s7664_s5 + $0x338] sm:$0xff]  ;;  %v3781_v32 = vld [vmem:[%s7664_s5 + $0x5e8] sm:$0xff] }
 0x56d   : > { %v3368_v45 = vpop.f32.mrf.mxu3  ;;  %4212 = vmatpush.msra.mxu1 %v3715_v5  ;;  %v3813_v63 = vld [vmem:[%s7664_s5 + $0x6e8] sm:$0xff] }
 0x56e   : > { %v3396_v31 = vadd.f32 %v3368_v45, %v3194_v3  ;;  %v2967_v59 = vpop.f32.mrf.mxu1  ;;  %v3631_v3 = vld [vmem:[%s7664_s5 + $0x138] sm:$0xff] }
 0x56f   : > { %4213 = vmatpush.msra.mxu1 %v3713_v39  ;;  %v3663_v59 = vld [vmem:[%s7664_s5 + $0x238] sm:$0xff] }
 0x570   : > { %3418 = vst [vmem:[#allocation4 + $0x98] sm:$0xff] %v3396_v31  ;;  %4073 = vmatmul.f32.gmra.mxu1 %v7033_v33  ;;  %v3693_v31 = vld [vmem:[%s7664_s5 + $0x328] sm:$0xff]  ;;  %v3627_v39 = vld [vmem:[%s7664_s5 + $0x118] sm:$0xff] }
 0x571   : > { %4018 = vmatmul.f32.vlgmr.msra.gmra.mxu2 %v6924_v62  ;;  %4214 = vmatpush.msra.mxu1 %v3711_v61  ;;  %v3657_v61 = vld [vmem:[%s7664_s5 + $0x208] sm:$0xff] }
 0x572   : > { %4044 = vmatmul.f32.vlgmr.msrb.gmra.mxu3 %v6926_v21  ;;  %4158 = vmatpush.msra.mxu2 %v3655_v4  ;;  %v3629_v4 = vld [vmem:[%s7664_s5 + $0x128] sm:$0xff] }
 0x573   : > { %4184 = vmatpush.msrb.mxu3 %v3687_v43  ;;  %4215 = vmatpush.msra.mxu1 %v3709_v15  ;;  %v3661_v43 = vld [vmem:[%s7664_s5 + $0x228] sm:$0xff] }
 0x574   : > { %4159 = vmatpush.msra.mxu2 %v3653_v27  ;;  %v3659_v27 = vld [vmem:[%s7664_s5 + $0x218] sm:$0xff]  ;;  %v3749_v15 = vld [vmem:[%s7664_s5 + $0x4e8] sm:$0xff] }
 0x575   : > { %4185 = vmatpush.msrb.mxu3 %v3685_v47  ;;  %v3371_v1 = vpop.f32.mrf.mxu3  ;;  %4216 = vmatpush.msra.mxu1 %v3707_v29  ;;  %v3625_v47 = vld [vmem:[%s7664_s5 + $0x108] sm:$0xff]  ;;  %v3807_v29 = vld [vmem:[%s7664_s5 + $0x6b8] sm:$0xff] }
 0x576   : > { %4160 = vmatpush.msra.mxu2 %v3651_v51  ;;  %v2970_v28 = vpop.f32.mrf.mxu1  ;;  %v3751_v51 = vld [vmem:[%s7664_s5 + $0x4f8] sm:$0xff] }
 0x577   : > { %4186 = vmatpush.msrb.mxu3 %v3683_v24  ;;  %v3495_v14 = vld [vmem:[#allocation4 + $0x90] ss:$2 sm:$0xff]  ;;  %v3499_v22 = vld [vmem:[#allocation4 + $0x91] ss:$2 sm:$0xff]  ;;  %4217 = vmatpush.msra.mxu1 %v3705_v7  ;;  %v3783_v24 = vld [vmem:[%s7664_s5 + $0x5f8] sm:$0xff] }
 0x578   : > { %v3501_v2 = vmax.f32 %v3495_v14, %v3499_v22  ;;  %4161 = vmatpush.msra.mxu2 %v3649_v17  ;;  %v3815_v17 = vld [vmem:[%s7664_s5 + $0x6f8] sm:$0xff]  ;;  %v3777_v14 = vld [vmem:[%s7664_s5 + $0x5c8] sm:$0xff] }
 0x579   : > { %4187 = vmatpush.msrb.mxu3 %v3681_v50  ;;  %4021 = vmatmul.f32.gmra.mxu2 %v7054_v57  ;;  %v3747_v1 = vld [vmem:[%s7664_s5 + $0x4d8] sm:$0xff]  ;;  %v3805_v7 = vld [vmem:[%s7664_s5 + $0x6a8] sm:$0xff] }
 0x57a   : > { %4047 = vmatmul.f32.gmra.mxu3 %v7056_v55  ;;  %v3502_v60 = vmax.f32 %v3500_v6, %v3501_v2  ;;  %4162 = vmatpush.msra.mxu2 %v3647_v9  ;;  %v3779_v50 = vld [vmem:[%s7664_s5 + $0x5d8] sm:$0xff]  ;;  %v3745_v9 = vld [vmem:[%s7664_s5 + $0x4c8] sm:$0xff] }
 0x57b   : > { %4188 = vmatpush.msrb.mxu3 %v3679_v40  ;;  %4218 = vmatpush.msra.mxu1 %v3703_v13  ;;  %v3811_v22 = vld [vmem:[%s7664_s5 + $0x6d8] sm:$0xff]  ;;  %v3809_v6 = vld [vmem:[%s7664_s5 + $0x6c8] sm:$0xff] }
 0x57c   : > { %4163 = vmatpush.msra.mxu2 %v3645_v54  ;;  %v3507_v8 = vadd.f32 %v4972_v41, %v3502_v60  ;;  %v3743_v28 = vld [vmem:[%s7664_s5 + $0x4b8] sm:$0xff]  ;;  %v3741_v2 = vld [vmem:[%s7664_s5 + $0x4a8] sm:$0xff] }
 0x57d   : > { %4189 = vmatpush.msrb.mxu3 %v3677_v58  ;;  %v3374_v34 = vpop.f32.mrf.mxu3  ;;  %4219 = vmatpush.msra.mxu1 %v3701_v30  ;;  %v3775_v40 = vld [vmem:[%s7664_s5 + $0x5b8] sm:$0xff]  ;;  %v3773_v41 = vld [vmem:[%s7664_s5 + $0x5a8] sm:$0xff] }
 0x57e   : > { %4164 = vmatpush.msra.mxu2 %v3643_v18  ;;  %v7141_v35 = vmax.f32 %v3507_v8, 0.0  ;;  %v3739_v54 = vld [vmem:[%s7664_s5 + $0x498] sm:$0xff]  ;;  %v3737_v60 = vld [vmem:[%s7664_s5 + $0x488] sm:$0xff] }
 0x57f   : > { %4190 = vmatpush.msrb.mxu3 %v3675_v46  ;;  %4220 = vmatpush.msra.mxu1 %v3699_v56  ;;  %v3771_v58 = vld [vmem:[%s7664_s5 + $0x598] sm:$0xff]  ;;  %v3769_v46 = vld [vmem:[%s7664_s5 + $0x588] sm:$0xff] }
 0x580   : > { %4076 = vmatmul.f32.gmra.mxu1 %v7141_v35  ;;  %4165 = vmatpush.msra.mxu2 %v3641_v26  ;;  %3509 = vst [vmem:[#allocation5 + $0x20] sm:$0xff] %v7141_v35  ;;  %v3735_v8 = vld [vmem:[%s7664_s5 + $0x478] sm:$0xff]  ;;  %v3733_v26 = vld [vmem:[%s7664_s5 + $0x468] sm:$0xff] }
 0x581   : > { %4191 = vmatpush.msrb.mxu3 %v3673_v10  ;;  %4221 = vmatpush.msra.mxu1 %v3697_v48  ;;  %v3767_v13 = vld [vmem:[%s7664_s5 + $0x578] sm:$0xff]  ;;  %v3801_v10 = vld [vmem:[%s7664_s5 + $0x688] sm:$0xff] }
 0x582   : > { %4166 = vmatpush.msra.mxu2 %v3639_v36  ;;  %v3803_v34 = vld [vmem:[%s7664_s5 + $0x698] sm:$0xff]  ;;  %v3797_v48 = vld [vmem:[%s7664_s5 + $0x668] sm:$0xff] }
 0x583   : > { %4192 = vmatpush.msrb.mxu3 %v3671_v38  ;;  %4222 = vmatpush.msra.mxu1 %v3695_v11  ;;  %v3731_v30 = vld [vmem:[%s7664_s5 + $0x458] sm:$0xff]  ;;  %v3729_v38 = vld [vmem:[%s7664_s5 + $0x448] sm:$0xff] }
 0x584   : > { %4167 = vmatpush.msra.mxu2 %v3637_v44  ;;  %v3763_v36 = vld [vmem:[%s7664_s5 + $0x558] sm:$0xff]  ;;  %v3761_v44 = vld [vmem:[%s7664_s5 + $0x548] sm:$0xff] }
 0x585   : > { %4193 = vmatpush.msrb.mxu3 %v3669_v25  ;;  %4223 = vmatpush.msra.mxu1 %v3693_v31  ;;  %v3799_v56 = vld [vmem:[%s7664_s5 + $0x678] sm:$0xff]  ;;  %v3753_v31 = vld [vmem:[%s7664_s5 + $0x508] sm:$0xff] }
 0x586   : > { %4168 = vmatpush.msra.mxu2 %v3635_v20  ;;  %v3727_v25 = vld [vmem:[%s7664_s5 + $0x438] sm:$0xff] }
 0x587   : > { %4194 = vmatpush.msrb.mxu3 %v3667_v37  ;;  %v7187_v5 = vld [vmem:[#allocation5 + $0x19] sm:$0xff]  ;;  %v7293_v0 = vld [vmem:[#allocation5 + $0x21] sm:$0xff]  ;;  %v3795_v20 = vld [vmem:[%s7664_s5 + $0x658] sm:$0xff] }
 0x588   : > { %v7189_v45 = vld [vmem:[#allocation5 + $0x1a] sm:$0xff]  ;;  %4148 = vmatmul.f32.vlgmr.msrb.gmra.mxu1 %v6602_v23  ;;  %4169 = vmatpush.msra.mxu2 %v3633_v49  ;;  %v3691_v23 = vld [vmem:[%s7664_s5 + $0x318] sm:$0xff]  ;;  %v7295_v18 = vld [vmem:[#allocation5 + $0x22] sm:$0xff] }
 0x589   : > { %4024 = vmatmul.f32.gmra.mxu2 %v7187_v5  ;;  %4050 = vmatmul.f32.gmra.mxu3 %v7189_v45  ;;  %v3757_v37 = vld [vmem:[%s7664_s5 + $0x528] sm:$0xff]  ;;  %v3723_v11 = vld [vmem:[%s7664_s5 + $0x418] sm:$0xff] }
 0x58a   : > { %4195 = vmatpush.msrb.mxu3 %v3665_v12  ;;  %4170 = vmatpush.msra.mxu2 %v3631_v3  ;;  %v3755_v49 = vld [vmem:[%s7664_s5 + $0x518] sm:$0xff]  ;;  %v3793_v12 = vld [vmem:[%s7664_s5 + $0x648] sm:$0xff] }
 0x58b   : > { %4224 = vmatpush.msra.mxu1 %v3691_v23  ;;  %v3721_v3 = vld [vmem:[%s7664_s5 + $0x408] sm:$0xff]  ;;  %v3879_v23 = vld [vmem:[%s7664_s5 + $0x8f8] sm:$0xff] }
 0x58c   : > { %4196 = vmatpush.msrb.mxu3 %v3663_v59  ;;  %4171 = vmatpush.msra.mxu2 %v3629_v4  ;;  %v3791_v59 = vld [vmem:[%s7664_s5 + $0x638] sm:$0xff] }
 0x58d   : > { %4225 = vmatpush.msra.mxu1 %v3689_v42  ;;  %v3847_v4 = vld [vmem:[%s7664_s5 + $0x7f8] sm:$0xff]  ;;  %v3877_v42 = vld [vmem:[%s7664_s5 + $0x8e8] sm:$0xff] }
 0x58e   : > { %4197 = vmatpush.msrb.mxu3 %v3661_v43  ;;  %4172 = vmatpush.msra.mxu2 %v3627_v39  ;;  %v3789_v43 = vld [vmem:[%s7664_s5 + $0x628] sm:$0xff] }
 0x58f   : > { %4288 = vmatpush.msrb.mxu1 %v3815_v17  ;;  %v3845_v39 = vld [vmem:[%s7664_s5 + $0x7e8] sm:$0xff] }
 0x590   : > { %4198 = vmatpush.msrb.mxu3 %v3659_v27  ;;  %4151 = vmatmul.f32.gmra.mxu1 %v6707_v53  ;;  %v3787_v27 = vld [vmem:[%s7664_s5 + $0x618] sm:$0xff]  ;;  %v3873_v17 = vld [vmem:[%s7664_s5 + $0x8c8] sm:$0xff] }
 0x591   : > { %4096 = vmatmul.f32.vlgmr.msrb.gmra.mxu2 %v7054_v57  ;;  %4122 = vmatmul.f32.vlgmr.msra.gmra.mxu3 %v7056_v55 }
 0x592   : > { %4173 = vmatpush.msra.mxu2 %v3625_v47  ;;  %4199 = vmatpush.msrb.mxu3 %v3657_v61  ;;  %v3843_v47 = vld [vmem:[%s7664_s5 + $0x7d8] sm:$0xff] }
 0x593   : > { %4289 = vmatpush.msrb.mxu1 %v3813_v63  ;;  %v3875_v61 = vld [vmem:[%s7664_s5 + $0x8d8] sm:$0xff]  ;;  %v3837_v63 = vld [vmem:[%s7664_s5 + $0x7a8] sm:$0xff] }
 0x594   : > { %4236 = vmatpush.msrb.mxu2 %v3751_v51  ;;  %4262 = vmatpush.msra.mxu3 %v3783_v24  ;;  %v3785_v51 = vld [vmem:[%s7664_s5 + $0x608] sm:$0xff] }
 0x595   : > { %4290 = vmatpush.msrb.mxu1 %v3811_v22  ;;  %v3841_v24 = vld [vmem:[%s7664_s5 + $0x7c8] sm:$0xff] }
 0x596   : > { %4237 = vmatpush.msrb.mxu2 %v3749_v15  ;;  %4263 = vmatpush.msra.mxu3 %v3781_v32  ;;  %v3839_v15 = vld [vmem:[%s7664_s5 + $0x7b8] sm:$0xff]  ;;  %v3829_v22 = vld [vmem:[%s7664_s5 + $0x768] sm:$0xff] }
 0x597   : > { %4291 = vmatpush.msrb.mxu1 %v3809_v6  ;;  %v3871_v32 = vld [vmem:[%s7664_s5 + $0x8b8] sm:$0xff] }
 0x598   : > { %4238 = vmatpush.msrb.mxu2 %v3747_v1  ;;  %4264 = vmatpush.msra.mxu3 %v3779_v50  ;;  %v3869_v1 = vld [vmem:[%s7664_s5 + $0x8a8] sm:$0xff]  ;;  %v3835_v50 = vld [vmem:[%s7664_s5 + $0x798] sm:$0xff] }
 0x599   : > { %4154 = vmatmul.f32.gmra.mxu1 %v6884_v19  ;;  %4099 = vmatmul.f32.gmra.mxu2 %v7187_v5  ;;  %v3859_v6 = vld [vmem:[%s7664_s5 + $0x858] sm:$0xff] }
 0x59a   : > { %4125 = vmatmul.f32.gmra.mxu3 %v7189_v45  ;;  %4239 = vmatpush.msrb.mxu2 %v3745_v9  ;;  %v3833_v9 = vld [vmem:[%s7664_s5 + $0x788] sm:$0xff] }
 0x59b   : > { %4265 = vmatpush.msra.mxu3 %v3777_v14  ;;  %4292 = vmatpush.msrb.mxu1 %v3807_v29  ;;  %v3865_v14 = vld [vmem:[%s7664_s5 + $0x888] sm:$0xff]  ;;  %v3823_v29 = vld [vmem:[%s7664_s5 + $0x738] sm:$0xff] }
 0x59c   : > { %4240 = vmatpush.msrb.mxu2 %v3743_v28  ;;  %v7450_v28 = vpop.f32.mrf.mxu1 }
 0x59d   : > { %4266 = vmatpush.msra.mxu3 %v3775_v40  ;;  %4293 = vmatpush.msrb.mxu1 %v3805_v7  ;;  %v3861_v40 = vld [vmem:[%s7664_s5 + $0x868] sm:$0xff] }
 0x59e   : > { %4241 = vmatpush.msrb.mxu2 %v3741_v2  ;;  %v3825_v2 = vld [vmem:[%s7664_s5 + $0x748] sm:$0xff] }
 0x59f   : > { %4267 = vmatpush.msra.mxu3 %v3773_v41  ;;  %4294 = vmatpush.msrb.mxu1 %v3803_v34  ;;  %v3857_v41 = vld [vmem:[%s7664_s5 + $0x848] sm:$0xff] }
 0x5a0   : > { %4242 = vmatpush.msrb.mxu2 %v3739_v54  ;;  %v3855_v54 = vld [vmem:[%s7664_s5 + $0x838] sm:$0xff]  ;;  %v3853_v7 = vld [vmem:[%s7664_s5 + $0x828] sm:$0xff] }
 0x5a1   : > { %4268 = vmatpush.msra.mxu3 %v3771_v58  ;;  %4102 = vmatmul.f32.gmra.mxu2 %v7293_v0  ;;  %v3821_v58 = vld [vmem:[%s7664_s5 + $0x728] sm:$0xff] }
 0x5a2   : > { %4128 = vmatmul.f32.gmra.mxu3 %v7295_v18  ;;  %4226 = vmatmul.f32.vlgmr.msra.gmra.mxu1 %v6707_v53  ;;  %v3765_v53 = vld [vmem:[%s7664_s5 + $0x568] sm:$0xff] }
 0x5a3   : > { %4243 = vmatpush.msrb.mxu2 %v3737_v60  ;;  %4269 = vmatpush.msra.mxu3 %v3769_v46  ;;  %v3819_v46 = vld [vmem:[%s7664_s5 + $0x718] sm:$0xff] }
 0x5a4   : > { %4295 = vmatpush.msrb.mxu1 %v3801_v10  ;;  %v3918_v60 = vpop.f32.mrf.mxu1 }
 0x5a5   : > { %4244 = vmatpush.msrb.mxu2 %v3735_v8  ;;  %4270 = vmatpush.msra.mxu3 %v3767_v13  ;;  %v3817_v8 = vld [vmem:[%s7664_s5 + $0x708] sm:$0xff] }
 0x5a6   : > { %4296 = vmatpush.msrb.mxu1 %v3799_v56  ;;  %v3849_v13 = vld [vmem:[%s7664_s5 + $0x808] sm:$0xff] }
 0x5a7   : > { %4245 = vmatpush.msrb.mxu2 %v3733_v26  ;;  %4271 = vmatpush.msra.mxu3 %v3765_v53 }
 0x5a8   : > { %4297 = vmatpush.msrb.mxu1 %v3797_v48 }
 0x5a9   : > { %4246 = vmatpush.msrb.mxu2 %v3731_v30  ;;  %4272 = vmatpush.msra.mxu3 %v3763_v36 }
 0x5aa   : > { %4174 = vmatmul.f32.vlgmr.msra.gmra.mxu2 %v6761_v16  ;;  %4200 = vmatmul.f32.vlgmr.msrb.gmra.mxu3 %v6763_v52  ;;  %v3759_v16 = vld [vmem:[%s7664_s5 + $0x538] sm:$0xff]  ;;  %v3725_v52 = vld [vmem:[%s7664_s5 + $0x428] sm:$0xff] }
 0x5ab   : > { %4229 = vmatmul.f32.gmra.mxu1 %v6884_v19  ;;  %4247 = vmatpush.msrb.mxu2 %v3729_v38 }
 0x5ac   : > { %4273 = vmatpush.msra.mxu3 %v3761_v44  ;;  %4298 = vmatpush.msrb.mxu1 %v3795_v20  ;;  %v3941_v26 = vpop.f32.mrf.mxu2 }
 0x5ad   : > { %4248 = vmatpush.msrb.mxu2 %v3727_v25  ;;  %v3967_v53 = vpop.f32.mrf.mxu3 }
 0x5ae   : > { %4274 = vmatpush.msra.mxu3 %v3759_v16  ;;  %4299 = vmatpush.msrb.mxu1 %v3793_v12 }
 0x5af   : > { %4249 = vmatpush.msrb.mxu2 %v3725_v52 }
 0x5b0   : > { %4275 = vmatpush.msra.mxu3 %v3757_v37  ;;  %4300 = vmatpush.msrb.mxu1 %v3791_v59  ;;  %v4404_v37 = vld [vmem:[%s7666_s7 + $0x60] sm:$0xff] }
 0x5b1   : > { %4250 = vmatpush.msrb.mxu2 %v3723_v11  ;;  %v4403_v11 = vld [vmem:[%s7666_s7 + $0x58] sm:$0xff] }
 0x5b2   : > { %4177 = vmatmul.f32.gmra.mxu2 %v6924_v62  ;;  %4203 = vmatmul.f32.gmra.mxu3 %v6926_v21 }
 0x5b3   : > { %4276 = vmatpush.msra.mxu3 %v3755_v49  ;;  %4232 = vmatmul.f32.gmra.mxu1 %v7033_v33  ;;  %v7521_v49 = vpop.permute.xlu1 %3890 }
 0x5b4   : > { %4251 = vmatpush.msrb.mxu2 %v3721_v3  ;;  %4301 = vmatpush.msrb.mxu1 %v3789_v43  ;;  %v4402_v3 = vld [vmem:[%s7666_s7 + $0x50] sm:$0xff]  ;;  %v3919_v43 = vadd.f32 %v3918_v60, %v7521_v49 }
 0x5b5   : > { %4277 = vmatpush.msra.mxu3 %v3753_v31 }
 0x5b6   : > { %4314 = vmatpush.msra.mxu2 %v3847_v4  ;;  %4302 = vmatpush.msrb.mxu1 %v3787_v27  ;;  %v4401_v4 = vld [vmem:[%s7666_s7 + $0x48] sm:$0xff]  ;;  %v4400_v27 = vld [vmem:[%s7666_s7 + $0x40] sm:$0xff] }
 0x5b7   : > { %4340 = vmatpush.msrb.mxu3 %v3879_v23 }
 0x5b8   : > { %4315 = vmatpush.msra.mxu2 %v3845_v39  ;;  %4303 = vmatpush.msrb.mxu1 %v3785_v51 }
 0x5b9   : > { %4341 = vmatpush.msrb.mxu3 %v3877_v42 }
 0x5ba   : > { %4180 = vmatmul.f32.gmra.mxu2 %v7054_v57  ;;  %4206 = vmatmul.f32.gmra.mxu3 %v7056_v55 }
 0x5bb   : > { %4316 = vmatpush.msra.mxu2 %v3843_v47  ;;  %4342 = vmatpush.msrb.mxu3 %v3875_v61 }
 0x5bc   : > { %4304 = vmatmul.f32.vlgmr.msrb.gmra.mxu1 %v6884_v19  ;;  %v3867_v19 = vld [vmem:[%s7664_s5 + $0x898] sm:$0xff] }
 0x5bd   : > { %4317 = vmatpush.msra.mxu2 %v3841_v24  ;;  %4343 = vmatpush.msrb.mxu3 %v3873_v17  ;;  %v3921_v34 = vpop.f32.mrf.mxu1  ;;  %v4399_v24 = vld [vmem:[%s7666_s7 + $0x38] sm:$0xff]  ;;  %v4398_v17 = vld [vmem:[%s7666_s7 + $0x30] sm:$0xff] }
 0x5bf   : > { %4318 = vmatpush.msra.mxu2 %v3839_v15  ;;  %4344 = vmatpush.msrb.mxu3 %v3871_v32 }
 0x5c1   : > { %4319 = vmatpush.msra.mxu2 %v3837_v63  ;;  %4345 = vmatpush.msrb.mxu3 %v3869_v1 }
 0x5c2   : > { %4252 = vmatmul.f32.vlgmr.msrb.gmra.mxu2 %v6924_v62  ;;  %4278 = vmatmul.f32.vlgmr.msra.gmra.mxu3 %v6926_v21  ;;  %v3831_v62 = vld [vmem:[%s7664_s5 + $0x778] sm:$0xff] }
 0x5c3   : > { %4320 = vmatpush.msra.mxu2 %v3835_v50  ;;  %4346 = vmatpush.msrb.mxu3 %v3867_v19  ;;  %v3863_v21 = vld [vmem:[%s7664_s5 + $0x878] sm:$0xff]  ;;  %v4397_v19 = vld [vmem:[%s7666_s7 + $0x28] sm:$0xff] }
 0x5c4   : > { %4307 = vmatmul.f32.gmra.mxu1 %v7033_v33  ;;  %v3827_v33 = vld [vmem:[%s7664_s5 + $0x758] sm:$0xff] }
 0x5c5   : > { %4321 = vmatpush.msra.mxu2 %v3833_v9  ;;  %4347 = vmatpush.msrb.mxu3 %v3865_v14  ;;  %v3993_v10 = vpop.f32.mrf.mxu1  ;;  %v4396_v14 = vld [vmem:[%s7666_s7 + $0x20] sm:$0xff] }
 0x5c7   : > { %4322 = vmatpush.msra.mxu2 %v3831_v62  ;;  %4348 = vmatpush.msrb.mxu3 %v3863_v21  ;;  %v4395_v62 = vld [vmem:[%s7666_s7 + $0x18] sm:$0xff] }
 0x5c9   : > { %4323 = vmatpush.msra.mxu2 %v3829_v22  ;;  %4349 = vmatpush.msrb.mxu3 %v3861_v40 }
 0x5ca   : > { %4255 = vmatmul.f32.gmra.mxu2 %v7054_v57  ;;  %4281 = vmatmul.f32.gmra.mxu3 %v7056_v55 }
 0x5cb   : > { %4324 = vmatpush.msra.mxu2 %v3827_v33  ;;  %4350 = vmatpush.msrb.mxu3 %v3859_v6  ;;  %v4394_v33 = vld [vmem:[%s7666_s7 + $0x10] sm:$0xff] }
 0x5cc   : > { %4310 = vmatmul.f32.gmra.mxu1 %v7141_v35  ;;  %v3851_v35 = vld [vmem:[%s7664_s5 + $0x818] sm:$0xff]  ;;  %v3944_v30 = vpop.f32.mrf.mxu2 }
 0x5cd   : > { %4325 = vmatpush.msra.mxu2 %v3825_v2  ;;  %4351 = vmatpush.msrb.mxu3 %v3857_v41  ;;  %v3970_v36 = vpop.f32.mrf.mxu3  ;;  %v3996_v38 = vpop.f32.mrf.mxu1  ;;  %v3945_v61 = vadd.f32 %v3944_v30, %v3919_v43  ;;  %v4393_v41 = vld [vmem:[%s7666_s7 + $0x8] sm:$0xff] }
 0x5cf   : > { %4326 = vmatpush.msra.mxu2 %v3823_v29  ;;  %4352 = vmatpush.msrb.mxu3 %v3855_v54  ;;  %v3971_v1 = vadd.f32 %v3970_v36, %v3945_v61 }
 0x5d1   : > { %4327 = vmatpush.msra.mxu2 %v3821_v58  ;;  %4353 = vmatpush.msrb.mxu3 %v3853_v7  ;;  %v3997_v21 = vadd.f32 %v3996_v38, %v3971_v1  ;;  %v4420_v1 = vld [vmem:[%s7666_s7 + $0xe0] sm:$0xff] }
 0x5d2   : > { %4258 = vmatmul.f32.gmra.mxu2 %v7187_v5  ;;  %4284 = vmatmul.f32.gmra.mxu3 %v7189_v45 }
 0x5d3   : > { %4328 = vmatpush.msra.mxu2 %v3819_v46  ;;  %4354 = vmatpush.msrb.mxu3 %v3851_v35  ;;  %v4392_v46 = vld [vmem:[%s7666_s7] sm:$0xff] }
 0x5d5   : > { %4329 = vmatpush.msra.mxu2 %v3817_v8  ;;  %4355 = vmatpush.msrb.mxu3 %v3849_v13 }
 0x5da   : > { %4330 = vmatmul.f32.vlgmr.msra.gmra.mxu2 %v7054_v57  ;;  %4356 = vmatmul.f32.vlgmr.msrb.gmra.mxu3 %v7056_v55 }
 0x5dd   : > { %v3999_v25 = vpop.f32.mrf.mxu1 }
 0x5e2   : > { %4333 = vmatmul.f32.gmra.mxu2 %v7187_v5  ;;  %4359 = vmatmul.f32.gmra.mxu3 %v7189_v45  ;;  %v4407_v5 = vld [vmem:[%s7666_s7 + $0x78] sm:$0xff]  ;;  %v4406_v45 = vld [vmem:[%s7666_s7 + $0x70] sm:$0xff] }
 0x5e3   : > { %4425 = vmatpush.msra.mxu1 %v4407_v5 }
 0x5e5   : > { %v7502_v55 = vpop.f32.mrf.mxu1  ;;  %4426 = vmatpush.msra.mxu1 %v4406_v45 }
 0x5ea   : > { %4336 = vmatmul.f32.gmra.mxu2 %v7293_v0  ;;  %4362 = vmatmul.f32.gmra.mxu3 %v7295_v18  ;;  %v4405_v0 = vld [vmem:[%s7666_s7 + $0x68] sm:$0xff]  ;;  %v7513_v18 = vpop.permute.xlu0 %3885 }
 0x5eb   : > { %4427 = vmatpush.msra.mxu1 %v4405_v0  ;;  %v3916_v23 = vadd.f32 %v7450_v28, %v7513_v18 }
 0x5ec   : > { %v3947_v56 = vpop.f32.mrf.mxu2 }
 0x5ed   : > { %v3973_v44 = vpop.f32.mrf.mxu3  ;;  %v4074_v20 = vpop.f32.mrf.mxu1  ;;  %4428 = vmatpush.msra.mxu1 %v4404_v37  ;;  %v3942_v47 = vadd.f32 %v3941_v26, %v3916_v23 }
 0x5ef   : > { %4429 = vmatpush.msra.mxu1 %v4403_v11  ;;  %v3968_v63 = vadd.f32 %v3967_v53, %v3942_v47 }
 0x5f1   : > { %4430 = vmatpush.msra.mxu1 %v4402_v3  ;;  %v3994_v9 = vadd.f32 %v3993_v10, %v3968_v63 }
 0x5f2   : > { %v7523_v12 = vpop.permute.xlu0 %3895 }
 0x5f3   : > { %4431 = vmatpush.msra.mxu1 %v4401_v4  ;;  %v3922_v39 = vadd.f32 %v3921_v34, %v7523_v12 }
 0x5f4   : > { %v4019_v57 = vpop.f32.mrf.mxu2 }
 0x5f5   : > { %v4045_v48 = vpop.f32.mrf.mxu3  ;;  %4432 = vmatpush.msra.mxu1 %v4400_v27  ;;  %v3948_v51 = vadd.f32 %v3947_v56, %v3922_v39  ;;  %v4020_v22 = vadd.f32 %v4019_v57, %v3994_v9 }
 0x5f7   : > { %4433 = vmatpush.msra.mxu1 %v4399_v24  ;;  %v3974_v50 = vadd.f32 %v3973_v44, %v3948_v51  ;;  %v4046_v58 = vadd.f32 %v4045_v48, %v4020_v22  ;;  %v4423_v51 = vld [vmem:[%s7666_s7 + $0xf8] sm:$0xff]  ;;  %v4422_v24 = vld [vmem:[%s7666_s7 + $0xf0] sm:$0xff] }
 0x5f8   : > { %4445 = vmatpush.msrb.mxu2 %v4423_v51 }
 0x5f9   : > { %4434 = vmatpush.msra.mxu1 %v4398_v17  ;;  %v4000_v28 = vadd.f32 %v3999_v25, %v3974_v50  ;;  %v4072_v35 = vadd.f32 %v7502_v55, %v4046_v58  ;;  %v7568_v55 = vld [vmem:[%s7665_s6] sm:$0x3]  ;;  %v4421_v17 = vld [vmem:[%s7666_s7 + $0xe8] sm:$0xff]  ;;  %v4419_v50 = vld [vmem:[%s7666_s7 + $0xd8] sm:$0xff] }
 0x5fa   : > { %4446 = vmatpush.msrb.mxu2 %v4422_v24  ;;  %v4385_v24 = vperm.slane %v7568_v55, 1 }
 0x5fb   : > { %4435 = vmatpush.msra.mxu1 %v4397_v19  ;;  %v4418_v19 = vld [vmem:[%s7666_s7 + $0xd0] sm:$0xff] }
 0x5fc   : > { %v4022_v16 = vpop.f32.mrf.mxu2  ;;  %4447 = vmatpush.msrb.mxu2 %v4421_v17 }
 0x5fd   : > { %v4048_v52 = vpop.f32.mrf.mxu3  ;;  %v4077_v42 = vpop.f32.mrf.mxu1  ;;  %4436 = vmatpush.msra.mxu1 %v4396_v14  ;;  %v4023_v6 = vadd.f32 %v4022_v16, %v3997_v21  ;;  %v4417_v21 = vld [vmem:[%s7666_s7 + $0xc8] sm:$0xff] }
 0x5fe   : > { %4448 = vmatpush.msrb.mxu2 %v4420_v1 }
 0x5ff   : > { %4437 = vmatpush.msra.mxu1 %v4395_v62  ;;  %v4049_v60 = vadd.f32 %v4048_v52, %v4023_v6 }
 0x600   : > { %4449 = vmatpush.msrb.mxu2 %v4419_v50 }
 0x601   : > { %4438 = vmatpush.msra.mxu1 %v4394_v33  ;;  %v4075_v34 = vadd.f32 %v4074_v20, %v4049_v60 }
 0x602   : > { %4450 = vmatpush.msrb.mxu2 %v4418_v19 }
 0x603   : > { %4439 = vmatpush.msra.mxu1 %v4393_v41 }
 0x604   : > { %4451 = vmatpush.msrb.mxu2 %v4417_v21 }
 0x605   : > { %v7553_v40 = vpop.f32.mrf.mxu1  ;;  %4440 = vmatpush.msra.mxu1 %v4392_v46 }
 0x606   : > { %v4150_v62 = vadd.f32 %v7553_v40, %v7513_v18  ;;  %v4415_v18 = vld [vmem:[%s7666_s7 + $0xb8] sm:$0xff] }
 0x60c   : > { %v4025_v31 = vpop.f32.mrf.mxu2  ;;  %v4051_v59 = vpop.f32.mrf.mxu3 }
 0x60d   : > { %v4026_v2 = vadd.f32 %v4025_v31, %v4000_v28  ;;  %v4152_v13 = vpop.f32.mrf.mxu1  ;;  %v4384_v31 = vperm.slane %v7568_v55, 0 }
 0x60e   : > { %v4153_v28 = vadd.f32 %v4152_v13, %v7521_v49  ;;  %v4414_v49 = vld [vmem:[%s7666_s7 + $0xb0] sm:$0xff] }
 0x60f   : > { %v4052_v7 = vadd.f32 %v4051_v59, %v4026_v2  ;;  %v4416_v2 = vld [vmem:[%s7666_s7 + $0xc0] sm:$0xff] }
 0x610   : > { %4452 = vmatpush.msrb.mxu2 %v4416_v2 }
 0x611   : > { %v4078_v26 = vadd.f32 %v4077_v42, %v4052_v7  ;;  %v4413_v7 = vld [vmem:[%s7666_s7 + $0xa8] sm:$0xff] }
 0x612   : > { %4453 = vmatpush.msrb.mxu2 %v4415_v18 }
 0x614   : > { %v4097_v15 = vpop.f32.mrf.mxu2  ;;  %v4123_v32 = vpop.f32.mrf.mxu3  ;;  %4454 = vmatpush.msrb.mxu2 %v4414_v49 }
 0x615   : > { %v4098_v8 = vadd.f32 %v4097_v15, %v4072_v35  ;;  %v4412_v35 = vld [vmem:[%s7666_s7 + $0xa0] sm:$0xff] }
 0x616   : > { %v4155_v45 = vpop.f32.mrf.mxu1  ;;  %4455 = vmatpush.msrb.mxu2 %v4413_v7 }
 0x617   : > { %v4124_v38 = vadd.f32 %v4123_v32, %v4098_v8  ;;  %v4156_v33 = vadd.f32 %v4155_v45, %v7523_v12  ;;  %v4411_v8 = vld [vmem:[%s7666_s7 + $0x98] sm:$0xff] }
 0x618   : > { %4456 = vmatpush.msrb.mxu2 %v4412_v35 }
 0x61a   : > { %4457 = vmatpush.msrb.mxu2 %v4411_v8 }
 0x61c   : > { %v4100_v29 = vpop.f32.mrf.mxu2 }
 0x61d   : > { %v4126_v54 = vpop.f32.mrf.mxu3  ;;  %v4101_v30 = vadd.f32 %v4100_v29, %v4075_v34 }
 0x61f   : > { %v4127_v44 = vadd.f32 %v4126_v54, %v4101_v30  ;;  %v4227_v4 = vpop.f32.mrf.mxu1 }
 0x624   : > { %v4103_v53 = vpop.f32.mrf.mxu2 }
 0x625   : > { %v4129_v10 = vpop.f32.mrf.mxu3  ;;  %v4104_v36 = vadd.f32 %v4103_v53, %v4078_v26 }
 0x627   : > { %v4130_v56 = vadd.f32 %v4129_v10, %v4104_v36  ;;  %v4410_v10 = vld [vmem:[%s7666_s7 + $0x90] sm:$0xff] }
 0x628   : > { %v4230_v27 = vpop.f32.mrf.mxu1  ;;  %4458 = vmatpush.msrb.mxu2 %v4410_v10 }
 0x629   : > { %v4366_v25 = vmax.f32 %v4124_v38, %v4130_v56  ;;  %v4409_v38 = vld [vmem:[%s7666_s7 + $0x88] sm:$0xff] }
 0x62a   : > { %4459 = vmatpush.msrb.mxu2 %v4409_v38 }
 0x62b   : > { %v4367_v57 = vmax.f32 %v4366_v25, %v4127_v44 }
 0x62d   : > { %v4175_v48 = vpop.f32.mrf.mxu2  ;;  %v4201_v5 = vpop.f32.mrf.mxu3  ;;  %v4368_v0 = vrot.slane %v4367_v57, 4 }
 0x62e   : > { %v4176_v6 = vadd.f32 %v4175_v48, %v4150_v62 }
 0x62f   : > { %v4369_v16 = vmax.f32 %v4367_v57, %v4368_v0  ;;  %v4408_v57 = vld [vmem:[%s7666_s7 + $0x80] sm:$0xff] }
 0x630   : > { %v4233_v15 = vpop.f32.mrf.mxu1  ;;  %v4202_v40 = vadd.f32 %v4201_v5, %v4176_v6  ;;  %4460 = vmatpush.msrb.mxu2 %v4408_v57 }
 0x631   : > { %v4370_v52 = vrot.slane %v4369_v16, 2 }
 0x632   : > { %v4228_v46 = vadd.f32 %v4227_v4, %v4202_v40 }
 0x633   : > { %v4371_v20 = vmax.f32 %v4369_v16, %v4370_v52 }
 0x635   : > { %v4178_v37 = vpop.f32.mrf.mxu2  ;;  %v4204_v11 = vpop.f32.mrf.mxu3  ;;  %v4372_v3 = vrot.slane %v4371_v20, 1 }
 0x636   : > { %v4179_v41 = vadd.f32 %v4178_v37, %v4153_v28 }
 0x637   : > { %v4373_v59 = vmax.f32 %v4371_v20, %v4372_v3 }
 0x638   : > { %v4205_v58 = vadd.f32 %v4204_v11, %v4179_v41 }
 0x639   : > { %v4388_v23 = vadd.f32 %v4384_v31, %v4373_v59  ;;  %v4305_v22 = vpop.f32.mrf.mxu1 }
 0x63a   : > { %v4231_v26 = vadd.f32 %v4230_v27, %v4205_v58 }
 0x63b   : > { %v4390_v43 = vmax.f32 %v4388_v23, 0.0 }
 0x63d   : > { %v4181_v39 = vpop.f32.mrf.mxu2  ;;  %v4207_v42 = vpop.f32.mrf.mxu3  ;;  %4441 = vmatmul.f32.vlgmr.msra.gmra.mxu1 %v4390_v43 }
 0x63e   : > { %v4182_v29 = vadd.f32 %v4181_v39, %v4156_v33 }
 0x640   : > { %v4208_v60 = vadd.f32 %v4207_v42, %v4182_v29 }
 0x641   : > { %v4308_v13 = vpop.f32.mrf.mxu1 }
 0x642   : > { %v4234_v53 = vadd.f32 %v4233_v15, %v4208_v60 }
 0x645   : > { %v4253_v47 = vpop.f32.mrf.mxu2  ;;  %v4279_v61 = vpop.f32.mrf.mxu3 }
 0x646   : > { %v4254_v34 = vadd.f32 %v4253_v47, %v4228_v46 }
 0x648   : > { %v4280_v25 = vadd.f32 %v4279_v61, %v4254_v34 }
 0x649   : > { %v4311_v0 = vpop.f32.mrf.mxu1 }
 0x64a   : > { %v4306_v45 = vadd.f32 %v4305_v22, %v4280_v25 }
 0x64d   : > { %v4256_v32 = vpop.f32.mrf.mxu2  ;;  %v4282_v63 = vpop.f32.mrf.mxu3 }
 0x64e   : > { %v4257_v30 = vadd.f32 %v4256_v32, %v4231_v26 }
 0x650   : > { %v4283_v48 = vadd.f32 %v4282_v63, %v4257_v30  ;;  %v4424_v63 = vld [vmem:[%s7667_s8] sm:$0x1] }
 0x652   : > { %v4309_v52 = vadd.f32 %v4308_v13, %v4283_v48 }
 0x655   : > { %v4259_v9 = vpop.f32.mrf.mxu2  ;;  %v4285_v14 = vpop.f32.mrf.mxu3 }
 0x656   : > { %v4260_v36 = vadd.f32 %v4259_v9, %v4234_v53 }
 0x658   : > { %v4286_v5 = vadd.f32 %v4285_v14, %v4260_v36 }
 0x65a   : > { %v4312_v20 = vadd.f32 %v4311_v0, %v4286_v5 }
 0x65d   : > { %v4331_v54 = vpop.f32.mrf.mxu2  ;;  %v4357_v12 = vpop.f32.mrf.mxu3 }
 0x65e   : > { %v4332_v16 = vadd.f32 %v4331_v54, %v4306_v45 }
 0x660   : > { %v4358_v59 = vadd.f32 %v4357_v12, %v4332_v16 }
 0x665   : > { %v4334_v56 = vpop.f32.mrf.mxu2  ;;  %v4360_v44 = vpop.f32.mrf.mxu3 }
 0x666   : > { %v4335_v11 = vadd.f32 %v4334_v56, %v4309_v52 }
 0x668   : > { %v4361_v23 = vadd.f32 %v4360_v44, %v4335_v11 }
 0x66d   : > { %v4337_v37 = vpop.f32.mrf.mxu2  ;;  %v4363_v31 = vpop.f32.mrf.mxu3 }
 0x66e   : > { %v4338_v3 = vadd.f32 %v4337_v37, %v4312_v20 }
 0x670   : > { %v4364_v4 = vadd.f32 %v4363_v31, %v4338_v3 }
 0x672   : > { %v4374_v43 = vmax.f32 %v4358_v59, %v4364_v4 }
 0x674   : > { %v4375_v39 = vmax.f32 %v4374_v43, %v4361_v23 }
 0x676   : > { %v4376_v42 = vrot.slane %v4375_v39, 4 }
 0x678   : > { %v4377_v27 = vmax.f32 %v4375_v39, %v4376_v42 }
 0x67a   : > { %v4378_v47 = vrot.slane %v4377_v27, 2 }
 0x67c   : > { %v4379_v61 = vmax.f32 %v4377_v27, %v4378_v47 }
 0x67e   : > { %v4380_v51 = vrot.slane %v4379_v61, 1 }
 0x680   : > { %v4381_v17 = vmax.f32 %v4379_v61, %v4380_v51 }
 0x682   : > { %v4389_v15 = vadd.f32 %v4385_v24, %v4381_v17 }
 0x684   : > { %v4391_v32 = vmax.f32 %v4389_v15, 0.0 }
 0x686   : > { %4461 = vmatmul.f32.vlgmr.msrb.gmra.mxu2 %v4391_v32 }
 0x6ba   : > { %v4442_v1 = vpop.f32.mrf.mxu1 }
 0x6bb   : > { %v4443_v50 = vadd.f32 %v4442_v1, %v4424_v63 }
 0x709   : > { %v4462_v55 = vpop.f32.mrf.mxu2 }
 0x70a   : > { %v4463_v19 = vadd.f32 %v4462_v55, %v4443_v50 }
 0x70c   : > { %4465 = vst [vmem:[%s351_s18] sm:$0x1] %v4463_v19 }
 0x70d   : > { %5002 = shalt.err (!%p4999_p3)
}
 0x70e   : > { %4912 = dma.vmem_to_hbm [thread:$0]  (%p5134_p5), %s4478_s29, 16, %s4480_s30, %s4467_s11  }
 0x70f PF: > { %p4918_p4 = scmp.ge.s32.totalorder %s5037_s16, 2  ;;  %s4491_s20 = sand.u32 1, %s5025_s13  }
 0x710   : > { %s4492_s18 = scalar_lea.sflag [#allocation8], %s4491_s20 }
 0x711   : > { %p4915_p7 = pnand %p4918_p4, %p5138_p6 }
 0x713   : > { %p4916_p8 = pneg %p4915_p7 }
 0x715   : > { %5020 = dma.done.wait (%p4916_p8), %s4492_s18, 16  }
 0x716   : > { %5022 = vsyncadd (%p4916_p8), %s4492_s18, 4294967280  ;;  %p20_p9 = scmp.ge.s32.totalorder %s5121_s19, 4   ;;  %s7765_s13 = smov %s5029_s14 }
 0x717   : > { %s7766_s14 = smov %s5033_s15  ;;  %s7767_s15 = smov %s5132_s22 }
 0x718   : > { %s7768_s16 = smov %s5121_s19  ;;  %22 = sbr.rel (!%p20_p9) target bundleno = 3 (0x3), region = 225 }
 0x71d   :  { %4497 = vsyncpa [#allocation8], 1 }
 0x71e   :  { %4499 = vsyncpa [#allocation8 + $0x1], 1 }

</bundles_post_ra>
